<compile_context>
chip_gen: v6e
topology: v6e:2x2x1
jax: 0.10.0
libtpu: 0.0.40
codegen_flags: <defaults>
</compile_context>

<pallas_src>
import functools

import jax
import jax.numpy as jnp
from jax.experimental import pallas as pl
from jax.experimental.pallas import tpu as pltpu

_LANE = 128
_TAP_GROUP = 2                    # taps fused per dot -> 256-deep contraction
_VMEM_LIMIT = 32 * 1024 * 1024    # safe default on v5e/v6e/v7x at this scale
_BN_EPS = 1e-5


def _rup(c, m=_LANE):
    return ((c + m - 1) // m) * m


def _out_len(L, K, stride, padding, dilation):
    return (L + 2 * padding - dilation * (K - 1) - 1) // stride + 1


def _pads(L, K, stride, padding, dilation, Lout):
    pad_lo = padding
    # Over-pad the high side so every tap window (and stride decimation) stays
    # in bounds; the extra zero rows never reach the output.
    pad_hi = max(padding, (K - 1) * dilation + stride * Lout - L - pad_lo)
    return pad_lo, max(pad_hi, 0)


# ----------------------------------------------------------------------------
# Kernel bodies
# ----------------------------------------------------------------------------
def _stacked_conv(window, w_ref, *, K, cin, rows, cout, tap_group):
    """Batch-stacked conv: acc = sum_k window(k) @ w[k*cin:(k+1)*cin, :]."""
    acc = jnp.zeros((rows, cout), jnp.float32)
    for g0 in range(0, K, tap_group):          # static unroll over tap groups
        g1 = min(g0 + tap_group, K)
        cols = [window(k).reshape(rows, cin) for k in range(g0, g1)]
        xcat = cols[0] if len(cols) == 1 else jnp.concatenate(cols, axis=-1)
        acc = acc + jnp.dot(xcat, w_ref[g0 * cin:g1 * cin, :],
                            preferred_element_type=jnp.float32)
    return acc


def _conv_kernel(x_ref, w_ref, shift_ref, o_ref, *scratch, K, stride, dilation,
                 pad_lo, pad_hi, Lout, relu, tap_group):
    """Single (Dws)ConvBlock1d: conv + folded-BN/bias shift (+ ReLU)."""
    N, L, Cin = x_ref.shape
    Cout = o_ref.shape[-1]
    Lp = L + pad_lo + pad_hi
    needs_pad = pad_lo > 0 or pad_hi > 0

    si = 0
    if needs_pad:
        xp_ref = scratch[si]
        si += 1
        if pad_lo > 0:
            xp_ref[:, :pad_lo, :] = jnp.zeros((N, pad_lo, Cin), xp_ref.dtype)
        if pad_hi > 0:
            xp_ref[:, pad_lo + L:, :] = jnp.zeros((N, pad_hi, Cin), xp_ref.dtype)
        xp_ref[:, pad_lo:pad_lo + L, :] = x_ref[...]
        src_ref = xp_ref
    else:
        src_ref = x_ref

    if stride > 1:
        # Decimate ONCE into `stride` parity planes; each tap then reads a
        # contiguous Lout-row window from one plane (no per-tap reshape).
        plane_ref = scratch[si]
        si += 1
        Lh = Lp // stride
        for n in range(N):
            xv = src_ref[n].reshape(Lh, stride, Cin)
            for p in range(stride):
                plane_ref[p, n] = xv[:, p, :]

        def window(k):
            off = k * dilation
            return plane_ref[off % stride, :,
                             off // stride:off // stride + Lout, :]
    else:
        def window(k):
            s = k * dilation
            return src_ref[:, s:s + Lout, :]

    acc = _stacked_conv(window, w_ref, K=K, cin=Cin, rows=N * Lout, cout=Cout,
                        tap_group=tap_group)
    y = acc + shift_ref[...]
    if relu:
        y = jnp.maximum(y, 0.0)
    o_ref[...] = y.reshape(N, Lout, Cout).astype(o_ref.dtype)


def _unit_kernel(*refs, K, repeat, pad_lo, pad_hi, tap_group):
    """Whole QuartzUnit: `repeat` body blocks + identity 1x1 + add + ReLU."""
    x_ref = refs[0]
    w_refs = [refs[1 + 2 * i] for i in range(repeat)]
    s_refs = [refs[2 + 2 * i] for i in range(repeat)]
    wid_ref = refs[1 + 2 * repeat]
    bid_ref = refs[2 + 2 * repeat]
    o_ref = refs[3 + 2 * repeat]
    bufs = refs[4 + 2 * repeat:]

    N, L, Cin = x_ref.shape
    Cout = o_ref.shape[-1]
    Cmax = bufs[0].shape[-1]
    rows = N * L

    # Zero the halo rows of the ping-pong buffers once; body-block interior
    # stores never touch them, so every block sees correct zero padding.
    for buf in bufs:
        if pad_lo > 0:
            buf[:, :pad_lo, :] = jnp.zeros((N, pad_lo, Cmax), buf.dtype)
        if pad_hi > 0:
            buf[:, pad_lo + L:, :] = jnp.zeros((N, pad_hi, Cmax), buf.dtype)

    # One padded-scratch copy of the unit input (per unit, not per block).
    bufs[0][:, pad_lo:pad_lo + L, :Cin] = x_ref[...]

    src = bufs[0]
    dst = bufs[1] if repeat > 1 else bufs[0]
    cin = Cin
    for i in range(repeat):
        last = i == repeat - 1

        def window(k, _src=src, _cin=cin):
            return _src[:, k:k + L, :_cin]

        acc = _stacked_conv(window, w_refs[i], K=K, cin=cin, rows=rows,
                            cout=Cout, tap_group=tap_group)
        y = acc + s_refs[i][...]
        if not last:
            y = jnp.maximum(y, 0.0)
            dst[:, pad_lo:pad_lo + L, :Cout] = (
                y.reshape(N, L, Cout).astype(dst.dtype))
            src, dst = dst, src
            cin = Cout
        else:
            # Fused QuartzUnit epilogue: identity 1x1 conv + residual + ReLU.
            ident = jnp.dot(x_ref[...].reshape(rows, Cin), wid_ref[...],
                            preferred_element_type=jnp.float32) + bid_ref[...]
            o_ref[...] = (jnp.maximum(y + ident, 0.0)
                          .reshape(N, L, Cout).astype(o_ref.dtype))


def _head_kernel(x_ref, w2_ref, s2_ref, wh_ref, bh_ref, o_ref):
    """Fused K=1 final ConvBlock1d (conv+BN+ReLU) + num_classes 1x1 head."""
    N, L, C1 = x_ref.shape
    rows = N * L
    xs = x_ref[...].reshape(rows, C1)
    y = jnp.dot(xs, w2_ref[...], preferred_element_type=jnp.float32)
    y = jnp.maximum(y + s2_ref[...], 0.0)
    out = jnp.dot(y.astype(wh_ref.dtype), wh_ref[...],
                  preferred_element_type=jnp.float32) + bh_ref[...]
    o_ref[...] = out.reshape(N, L, o_ref.shape[-1]).astype(o_ref.dtype)


# ----------------------------------------------------------------------------
# pallas_call wrappers
# ----------------------------------------------------------------------------
def conv_block(x, w, shift, *, K, stride=1, padding=0, dilation=1, relu=True):
    N, L, Cin = x.shape
    Cout = w.shape[-1]
    assert w.shape[0] == K * Cin
    Lout = _out_len(L, K, stride, padding, dilation)
    pad_lo, pad_hi = _pads(L, K, stride, padding, dilation, Lout)
    if stride > 1:
        pad_hi += (-(L + pad_lo + pad_hi)) % stride   # parity planes need Lp % stride == 0
    Lp = L + pad_lo + pad_hi
    needs_pad = pad_lo > 0 or pad_hi > 0

    scratch = []
    if needs_pad:                                      # skipped for K=1 convs
        scratch.append(pltpu.VMEM((N, Lp, Cin), x.dtype))
    if stride > 1:
        scratch.append(pltpu.VMEM((stride, N, Lp // stride, Cin), x.dtype))

    kern = functools.partial(_conv_kernel, K=K, stride=stride,
                             dilation=dilation, pad_lo=pad_lo, pad_hi=pad_hi,
                             Lout=Lout, relu=relu, tap_group=_TAP_GROUP)
    return pl.pallas_call(
        kern,
        out_shape=jax.ShapeDtypeStruct((N, Lout, Cout), x.dtype),
        grid=(1,),
        in_specs=[
            pl.BlockSpec((N, L, Cin), lambda i: (0, 0, 0)),
            pl.BlockSpec((K * Cin, Cout), lambda i: (0, 0)),
            pl.BlockSpec((1, Cout), lambda i: (0, 0)),
        ],
        out_specs=pl.BlockSpec((N, Lout, Cout), lambda i: (0, 0, 0)),
        scratch_shapes=scratch,
        compiler_params=pltpu.CompilerParams(
            dimension_semantics=("arbitrary",),
            vmem_limit_bytes=_VMEM_LIMIT),
    )(x, w, shift)


def quartz_unit(x, body_params, id_params, *, K, repeat):
    N, L, Cin = x.shape
    Cout = id_params["w"].shape[-1]
    padding = K // 2
    Lout = _out_len(L, K, 1, padding, 1)
    assert Lout == L, "QuartzUnit body must preserve length for the residual"
    pad_lo, pad_hi = _pads(L, K, 1, padding, 1, Lout)
    Lp = L + pad_lo + pad_hi
    Cmax = max([Cin, Cout] + [p["w"].shape[-1] for p in body_params])

    args = [x]
    in_specs = [pl.BlockSpec((N, L, Cin), lambda i: (0, 0, 0))]
    for p in body_params:
        args += [p["w"], p["shift"]]
        in_specs += [pl.BlockSpec(p["w"].shape, lambda i: (0, 0)),
                     pl.BlockSpec((1, p["w"].shape[-1]), lambda i: (0, 0))]
    args += [id_params["w"], id_params["shift"]]
    in_specs += [pl.BlockSpec(id_params["w"].shape, lambda i: (0, 0)),
                 pl.BlockSpec((1, Cout), lambda i: (0, 0))]

    n_bufs = 2 if repeat > 1 else 1
    kern = functools.partial(_unit_kernel, K=K, repeat=repeat,
                             pad_lo=pad_lo, pad_hi=pad_hi,
                             tap_group=_TAP_GROUP)
    return pl.pallas_call(
        kern,
        out_shape=jax.ShapeDtypeStruct((N, L, Cout), x.dtype),
        grid=(1,),
        in_specs=in_specs,
        out_specs=pl.BlockSpec((N, L, Cout), lambda i: (0, 0, 0)),
        scratch_shapes=[pltpu.VMEM((N, Lp, Cmax), x.dtype)
                        for _ in range(n_bufs)],
        compiler_params=pltpu.CompilerParams(
            dimension_semantics=("arbitrary",),
            vmem_limit_bytes=_VMEM_LIMIT),
    )(*args)


def final2_head(x, p2, ph):
    N, L, C1 = x.shape
    C2 = p2["w"].shape[-1]
    Ccls = ph["w"].shape[-1]
    assert p2["w"].shape[0] == C1 and ph["w"].shape[0] == C2
    return pl.pallas_call(
        _head_kernel,
        out_shape=jax.ShapeDtypeStruct((N, L, Ccls), x.dtype),
        grid=(1,),
        in_specs=[
            pl.BlockSpec((N, L, C1), lambda i: (0, 0, 0)),
            pl.BlockSpec((C1, C2), lambda i: (0, 0)),
            pl.BlockSpec((1, C2), lambda i: (0, 0)),
            pl.BlockSpec((C2, Ccls), lambda i: (0, 0)),
            pl.BlockSpec((1, Ccls), lambda i: (0, 0)),
        ],
        out_specs=pl.BlockSpec((N, L, Ccls), lambda i: (0, 0, 0)),
        compiler_params=pltpu.CompilerParams(
            dimension_semantics=("arbitrary",),
            vmem_limit_bytes=_VMEM_LIMIT),
    )(x, p2["w"], p2["shift"], ph["w"], ph["shift"])


# ----------------------------------------------------------------------------
# Deterministic parameter construction (synthetic weights, eval-mode BN folded
# into the weight columns, channels zero-padded to 128, weights pre-cast bf16).
# ----------------------------------------------------------------------------
def _bn_affine(key, c, cpad):
    k1, k2, k3, k4 = jax.random.split(key, 4)
    gamma = 1.0 + 0.1 * jax.random.normal(k1, (c,), jnp.float32)
    beta = 0.1 * jax.random.normal(k2, (c,), jnp.float32)
    mean = 0.1 * jax.random.normal(k3, (c,), jnp.float32)
    var = 1.0 + 0.1 * jax.random.uniform(k4, (c,), jnp.float32)
    scale = gamma / jnp.sqrt(var + _BN_EPS)
    shift = beta - mean * scale
    scale = jnp.pad(scale, (0, cpad - c))
    shift = jnp.pad(shift, (0, cpad - c)).reshape(1, cpad)
    return scale, shift


def _dws_params(key, cin, cout, K):
    """Depthwise+pointwise+BN-scale folded into one (K*Cin_p, Cout_p) bf16 w."""
    cinp, coutp = _rup(cin), _rup(cout)
    k1, k2, k3 = jax.random.split(key, 3)
    dww = 0.1 * jax.random.normal(k1, (K, cin), jnp.float32)
    pww = 0.1 * jax.random.normal(k2, (cin, cout), jnp.float32)
    scale, shift = _bn_affine(k3, cout, coutp)
    w_eff = dww[:, :, None] * pww[None, :, :]               # (K, cin, cout)
    w_eff = jnp.pad(w_eff, ((0, 0), (0, cinp - cin), (0, coutp - cout)))
    w_eff = w_eff * scale[None, None, :]                    # fold BN scale
    w_eff = w_eff.reshape(K * cinp, coutp).astype(jnp.bfloat16)
    return dict(w=w_eff, shift=shift)


def _conv_params(key, cin, cout, K, bn=True):
    """Dense conv reshaped to (K*Cin_p, Cout_p) bf16; BN scale folded or bias."""
    cinp, coutp = _rup(cin), _rup(cout)
    k1, k2 = jax.random.split(key)
    w = 0.1 * jax.random.normal(k1, (K, cin, cout), jnp.float32)
    w = jnp.pad(w, ((0, 0), (0, cinp - cin), (0, coutp - cout)))
    if bn:
        scale, shift = _bn_affine(k2, cout, coutp)
        w = w * scale[None, None, :]
    else:
        bias = 0.1 * jax.random.normal(k2, (cout,), jnp.float32)
        shift = jnp.pad(bias, (0, coutp - cout)).reshape(1, coutp)
    w = w.reshape(K * cinp, coutp).astype(jnp.bfloat16)
    return dict(w=w, shift=shift)


def build_quartznet_params(key, channels, kernel_sizes, repeat, in_channels,
                           num_classes):
    keys = iter(jax.random.split(key, 256))
    params = {}
    params["init"] = _dws_params(next(keys), in_channels, channels[0],
                                 kernel_sizes[0])
    cin = channels[0]
    units = []
    for cout, K in zip(channels[1:-2], kernel_sizes[1:-2]):
        u = {"identity": _conv_params(next(keys), cin, cout, 1, bn=True),
             "body": []}
        c = cin
        for _ in range(repeat):
            u["body"].append(_dws_params(next(keys), c, cout, K))
            c = cout
        units.append(u)
        cin = cout
    params["units"] = units
    params["final1"] = _dws_params(next(keys), cin, channels[-2],
                                   kernel_sizes[-2])
    params["final2"] = _conv_params(next(keys), channels[-2], channels[-1],
                                    kernel_sizes[-1], bn=True)
    params["output"] = _conv_params(next(keys), channels[-1], num_classes, 1,
                                    bn=False)
    return params


# ----------------------------------------------------------------------------
# QuartzNet forward (eval mode: dropout = identity)
# ----------------------------------------------------------------------------
def quartznet_forward(x, params, kernel_sizes, repeat):
    # init_block: DwsConvBlock1d, stride=2, padding=K//2 (parity-plane kernel).
    p = params["init"]
    K0 = kernel_sizes[0]
    x = conv_block(x, p["w"], p["shift"],
                   K=K0, stride=2, padding=K0 // 2, dilation=1, relu=True)

    # QuartzUnits: one fused pallas_call per unit.
    for u, K in zip(params["units"], kernel_sizes[1:-2]):
        x = quartz_unit(x, u["body"], u["identity"], K=K, repeat=repeat)

    # QuartzFinalBlock conv1: dilated DwsConvBlock1d (same padding rule as
    # the PyTorch module: padding = 2*K//2 - 1, dilation = 2).
    p = params["final1"]
    Kf1 = kernel_sizes[-2]
    x = conv_block(x, p["w"], p["shift"],
                   K=Kf1, stride=1, padding=2 * Kf1 // 2 - 1, dilation=2,
                   relu=True)

    # QuartzFinalBlock conv2 + num_classes output head (fused when K == 1).
    Kf2 = kernel_sizes[-1]
    if Kf2 == 1:
        x = final2_head(x, params["final2"], params["output"])
    else:
        p = params["final2"]
        x = conv_block(x, p["w"], p["shift"],
                       K=Kf2, stride=1, padding=Kf2 // 2, dilation=1, relu=True)
        p = params["output"]
        x = conv_block(x, p["w"], p["shift"],
                       K=1, stride=1, padding=0, dilation=1, relu=False)
    return x


# ----------------------------------------------------------------------------
if __name__ == "__main__":
    # Small QuartzNet configuration (same structural rules as the PyTorch code)
    channels = [32, 32, 64, 64]        # init, unit1, final conv1, final conv2
    kernel_sizes = [3, 5, 7, 1]
    repeat = 2
    in_channels = 16
    num_classes = 11
    N, L = 2, 32

    key = jax.random.PRNGKey(0)
    kx, kp = jax.random.split(key)

    # PyTorch-style (N, C, L) input -> (N, L, C) lane-dense layout, channels
    # zero-padded to 128 and cast to bf16 once at the model boundary.
    x_ncl = jax.random.normal(kx, (N, in_channels, L), jnp.float32)
    x = jnp.transpose(x_ncl, (0, 2, 1))
    x = jnp.pad(x, ((0, 0), (0, 0), (0, _rup(in_channels) - in_channels)))
    x = x.astype(jnp.bfloat16)

    params = build_quartznet_params(kp, channels, kernel_sizes, repeat,
                                    in_channels, num_classes)

    fwd = jax.jit(lambda xx, pp: quartznet_forward(xx, pp, kernel_sizes, repeat))
    out_nlc = fwd(x, params)                       # (N, L//2, 128) bf16
    out = jnp.transpose(out_nlc[:, :, :num_classes], (0, 2, 1))
    out = out.astype(jnp.float32)                  # (N, num_classes, L//2)
    jax.block_until_ready(out)

    print("KERNEL_OK")
</pallas_src>

<mosaic_0001>
module attributes {stable_mosaic.version = 11 : i64} {
  func.func @_conv_kernel(%arg0: i32, %arg1: memref<2x16x128xbf16, #tpu.memory_space<vmem>>, %arg2: memref<896x128xbf16, #tpu.memory_space<vmem>>, %arg3: memref<1x128xf32, #tpu.memory_space<vmem>>, %arg4: memref<2x16x128xbf16, #tpu.memory_space<vmem>>, %arg5: memref<2x28x128xbf16, #tpu.memory_space<vmem>>) attributes {dimension_semantics = [#tpu.dimension_semantics<arbitrary>], iteration_bounds = array<i64: 1>, scalar_prefetch = 0 : i64, scratch_operands = 1 : i64, tpu.core_type = #tpu.core_type<tc>, window_params = [{pipeline_mode = #tpu.pipeline_mode<synchronous>, transform_indices = @transform_0, window_bounds = array<i64: 2, 16, 128>}, {pipeline_mode = #tpu.pipeline_mode<synchronous>, transform_indices = @transform_1, window_bounds = array<i64: 896, 128>}, {pipeline_mode = #tpu.pipeline_mode<synchronous>, transform_indices = @transform_2, window_bounds = array<i64: 1, 128>}, {pipeline_mode = #tpu.pipeline_mode<synchronous>, transform_indices = @transform_3, window_bounds = array<i64: 2, 16, 128>}]} {
    %cst = arith.constant 0.000000e+00 : bf16
    %0 = vector.broadcast %cst : bf16 to vector<2x6x128xbf16>
    %c0 = arith.constant 0 : index
    %c0_0 = arith.constant 0 : index
    %c0_1 = arith.constant 0 : index
    %1 = vector.load %arg5[%c0, %c0_0, %c0_1] : memref<2x28x128xbf16, #tpu.memory_space<vmem>>, vector<2x6x128xbf16>
    tpu.vector_store %arg5[%c0, %c0_0, %c0_1], %0 {strides = array<i32>} : memref<2x28x128xbf16, #tpu.memory_space<vmem>>, vector<2x6x128xbf16>,
    %cst_2 = arith.constant 0.000000e+00 : bf16
    %2 = vector.broadcast %cst_2 : bf16 to vector<2x6x128xbf16>
    %c0_3 = arith.constant 0 : index
    %c22 = arith.constant 22 : index
    %c0_4 = arith.constant 0 : index
    %3 = vector.load %arg5[%c0_3, %c22, %c0_4] : memref<2x28x128xbf16, #tpu.memory_space<vmem>>, vector<2x6x128xbf16>
    tpu.vector_store %arg5[%c0_3, %c22, %c0_4], %2 {strides = array<i32>} : memref<2x28x128xbf16, #tpu.memory_space<vmem>>, vector<2x6x128xbf16>,
    %c0_5 = arith.constant 0 : index
    %c0_6 = arith.constant 0 : index
    %c0_7 = arith.constant 0 : index
    %4 = vector.load %arg1[%c0_5, %c0_6, %c0_7] : memref<2x16x128xbf16, #tpu.memory_space<vmem>>, vector<2x16x128xbf16>
    %c0_8 = arith.constant 0 : index
    %c6 = arith.constant 6 : index
    %c0_9 = arith.constant 0 : index
    %5 = vector.load %arg5[%c0_8, %c6, %c0_9] : memref<2x28x128xbf16, #tpu.memory_space<vmem>>, vector<2x16x128xbf16>
    tpu.vector_store %arg5[%c0_8, %c6, %c0_9], %4 {strides = array<i32>} : memref<2x28x128xbf16, #tpu.memory_space<vmem>>, vector<2x16x128xbf16>,
    %cst_10 = arith.constant 0.000000e+00 : f32
    %6 = vector.broadcast %cst_10 : f32 to vector<32x128xf32>
    %c0_11 = arith.constant 0 : index
    %c0_12 = arith.constant 0 : index
    %c0_13 = arith.constant 0 : index
    %7 = vector.load %arg5[%c0_11, %c0_12, %c0_13] : memref<2x28x128xbf16, #tpu.memory_space<vmem>>, vector<2x16x128xbf16>
    %8 = vector.shape_cast %7 : vector<2x16x128xbf16> to vector<32x128xbf16>
    %c0_14 = arith.constant 0 : index
    %c2 = arith.constant 2 : index
    %c0_15 = arith.constant 0 : index
    %9 = vector.load %arg5[%c0_14, %c2, %c0_15] : memref<2x28x128xbf16, #tpu.memory_space<vmem>>, vector<2x16x128xbf16>
    %10 = vector.shape_cast %9 : vector<2x16x128xbf16> to vector<32x128xbf16>
    %11 = tpu.concatenate %8, %10 in 1 : vector<32x128xbf16>, vector<32x128xbf16> -> vector<32x256xbf16>
    %c0_16 = arith.constant 0 : index
    %c0_17 = arith.constant 0 : index
    %12 = vector.load %arg2[%c0_16, %c0_17] : memref<896x128xbf16, #tpu.memory_space<vmem>>, vector<256x128xbf16>
    %cst_18 = arith.constant dense<0.000000e+00> : vector<32x128xf32>
    %13 = tpu.matmul %11, %12, %cst_18 {dimension_numbers = #tpu.dot_dimension_numbers<[1], [0], [0], [1], [0, 0, 1, 1], [], []>} : vector<32x256xbf16>, vector<256x128xbf16>, vector<32x128xf32> -> vector<32x128xf32>
    %14 = arith.addf %6, %13 : vector<32x128xf32>
    %c0_19 = arith.constant 0 : index
    %c4 = arith.constant 4 : index
    %c0_20 = arith.constant 0 : index
    %15 = vector.load %arg5[%c0_19, %c4, %c0_20] : memref<2x28x128xbf16, #tpu.memory_space<vmem>>, vector<2x16x128xbf16>
    %16 = vector.shape_cast %15 : vector<2x16x128xbf16> to vector<32x128xbf16>
    %c0_21 = arith.constant 0 : index
    %c6_22 = arith.constant 6 : index
    %c0_23 = arith.constant 0 : index
    %17 = vector.load %arg5[%c0_21, %c6_22, %c0_23] : memref<2x28x128xbf16, #tpu.memory_space<vmem>>, vector<2x16x128xbf16>
    %18 = vector.shape_cast %17 : vector<2x16x128xbf16> to vector<32x128xbf16>
    %19 = tpu.concatenate %16, %18 in 1 : vector<32x128xbf16>, vector<32x128xbf16> -> vector<32x256xbf16>
    %c256 = arith.constant 256 : index
    %c0_24 = arith.constant 0 : index
    %20 = vector.load %arg2[%c256, %c0_24] : memref<896x128xbf16, #tpu.memory_space<vmem>>, vector<256x128xbf16>
    %cst_25 = arith.constant dense<0.000000e+00> : vector<32x128xf32>
    %21 = tpu.matmul %19, %20, %cst_25 {dimension_numbers = #tpu.dot_dimension_numbers<[1], [0], [0], [1], [0, 0, 1, 1], [], []>} : vector<32x256xbf16>, vector<256x128xbf16>, vector<32x128xf32> -> vector<32x128xf32>
    %22 = arith.addf %14, %21 : vector<32x128xf32>
    %c0_26 = arith.constant 0 : index
    %c8 = arith.constant 8 : index
    %c0_27 = arith.constant 0 : index
    %23 = vector.load %arg5[%c0_26, %c8, %c0_27] : memref<2x28x128xbf16, #tpu.memory_space<vmem>>, vector<2x16x128xbf16>
    %24 = vector.shape_cast %23 : vector<2x16x128xbf16> to vector<32x128xbf16>
    %c0_28 = arith.constant 0 : index
    %c10 = arith.constant 10 : index
    %c0_29 = arith.constant 0 : index
    %25 = vector.load %arg5[%c0_28, %c10, %c0_29] : memref<2x28x128xbf16, #tpu.memory_space<vmem>>, vector<2x16x128xbf16>
    %26 = vector.shape_cast %25 : vector<2x16x128xbf16> to vector<32x128xbf16>
    %27 = tpu.concatenate %24, %26 in 1 : vector<32x128xbf16>, vector<32x128xbf16> -> vector<32x256xbf16>
    %c512 = arith.constant 512 : index
    %c0_30 = arith.constant 0 : index
    %28 = vector.load %arg2[%c512, %c0_30] : memref<896x128xbf16, #tpu.memory_space<vmem>>, vector<256x128xbf16>
    %cst_31 = arith.constant dense<0.000000e+00> : vector<32x128xf32>
    %29 = tpu.matmul %27, %28, %cst_31 {dimension_numbers = #tpu.dot_dimension_numbers<[1], [0], [0], [1], [0, 0, 1, 1], [], []>} : vector<32x256xbf16>, vector<256x128xbf16>, vector<32x128xf32> -> vector<32x128xf32>
    %30 = arith.addf %22, %29 : vector<32x128xf32>
    %c0_32 = arith.constant 0 : index
    %c12 = arith.constant 12 : index
    %c0_33 = arith.constant 0 : index
    %31 = vector.load %arg5[%c0_32, %c12, %c0_33] : memref<2x28x128xbf16, #tpu.memory_space<vmem>>, vector<2x16x128xbf16>
    %32 = vector.shape_cast %31 : vector<2x16x128xbf16> to vector<32x128xbf16>
    %c768 = arith.constant 768 : index
    %c0_34 = arith.constant 0 : index
    %33 = vector.load %arg2[%c768, %c0_34] : memref<896x128xbf16, #tpu.memory_space<vmem>>, vector<128x128xbf16>
    %cst_35 = arith.constant dense<0.000000e+00> : vector<32x128xf32>
    %34 = tpu.matmul %32, %33, %cst_35 {dimension_numbers = #tpu.dot_dimension_numbers<[1], [0], [0], [1], [0, 0, 1, 1], [], []>} : vector<32x128xbf16>, vector<128x128xbf16>, vector<32x128xf32> -> vector<32x128xf32>
    %35 = arith.addf %30, %34 : vector<32x128xf32>
    %c0_36 = arith.constant 0 : index
    %c0_37 = arith.constant 0 : index
    %36 = vector.load %arg3[%c0_36, %c0_37] : memref<1x128xf32, #tpu.memory_space<vmem>>, vector<1x128xf32>
    %37 = vector.broadcast %36 : vector<1x128xf32> to vector<32x128xf32>
    %38 = arith.addf %35, %37 : vector<32x128xf32>
    %cst_38 = arith.constant 0.000000e+00 : f32
    %39 = vector.broadcast %cst_38 : f32 to vector<32x128xf32>
    %40 = arith.maximumf %38, %39 : vector<32x128xf32>
    %41 = vector.shape_cast %40 : vector<32x128xf32> to vector<2x16x128xf32>
    %42 = arith.truncf %41 : vector<2x16x128xf32> to vector<2x16x128xbf16>
    %c0_39 = arith.constant 0 : index
    %c0_40 = arith.constant 0 : index
    %c0_41 = arith.constant 0 : index
    %43 = vector.load %arg4[%c0_39, %c0_40, %c0_41] : memref<2x16x128xbf16, #tpu.memory_space<vmem>>, vector<2x16x128xbf16>
    tpu.vector_store %arg4[%c0_39, %c0_40, %c0_41], %42 {strides = array<i32>} : memref<2x16x128xbf16, #tpu.memory_space<vmem>>, vector<2x16x128xbf16>,
    return
  }
  func.func @transform_0(%arg0: i32) -> (i32, i32, i32) {
    %c0_i32 = arith.constant 0 : i32
    %c0_i32_0 = arith.constant 0 : i32
    %c0_i32_1 = arith.constant 0 : i32
    %c0_i32_2 = arith.constant 0 : i32
    return %c0_i32, %c0_i32_0, %c0_i32_1 : i32, i32, i32
  }
  func.func @transform_1(%arg0: i32) -> (i32, i32) {
    %c0_i32 = arith.constant 0 : i32
    %c0_i32_0 = arith.constant 0 : i32
    %c0_i32_1 = arith.constant 0 : i32
    return %c0_i32, %c0_i32_0 : i32, i32
  }
  func.func @transform_2(%arg0: i32) -> (i32, i32) {
    %c0_i32 = arith.constant 0 : i32
    %c0_i32_0 = arith.constant 0 : i32
    %c0_i32_1 = arith.constant 0 : i32
    return %c0_i32, %c0_i32_0 : i32, i32
  }
  func.func @transform_3(%arg0: i32) -> (i32, i32, i32) {
    %c0_i32 = arith.constant 0 : i32
    %c0_i32_0 = arith.constant 0 : i32
    %c0_i32_1 = arith.constant 0 : i32
    %c0_i32_2 = arith.constant 0 : i32
    return %c0_i32, %c0_i32_0, %c0_i32_1 : i32, i32, i32
  }
}

module attributes {stable_mosaic.version = 11 : i64} {
  func.func @_head_kernel(%arg0: i32, %arg1: memref<2x16x128xbf16, #tpu.memory_space<vmem>>, %arg2: memref<128x128xbf16, #tpu.memory_space<vmem>>, %arg3: memref<1x128xf32, #tpu.memory_space<vmem>>, %arg4: memref<128x128xbf16, #tpu.memory_space<vmem>>, %arg5: memref<1x128xf32, #tpu.memory_space<vmem>>, %arg6: memref<2x16x128xbf16, #tpu.memory_space<vmem>>) attributes {dimension_semantics = [#tpu.dimension_semantics<arbitrary>], iteration_bounds = array<i64: 1>, scalar_prefetch = 0 : i64, scratch_operands = 0 : i64, tpu.core_type = #tpu.core_type<tc>, window_params = [{pipeline_mode = #tpu.pipeline_mode<synchronous>, transform_indices = @transform_0, window_bounds = array<i64: 2, 16, 128>}, {pipeline_mode = #tpu.pipeline_mode<synchronous>, transform_indices = @transform_1, window_bounds = array<i64: 128, 128>}, {pipeline_mode = #tpu.pipeline_mode<synchronous>, transform_indices = @transform_2, window_bounds = array<i64: 1, 128>}, {pipeline_mode = #tpu.pipeline_mode<synchronous>, transform_indices = @transform_3, window_bounds = array<i64: 128, 128>}, {pipeline_mode = #tpu.pipeline_mode<synchronous>, transform_indices = @transform_4, window_bounds = array<i64: 1, 128>}, {pipeline_mode = #tpu.pipeline_mode<synchronous>, transform_indices = @transform_5, window_bounds = array<i64: 2, 16, 128>}]} {
    %c0 = arith.constant 0 : index
    %c0_0 = arith.constant 0 : index
    %c0_1 = arith.constant 0 : index
    %0 = vector.load %arg1[%c0, %c0_0, %c0_1] : memref<2x16x128xbf16, #tpu.memory_space<vmem>>, vector<2x16x128xbf16>
    %1 = vector.shape_cast %0 : vector<2x16x128xbf16> to vector<32x128xbf16>
    %c0_2 = arith.constant 0 : index
    %c0_3 = arith.constant 0 : index
    %2 = vector.load %arg2[%c0_2, %c0_3] : memref<128x128xbf16, #tpu.memory_space<vmem>>, vector<128x128xbf16>
    %cst = arith.constant dense<0.000000e+00> : vector<32x128xf32>
    %3 = tpu.matmul %1, %2, %cst {dimension_numbers = #tpu.dot_dimension_numbers<[1], [0], [0], [1], [0, 0, 1, 1], [], []>} : vector<32x128xbf16>, vector<128x128xbf16>, vector<32x128xf32> -> vector<32x128xf32>
    %c0_4 = arith.constant 0 : index
    %c0_5 = arith.constant 0 : index
    %4 = vector.load %arg3[%c0_4, %c0_5] : memref<1x128xf32, #tpu.memory_space<vmem>>, vector<1x128xf32>
    %5 = vector.broadcast %4 : vector<1x128xf32> to vector<32x128xf32>
    %6 = arith.addf %3, %5 : vector<32x128xf32>
    %cst_6 = arith.constant 0.000000e+00 : f32
    %7 = vector.broadcast %cst_6 : f32 to vector<32x128xf32>
    %8 = arith.maximumf %6, %7 : vector<32x128xf32>
    %9 = arith.truncf %8 : vector<32x128xf32> to vector<32x128xbf16>
    %c0_7 = arith.constant 0 : index
    %c0_8 = arith.constant 0 : index
    %10 = vector.load %arg4[%c0_7, %c0_8] : memref<128x128xbf16, #tpu.memory_space<vmem>>, vector<128x128xbf16>
    %cst_9 = arith.constant dense<0.000000e+00> : vector<32x128xf32>
    %11 = tpu.matmul %9, %10, %cst_9 {dimension_numbers = #tpu.dot_dimension_numbers<[1], [0], [0], [1], [0, 0, 1, 1], [], []>} : vector<32x128xbf16>, vector<128x128xbf16>, vector<32x128xf32> -> vector<32x128xf32>
    %c0_10 = arith.constant 0 : index
    %c0_11 = arith.constant 0 : index
    %12 = vector.load %arg5[%c0_10, %c0_11] : memref<1x128xf32, #tpu.memory_space<vmem>>, vector<1x128xf32>
    %13 = vector.broadcast %12 : vector<1x128xf32> to vector<32x128xf32>
    %14 = arith.addf %11, %13 : vector<32x128xf32>
    %15 = vector.shape_cast %14 : vector<32x128xf32> to vector<2x16x128xf32>
    %16 = arith.truncf %15 : vector<2x16x128xf32> to vector<2x16x128xbf16>
    %c0_12 = arith.constant 0 : index
    %c0_13 = arith.constant 0 : index
    %c0_14 = arith.constant 0 : index
    %17 = vector.load %arg6[%c0_12, %c0_13, %c0_14] : memref<2x16x128xbf16, #tpu.memory_space<vmem>>, vector<2x16x128xbf16>
    tpu.vector_store %arg6[%c0_12, %c0_13, %c0_14], %16 {strides = array<i32>} : memref<2x16x128xbf16, #tpu.memory_space<vmem>>, vector<2x16x128xbf16>,
    return
  }
  func.func @transform_0(%arg0: i32) -> (i32, i32, i32) {
    %c0_i32 = arith.constant 0 : i32
    %c0_i32_0 = arith.constant 0 : i32
    %c0_i32_1 = arith.constant 0 : i32
    %c0_i32_2 = arith.constant 0 : i32
    return %c0_i32, %c0_i32_0, %c0_i32_1 : i32, i32, i32
  }
  func.func @transform_1(%arg0: i32) -> (i32, i32) {
    %c0_i32 = arith.constant 0 : i32
    %c0_i32_0 = arith.constant 0 : i32
    %c0_i32_1 = arith.constant 0 : i32
    return %c0_i32, %c0_i32_0 : i32, i32
  }
  func.func @transform_2(%arg0: i32) -> (i32, i32) {
    %c0_i32 = arith.constant 0 : i32
    %c0_i32_0 = arith.constant 0 : i32
    %c0_i32_1 = arith.constant 0 : i32
    return %c0_i32, %c0_i32_0 : i32, i32
  }
  func.func @transform_3(%arg0: i32) -> (i32, i32) {
    %c0_i32 = arith.constant 0 : i32
    %c0_i32_0 = arith.constant 0 : i32
    %c0_i32_1 = arith.constant 0 : i32
    return %c0_i32, %c0_i32_0 : i32, i32
  }
  func.func @transform_4(%arg0: i32) -> (i32, i32) {
    %c0_i32 = arith.constant 0 : i32
    %c0_i32_0 = arith.constant 0 : i32
    %c0_i32_1 = arith.constant 0 : i32
    return %c0_i32, %c0_i32_0 : i32, i32
  }
  func.func @transform_5(%arg0: i32) -> (i32, i32, i32) {
    %c0_i32 = arith.constant 0 : i32
    %c0_i32_0 = arith.constant 0 : i32
    %c0_i32_1 = arith.constant 0 : i32
    %c0_i32_2 = arith.constant 0 : i32
    return %c0_i32, %c0_i32_0, %c0_i32_1 : i32, i32, i32
  }
}

module attributes {stable_mosaic.version = 11 : i64} {
  func.func @_conv_kernel(%arg0: i32, %arg1: memref<2x32x128xbf16, #tpu.memory_space<vmem>>, %arg2: memref<384x128xbf16, #tpu.memory_space<vmem>>, %arg3: memref<1x128xf32, #tpu.memory_space<vmem>>, %arg4: memref<2x16x128xbf16, #tpu.memory_space<vmem>>, %arg5: memref<2x34x128xbf16, #tpu.memory_space<vmem>>, %arg6: memref<2x2x17x128xbf16, #tpu.memory_space<vmem>>) attributes {dimension_semantics = [#tpu.dimension_semantics<arbitrary>], iteration_bounds = array<i64: 1>, scalar_prefetch = 0 : i64, scratch_operands = 2 : i64, tpu.core_type = #tpu.core_type<tc>, window_params = [{pipeline_mode = #tpu.pipeline_mode<synchronous>, transform_indices = @transform_0, window_bounds = array<i64: 2, 32, 128>}, {pipeline_mode = #tpu.pipeline_mode<synchronous>, transform_indices = @transform_1, window_bounds = array<i64: 384, 128>}, {pipeline_mode = #tpu.pipeline_mode<synchronous>, transform_indices = @transform_2, window_bounds = array<i64: 1, 128>}, {pipeline_mode = #tpu.pipeline_mode<synchronous>, transform_indices = @transform_3, window_bounds = array<i64: 2, 16, 128>}]} {
    %cst = arith.constant 0.000000e+00 : bf16
    %0 = vector.broadcast %cst : bf16 to vector<2x1x128xbf16>
    %c0 = arith.constant 0 : index
    %c0_0 = arith.constant 0 : index
    %c0_1 = arith.constant 0 : index
    %1 = vector.load %arg5[%c0, %c0_0, %c0_1] : memref<2x34x128xbf16, #tpu.memory_space<vmem>>, vector<2x1x128xbf16>
    tpu.vector_store %arg5[%c0, %c0_0, %c0_1], %0 {strides = array<i32>} : memref<2x34x128xbf16, #tpu.memory_space<vmem>>, vector<2x1x128xbf16>,
    %cst_2 = arith.constant 0.000000e+00 : bf16
    %2 = vector.broadcast %cst_2 : bf16 to vector<2x1x128xbf16>
    %c0_3 = arith.constant 0 : index
    %c33 = arith.constant 33 : index
    %c0_4 = arith.constant 0 : index
    %3 = vector.load %arg5[%c0_3, %c33, %c0_4] : memref<2x34x128xbf16, #tpu.memory_space<vmem>>, vector<2x1x128xbf16>
    tpu.vector_store %arg5[%c0_3, %c33, %c0_4], %2 {strides = array<i32>} : memref<2x34x128xbf16, #tpu.memory_space<vmem>>, vector<2x1x128xbf16>,
    %c0_5 = arith.constant 0 : index
    %c0_6 = arith.constant 0 : index
    %c0_7 = arith.constant 0 : index
    %4 = vector.load %arg1[%c0_5, %c0_6, %c0_7] : memref<2x32x128xbf16, #tpu.memory_space<vmem>>, vector<2x32x128xbf16>
    %c0_8 = arith.constant 0 : index
    %c1 = arith.constant 1 : index
    %c0_9 = arith.constant 0 : index
    %5 = vector.load %arg5[%c0_8, %c1, %c0_9] : memref<2x34x128xbf16, #tpu.memory_space<vmem>>, vector<2x32x128xbf16>
    tpu.vector_store %arg5[%c0_8, %c1, %c0_9], %4 {strides = array<i32>} : memref<2x34x128xbf16, #tpu.memory_space<vmem>>, vector<2x32x128xbf16>,
    %c0_10 = arith.constant 0 : index
    %c0_11 = arith.constant 0 : index
    %c0_12 = arith.constant 0 : index
    %6 = vector.load %arg5[%c0_10, %c0_11, %c0_12] : memref<2x34x128xbf16, #tpu.memory_space<vmem>>, vector<1x34x128xbf16>
    %7 = vector.shape_cast %6 : vector<1x34x128xbf16> to vector<34x128xbf16>
    %8 = vector.shape_cast %7 : vector<34x128xbf16> to vector<17x2x128xbf16>
    %9 = vector.extract_strided_slice %8 {offsets = [0, 0, 0], sizes = [17, 1, 128], strides = [1, 1, 1]} : vector<17x2x128xbf16> to vector<17x1x128xbf16>
    %10 = vector.shape_cast %9 : vector<17x1x128xbf16> to vector<17x128xbf16>
    %c0_13 = arith.constant 0 : index
    %c0_14 = arith.constant 0 : index
    %c0_15 = arith.constant 0 : index
    %c0_16 = arith.constant 0 : index
    %11 = vector.load %arg6[%c0_13, %c0_14, %c0_15, %c0_16] : memref<2x2x17x128xbf16, #tpu.memory_space<vmem>>, vector<1x1x17x128xbf16>
    %12 = vector.shape_cast %11 : vector<1x1x17x128xbf16> to vector<17x128xbf16>
    %13 = vector.shape_cast %10 : vector<17x128xbf16> to vector<1x1x17x128xbf16>
    tpu.vector_store %arg6[%c0_13, %c0_14, %c0_15, %c0_16], %13 {strides = array<i32>} : memref<2x2x17x128xbf16, #tpu.memory_space<vmem>>, vector<1x1x17x128xbf16>,
    %14 = vector.extract_strided_slice %8 {offsets = [0, 1, 0], sizes = [17, 1, 128], strides = [1, 1, 1]} : vector<17x2x128xbf16> to vector<17x1x128xbf16>
    %15 = vector.shape_cast %14 : vector<17x1x128xbf16> to vector<17x128xbf16>
    %c1_17 = arith.constant 1 : index
    %c0_18 = arith.constant 0 : index
    %c0_19 = arith.constant 0 : index
    %c0_20 = arith.constant 0 : index
    %16 = vector.load %arg6[%c1_17, %c0_18, %c0_19, %c0_20] : memref<2x2x17x128xbf16, #tpu.memory_space<vmem>>, vector<1x1x17x128xbf16>
    %17 = vector.shape_cast %16 : vector<1x1x17x128xbf16> to vector<17x128xbf16>
    %18 = vector.shape_cast %15 : vector<17x128xbf16> to vector<1x1x17x128xbf16>
    tpu.vector_store %arg6[%c1_17, %c0_18, %c0_19, %c0_20], %18 {strides = array<i32>} : memref<2x2x17x128xbf16, #tpu.memory_space<vmem>>, vector<1x1x17x128xbf16>,
    %c1_21 = arith.constant 1 : index
    %c0_22 = arith.constant 0 : index
    %c0_23 = arith.constant 0 : index
    %19 = vector.load %arg5[%c1_21, %c0_22, %c0_23] : memref<2x34x128xbf16, #tpu.memory_space<vmem>>, vector<1x34x128xbf16>
    %20 = vector.shape_cast %19 : vector<1x34x128xbf16> to vector<34x128xbf16>
    %21 = vector.shape_cast %20 : vector<34x128xbf16> to vector<17x2x128xbf16>
    %22 = vector.extract_strided_slice %21 {offsets = [0, 0, 0], sizes = [17, 1, 128], strides = [1, 1, 1]} : vector<17x2x128xbf16> to vector<17x1x128xbf16>
    %23 = vector.shape_cast %22 : vector<17x1x128xbf16> to vector<17x128xbf16>
    %c0_24 = arith.constant 0 : index
    %c1_25 = arith.constant 1 : index
    %c0_26 = arith.constant 0 : index
    %c0_27 = arith.constant 0 : index
    %24 = vector.load %arg6[%c0_24, %c1_25, %c0_26, %c0_27] : memref<2x2x17x128xbf16, #tpu.memory_space<vmem>>, vector<1x1x17x128xbf16>
    %25 = vector.shape_cast %24 : vector<1x1x17x128xbf16> to vector<17x128xbf16>
    %26 = vector.shape_cast %23 : vector<17x128xbf16> to vector<1x1x17x128xbf16>
    tpu.vector_store %arg6[%c0_24, %c1_25, %c0_26, %c0_27], %26 {strides = array<i32>} : memref<2x2x17x128xbf16, #tpu.memory_space<vmem>>, vector<1x1x17x128xbf16>,
    %27 = vector.extract_strided_slice %21 {offsets = [0, 1, 0], sizes = [17, 1, 128], strides = [1, 1, 1]} : vector<17x2x128xbf16> to vector<17x1x128xbf16>
    %28 = vector.shape_cast %27 : vector<17x1x128xbf16> to vector<17x128xbf16>
    %c1_28 = arith.constant 1 : index
    %c1_29 = arith.constant 1 : index
    %c0_30 = arith.constant 0 : index
    %c0_31 = arith.constant 0 : index
    %29 = vector.load %arg6[%c1_28, %c1_29, %c0_30, %c0_31] : memref<2x2x17x128xbf16, #tpu.memory_space<vmem>>, vector<1x1x17x128xbf16>
    %30 = vector.shape_cast %29 : vector<1x1x17x128xbf16> to vector<17x128xbf16>
    %31 = vector.shape_cast %28 : vector<17x128xbf16> to vector<1x1x17x128xbf16>
    tpu.vector_store %arg6[%c1_28, %c1_29, %c0_30, %c0_31], %31 {strides = array<i32>} : memref<2x2x17x128xbf16, #tpu.memory_space<vmem>>, vector<1x1x17x128xbf16>,
    %cst_32 = arith.constant 0.000000e+00 : f32
    %32 = vector.broadcast %cst_32 : f32 to vector<32x128xf32>
    %c0_33 = arith.constant 0 : index
    %c0_34 = arith.constant 0 : index
    %c0_35 = arith.constant 0 : index
    %c0_36 = arith.constant 0 : index
    %33 = vector.load %arg6[%c0_33, %c0_34, %c0_35, %c0_36] : memref<2x2x17x128xbf16, #tpu.memory_space<vmem>>, vector<1x2x16x128xbf16>
    %34 = vector.shape_cast %33 : vector<1x2x16x128xbf16> to vector<2x16x128xbf16>
    %35 = vector.shape_cast %34 : vector<2x16x128xbf16> to vector<32x128xbf16>
    %c1_37 = arith.constant 1 : index
    %c0_38 = arith.constant 0 : index
    %c0_39 = arith.constant 0 : index
    %c0_40 = arith.constant 0 : index
    %36 = vector.load %arg6[%c1_37, %c0_38, %c0_39, %c0_40] : memref<2x2x17x128xbf16, #tpu.memory_space<vmem>>, vector<1x2x16x128xbf16>
    %37 = vector.shape_cast %36 : vector<1x2x16x128xbf16> to vector<2x16x128xbf16>
    %38 = vector.shape_cast %37 : vector<2x16x128xbf16> to vector<32x128xbf16>
    %39 = tpu.concatenate %35, %38 in 1 : vector<32x128xbf16>, vector<32x128xbf16> -> vector<32x256xbf16>
    %c0_41 = arith.constant 0 : index
    %c0_42 = arith.constant 0 : index
    %40 = vector.load %arg2[%c0_41, %c0_42] : memref<384x128xbf16, #tpu.memory_space<vmem>>, vector<256x128xbf16>
    %cst_43 = arith.constant dense<0.000000e+00> : vector<32x128xf32>
    %41 = tpu.matmul %39, %40, %cst_43 {dimension_numbers = #tpu.dot_dimension_numbers<[1], [0], [0], [1], [0, 0, 1, 1], [], []>} : vector<32x256xbf16>, vector<256x128xbf16>, vector<32x128xf32> -> vector<32x128xf32>
    %42 = arith.addf %32, %41 : vector<32x128xf32>
    %c0_44 = arith.constant 0 : index
    %c0_45 = arith.constant 0 : index
    %c1_46 = arith.constant 1 : index
    %c0_47 = arith.constant 0 : index
    %43 = vector.load %arg6[%c0_44, %c0_45, %c1_46, %c0_47] : memref<2x2x17x128xbf16, #tpu.memory_space<vmem>>, vector<1x2x16x128xbf16>
    %44 = vector.shape_cast %43 : vector<1x2x16x128xbf16> to vector<2x16x128xbf16>
    %45 = vector.shape_cast %44 : vector<2x16x128xbf16> to vector<32x128xbf16>
    %c256 = arith.constant 256 : index
    %c0_48 = arith.constant 0 : index
    %46 = vector.load %arg2[%c256, %c0_48] : memref<384x128xbf16, #tpu.memory_space<vmem>>, vector<128x128xbf16>
    %cst_49 = arith.constant dense<0.000000e+00> : vector<32x128xf32>
    %47 = tpu.matmul %45, %46, %cst_49 {dimension_numbers = #tpu.dot_dimension_numbers<[1], [0], [0], [1], [0, 0, 1, 1], [], []>} : vector<32x128xbf16>, vector<128x128xbf16>, vector<32x128xf32> -> vector<32x128xf32>
    %48 = arith.addf %42, %47 : vector<32x128xf32>
    %c0_50 = arith.constant 0 : index
    %c0_51 = arith.constant 0 : index
    %49 = vector.load %arg3[%c0_50, %c0_51] : memref<1x128xf32, #tpu.memory_space<vmem>>, vector<1x128xf32>
    %50 = vector.broadcast %49 : vector<1x128xf32> to vector<32x128xf32>
    %51 = arith.addf %48, %50 : vector<32x128xf32>
    %cst_52 = arith.constant 0.000000e+00 : f32
    %52 = vector.broadcast %cst_52 : f32 to vector<32x128xf32>
    %53 = arith.maximumf %51, %52 : vector<32x128xf32>
    %54 = vector.shape_cast %53 : vector<32x128xf32> to vector<2x16x128xf32>
    %55 = arith.truncf %54 : vector<2x16x128xf32> to vector<2x16x128xbf16>
    %c0_53 = arith.constant 0 : index
    %c0_54 = arith.constant 0 : index
    %c0_55 = arith.constant 0 : index
    %56 = vector.load %arg4[%c0_53, %c0_54, %c0_55] : memref<2x16x128xbf16, #tpu.memory_space<vmem>>, vector<2x16x128xbf16>
    tpu.vector_store %arg4[%c0_53, %c0_54, %c0_55], %55 {strides = array<i32>} : memref<2x16x128xbf16, #tpu.memory_space<vmem>>, vector<2x16x128xbf16>,
    return
  }
  func.func @transform_0(%arg0: i32) -> (i32, i32, i32) {
    %c0_i32 = arith.constant 0 : i32
    %c0_i32_0 = arith.constant 0 : i32
    %c0_i32_1 = arith.constant 0 : i32
    %c0_i32_2 = arith.constant 0 : i32
    return %c0_i32, %c0_i32_0, %c0_i32_1 : i32, i32, i32
  }
  func.func @transform_1(%arg0: i32) -> (i32, i32) {
    %c0_i32 = arith.constant 0 : i32
    %c0_i32_0 = arith.constant 0 : i32
    %c0_i32_1 = arith.constant 0 : i32
    return %c0_i32, %c0_i32_0 : i32, i32
  }
  func.func @transform_2(%arg0: i32) -> (i32, i32) {
    %c0_i32 = arith.constant 0 : i32
    %c0_i32_0 = arith.constant 0 : i32
    %c0_i32_1 = arith.constant 0 : i32
    return %c0_i32, %c0_i32_0 : i32, i32
  }
  func.func @transform_3(%arg0: i32) -> (i32, i32, i32) {
    %c0_i32 = arith.constant 0 : i32
    %c0_i32_0 = arith.constant 0 : i32
    %c0_i32_1 = arith.constant 0 : i32
    %c0_i32_2 = arith.constant 0 : i32
    return %c0_i32, %c0_i32_0, %c0_i32_1 : i32, i32, i32
  }
}

module attributes {stable_mosaic.version = 11 : i64} {
  func.func @_unit_kernel(%arg0: i32, %arg1: memref<2x16x128xbf16, #tpu.memory_space<vmem>>, %arg2: memref<640x128xbf16, #tpu.memory_space<vmem>>, %arg3: memref<1x128xf32, #tpu.memory_space<vmem>>, %arg4: memref<640x128xbf16, #tpu.memory_space<vmem>>, %arg5: memref<1x128xf32, #tpu.memory_space<vmem>>, %arg6: memref<128x128xbf16, #tpu.memory_space<vmem>>, %arg7: memref<1x128xf32, #tpu.memory_space<vmem>>, %arg8: memref<2x16x128xbf16, #tpu.memory_space<vmem>>, %arg9: memref<2x20x128xbf16, #tpu.memory_space<vmem>>, %arg10: memref<2x20x128xbf16, #tpu.memory_space<vmem>>) attributes {dimension_semantics = [#tpu.dimension_semantics<arbitrary>], iteration_bounds = array<i64: 1>, scalar_prefetch = 0 : i64, scratch_operands = 2 : i64, tpu.core_type = #tpu.core_type<tc>, window_params = [{pipeline_mode = #tpu.pipeline_mode<synchronous>, transform_indices = @transform_0, window_bounds = array<i64: 2, 16, 128>}, {pipeline_mode = #tpu.pipeline_mode<synchronous>, transform_indices = @transform_1, window_bounds = array<i64: 640, 128>}, {pipeline_mode = #tpu.pipeline_mode<synchronous>, transform_indices = @transform_2, window_bounds = array<i64: 1, 128>}, {pipeline_mode = #tpu.pipeline_mode<synchronous>, transform_indices = @transform_3, window_bounds = array<i64: 640, 128>}, {pipeline_mode = #tpu.pipeline_mode<synchronous>, transform_indices = @transform_4, window_bounds = array<i64: 1, 128>}, {pipeline_mode = #tpu.pipeline_mode<synchronous>, transform_indices = @transform_5, window_bounds = array<i64: 128, 128>}, {pipeline_mode = #tpu.pipeline_mode<synchronous>, transform_indices = @transform_6, window_bounds = array<i64: 1, 128>}, {pipeline_mode = #tpu.pipeline_mode<synchronous>, transform_indices = @transform_7, window_bounds = array<i64: 2, 16, 128>}]} {
    %cst = arith.constant 0.000000e+00 : bf16
    %0 = vector.broadcast %cst : bf16 to vector<2x2x128xbf16>
    %c0 = arith.constant 0 : index
    %c0_0 = arith.constant 0 : index
    %c0_1 = arith.constant 0 : index
    %1 = vector.load %arg9[%c0, %c0_0, %c0_1] : memref<2x20x128xbf16, #tpu.memory_space<vmem>>, vector<2x2x128xbf16>
    tpu.vector_store %arg9[%c0, %c0_0, %c0_1], %0 {strides = array<i32>} : memref<2x20x128xbf16, #tpu.memory_space<vmem>>, vector<2x2x128xbf16>,
    %cst_2 = arith.constant 0.000000e+00 : bf16
    %2 = vector.broadcast %cst_2 : bf16 to vector<2x2x128xbf16>
    %c0_3 = arith.constant 0 : index
    %c18 = arith.constant 18 : index
    %c0_4 = arith.constant 0 : index
    %3 = vector.load %arg9[%c0_3, %c18, %c0_4] : memref<2x20x128xbf16, #tpu.memory_space<vmem>>, vector<2x2x128xbf16>
    tpu.vector_store %arg9[%c0_3, %c18, %c0_4], %2 {strides = array<i32>} : memref<2x20x128xbf16, #tpu.memory_space<vmem>>, vector<2x2x128xbf16>,
    %cst_5 = arith.constant 0.000000e+00 : bf16
    %4 = vector.broadcast %cst_5 : bf16 to vector<2x2x128xbf16>
    %c0_6 = arith.constant 0 : index
    %c0_7 = arith.constant 0 : index
    %c0_8 = arith.constant 0 : index
    %5 = vector.load %arg10[%c0_6, %c0_7, %c0_8] : memref<2x20x128xbf16, #tpu.memory_space<vmem>>, vector<2x2x128xbf16>
    tpu.vector_store %arg10[%c0_6, %c0_7, %c0_8], %4 {strides = array<i32>} : memref<2x20x128xbf16, #tpu.memory_space<vmem>>, vector<2x2x128xbf16>,
    %cst_9 = arith.constant 0.000000e+00 : bf16
    %6 = vector.broadcast %cst_9 : bf16 to vector<2x2x128xbf16>
    %c0_10 = arith.constant 0 : index
    %c18_11 = arith.constant 18 : index
    %c0_12 = arith.constant 0 : index
    %7 = vector.load %arg10[%c0_10, %c18_11, %c0_12] : memref<2x20x128xbf16, #tpu.memory_space<vmem>>, vector<2x2x128xbf16>
    tpu.vector_store %arg10[%c0_10, %c18_11, %c0_12], %6 {strides = array<i32>} : memref<2x20x128xbf16, #tpu.memory_space<vmem>>, vector<2x2x128xbf16>,
    %c0_13 = arith.constant 0 : index
    %c0_14 = arith.constant 0 : index
    %c0_15 = arith.constant 0 : index
    %8 = vector.load %arg1[%c0_13, %c0_14, %c0_15] : memref<2x16x128xbf16, #tpu.memory_space<vmem>>, vector<2x16x128xbf16>
    %c0_16 = arith.constant 0 : index
    %c2 = arith.constant 2 : index
    %c0_17 = arith.constant 0 : index
    %9 = vector.load %arg9[%c0_16, %c2, %c0_17] : memref<2x20x128xbf16, #tpu.memory_space<vmem>>, vector<2x16x128xbf16>
    tpu.vector_store %arg9[%c0_16, %c2, %c0_17], %8 {strides = array<i32>} : memref<2x20x128xbf16, #tpu.memory_space<vmem>>, vector<2x16x128xbf16>,
    %cst_18 = arith.constant 0.000000e+00 : f32
    %10 = vector.broadcast %cst_18 : f32 to vector<32x128xf32>
    %c0_19 = arith.constant 0 : index
    %c0_20 = arith.constant 0 : index
    %c0_21 = arith.constant 0 : index
    %11 = vector.load %arg9[%c0_19, %c0_20, %c0_21] : memref<2x20x128xbf16, #tpu.memory_space<vmem>>, vector<2x16x128xbf16>
    %12 = vector.shape_cast %11 : vector<2x16x128xbf16> to vector<32x128xbf16>
    %c0_22 = arith.constant 0 : index
    %c1 = arith.constant 1 : index
    %c0_23 = arith.constant 0 : index
    %13 = vector.load %arg9[%c0_22, %c1, %c0_23] : memref<2x20x128xbf16, #tpu.memory_space<vmem>>, vector<2x16x128xbf16>
    %14 = vector.shape_cast %13 : vector<2x16x128xbf16> to vector<32x128xbf16>
    %15 = tpu.concatenate %12, %14 in 1 : vector<32x128xbf16>, vector<32x128xbf16> -> vector<32x256xbf16>
    %c0_24 = arith.constant 0 : index
    %c0_25 = arith.constant 0 : index
    %16 = vector.load %arg2[%c0_24, %c0_25] : memref<640x128xbf16, #tpu.memory_space<vmem>>, vector<256x128xbf16>
    %cst_26 = arith.constant dense<0.000000e+00> : vector<32x128xf32>
    %17 = tpu.matmul %15, %16, %cst_26 {dimension_numbers = #tpu.dot_dimension_numbers<[1], [0], [0], [1], [0, 0, 1, 1], [], []>} : vector<32x256xbf16>, vector<256x128xbf16>, vector<32x128xf32> -> vector<32x128xf32>
    %18 = arith.addf %10, %17 : vector<32x128xf32>
    %c0_27 = arith.constant 0 : index
    %c2_28 = arith.constant 2 : index
    %c0_29 = arith.constant 0 : index
    %19 = vector.load %arg9[%c0_27, %c2_28, %c0_29] : memref<2x20x128xbf16, #tpu.memory_space<vmem>>, vector<2x16x128xbf16>
    %20 = vector.shape_cast %19 : vector<2x16x128xbf16> to vector<32x128xbf16>
    %c0_30 = arith.constant 0 : index
    %c3 = arith.constant 3 : index
    %c0_31 = arith.constant 0 : index
    %21 = vector.load %arg9[%c0_30, %c3, %c0_31] : memref<2x20x128xbf16, #tpu.memory_space<vmem>>, vector<2x16x128xbf16>
    %22 = vector.shape_cast %21 : vector<2x16x128xbf16> to vector<32x128xbf16>
    %23 = tpu.concatenate %20, %22 in 1 : vector<32x128xbf16>, vector<32x128xbf16> -> vector<32x256xbf16>
    %c256 = arith.constant 256 : index
    %c0_32 = arith.constant 0 : index
    %24 = vector.load %arg2[%c256, %c0_32] : memref<640x128xbf16, #tpu.memory_space<vmem>>, vector<256x128xbf16>
    %cst_33 = arith.constant dense<0.000000e+00> : vector<32x128xf32>
    %25 = tpu.matmul %23, %24, %cst_33 {dimension_numbers = #tpu.dot_dimension_numbers<[1], [0], [0], [1], [0, 0, 1, 1], [], []>} : vector<32x256xbf16>, vector<256x128xbf16>, vector<32x128xf32> -> vector<32x128xf32>
    %26 = arith.addf %18, %25 : vector<32x128xf32>
    %c0_34 = arith.constant 0 : index
    %c4 = arith.constant 4 : index
    %c0_35 = arith.constant 0 : index
    %27 = vector.load %arg9[%c0_34, %c4, %c0_35] : memref<2x20x128xbf16, #tpu.memory_space<vmem>>, vector<2x16x128xbf16>
    %28 = vector.shape_cast %27 : vector<2x16x128xbf16> to vector<32x128xbf16>
    %c512 = arith.constant 512 : index
    %c0_36 = arith.constant 0 : index
    %29 = vector.load %arg2[%c512, %c0_36] : memref<640x128xbf16, #tpu.memory_space<vmem>>, vector<128x128xbf16>
    %cst_37 = arith.constant dense<0.000000e+00> : vector<32x128xf32>
    %30 = tpu.matmul %28, %29, %cst_37 {dimension_numbers = #tpu.dot_dimension_numbers<[1], [0], [0], [1], [0, 0, 1, 1], [], []>} : vector<32x128xbf16>, vector<128x128xbf16>, vector<32x128xf32> -> vector<32x128xf32>
    %31 = arith.addf %26, %30 : vector<32x128xf32>
    %c0_38 = arith.constant 0 : index
    %c0_39 = arith.constant 0 : index
    %32 = vector.load %arg3[%c0_38, %c0_39] : memref<1x128xf32, #tpu.memory_space<vmem>>, vector<1x128xf32>
    %33 = vector.broadcast %32 : vector<1x128xf32> to vector<32x128xf32>
    %34 = arith.addf %31, %33 : vector<32x128xf32>
    %cst_40 = arith.constant 0.000000e+00 : f32
    %35 = vector.broadcast %cst_40 : f32 to vector<32x128xf32>
    %36 = arith.maximumf %34, %35 : vector<32x128xf32>
    %37 = vector.shape_cast %36 : vector<32x128xf32> to vector<2x16x128xf32>
    %38 = arith.truncf %37 : vector<2x16x128xf32> to vector<2x16x128xbf16>
    %c0_41 = arith.constant 0 : index
    %c2_42 = arith.constant 2 : index
    %c0_43 = arith.constant 0 : index
    %39 = vector.load %arg10[%c0_41, %c2_42, %c0_43] : memref<2x20x128xbf16, #tpu.memory_space<vmem>>, vector<2x16x128xbf16>
    tpu.vector_store %arg10[%c0_41, %c2_42, %c0_43], %38 {strides = array<i32>} : memref<2x20x128xbf16, #tpu.memory_space<vmem>>, vector<2x16x128xbf16>,
    %cst_44 = arith.constant 0.000000e+00 : f32
    %40 = vector.broadcast %cst_44 : f32 to vector<32x128xf32>
    %c0_45 = arith.constant 0 : index
    %c0_46 = arith.constant 0 : index
    %c0_47 = arith.constant 0 : index
    %41 = vector.load %arg10[%c0_45, %c0_46, %c0_47] : memref<2x20x128xbf16, #tpu.memory_space<vmem>>, vector<2x16x128xbf16>
    %42 = vector.shape_cast %41 : vector<2x16x128xbf16> to vector<32x128xbf16>
    %c0_48 = arith.constant 0 : index
    %c1_49 = arith.constant 1 : index
    %c0_50 = arith.constant 0 : index
    %43 = vector.load %arg10[%c0_48, %c1_49, %c0_50] : memref<2x20x128xbf16, #tpu.memory_space<vmem>>, vector<2x16x128xbf16>
    %44 = vector.shape_cast %43 : vector<2x16x128xbf16> to vector<32x128xbf16>
    %45 = tpu.concatenate %42, %44 in 1 : vector<32x128xbf16>, vector<32x128xbf16> -> vector<32x256xbf16>
    %c0_51 = arith.constant 0 : index
    %c0_52 = arith.constant 0 : index
    %46 = vector.load %arg4[%c0_51, %c0_52] : memref<640x128xbf16, #tpu.memory_space<vmem>>, vector<256x128xbf16>
    %cst_53 = arith.constant dense<0.000000e+00> : vector<32x128xf32>
    %47 = tpu.matmul %45, %46, %cst_53 {dimension_numbers = #tpu.dot_dimension_numbers<[1], [0], [0], [1], [0, 0, 1, 1], [], []>} : vector<32x256xbf16>, vector<256x128xbf16>, vector<32x128xf32> -> vector<32x128xf32>
    %48 = arith.addf %40, %47 : vector<32x128xf32>
    %c0_54 = arith.constant 0 : index
    %c2_55 = arith.constant 2 : index
    %c0_56 = arith.constant 0 : index
    %49 = vector.load %arg10[%c0_54, %c2_55, %c0_56] : memref<2x20x128xbf16, #tpu.memory_space<vmem>>, vector<2x16x128xbf16>
    %50 = vector.shape_cast %49 : vector<2x16x128xbf16> to vector<32x128xbf16>
    %c0_57 = arith.constant 0 : index
    %c3_58 = arith.constant 3 : index
    %c0_59 = arith.constant 0 : index
    %51 = vector.load %arg10[%c0_57, %c3_58, %c0_59] : memref<2x20x128xbf16, #tpu.memory_space<vmem>>, vector<2x16x128xbf16>
    %52 = vector.shape_cast %51 : vector<2x16x128xbf16> to vector<32x128xbf16>
    %53 = tpu.concatenate %50, %52 in 1 : vector<32x128xbf16>, vector<32x128xbf16> -> vector<32x256xbf16>
    %c256_60 = arith.constant 256 : index
    %c0_61 = arith.constant 0 : index
    %54 = vector.load %arg4[%c256_60, %c0_61] : memref<640x128xbf16, #tpu.memory_space<vmem>>, vector<256x128xbf16>
    %cst_62 = arith.constant dense<0.000000e+00> : vector<32x128xf32>
    %55 = tpu.matmul %53, %54, %cst_62 {dimension_numbers = #tpu.dot_dimension_numbers<[1], [0], [0], [1], [0, 0, 1, 1], [], []>} : vector<32x256xbf16>, vector<256x128xbf16>, vector<32x128xf32> -> vector<32x128xf32>
    %56 = arith.addf %48, %55 : vector<32x128xf32>
    %c0_63 = arith.constant 0 : index
    %c4_64 = arith.constant 4 : index
    %c0_65 = arith.constant 0 : index
    %57 = vector.load %arg10[%c0_63, %c4_64, %c0_65] : memref<2x20x128xbf16, #tpu.memory_space<vmem>>, vector<2x16x128xbf16>
    %58 = vector.shape_cast %57 : vector<2x16x128xbf16> to vector<32x128xbf16>
    %c512_66 = arith.constant 512 : index
    %c0_67 = arith.constant 0 : index
    %59 = vector.load %arg4[%c512_66, %c0_67] : memref<640x128xbf16, #tpu.memory_space<vmem>>, vector<128x128xbf16>
    %cst_68 = arith.constant dense<0.000000e+00> : vector<32x128xf32>
    %60 = tpu.matmul %58, %59, %cst_68 {dimension_numbers = #tpu.dot_dimension_numbers<[1], [0], [0], [1], [0, 0, 1, 1], [], []>} : vector<32x128xbf16>, vector<128x128xbf16>, vector<32x128xf32> -> vector<32x128xf32>
    %61 = arith.addf %56, %60 : vector<32x128xf32>
    %c0_69 = arith.constant 0 : index
    %c0_70 = arith.constant 0 : index
    %62 = vector.load %arg5[%c0_69, %c0_70] : memref<1x128xf32, #tpu.memory_space<vmem>>, vector<1x128xf32>
    %63 = vector.broadcast %62 : vector<1x128xf32> to vector<32x128xf32>
    %64 = arith.addf %61, %63 : vector<32x128xf32>
    %c0_71 = arith.constant 0 : index
    %c0_72 = arith.constant 0 : index
    %c0_73 = arith.constant 0 : index
    %65 = vector.load %arg1[%c0_71, %c0_72, %c0_73] : memref<2x16x128xbf16, #tpu.memory_space<vmem>>, vector<2x16x128xbf16>
    %66 = vector.shape_cast %65 : vector<2x16x128xbf16> to vector<32x128xbf16>
    %c0_74 = arith.constant 0 : index
    %c0_75 = arith.constant 0 : index
    %67 = vector.load %arg6[%c0_74, %c0_75] : memref<128x128xbf16, #tpu.memory_space<vmem>>, vector<128x128xbf16>
    %cst_76 = arith.constant dense<0.000000e+00> : vector<32x128xf32>
    %68 = tpu.matmul %66, %67, %cst_76 {dimension_numbers = #tpu.dot_dimension_numbers<[1], [0], [0], [1], [0, 0, 1, 1], [], []>} : vector<32x128xbf16>, vector<128x128xbf16>, vector<32x128xf32> -> vector<32x128xf32>
    %c0_77 = arith.constant 0 : index
    %c0_78 = arith.constant 0 : index
    %69 = vector.load %arg7[%c0_77, %c0_78] : memref<1x128xf32, #tpu.memory_space<vmem>>, vector<1x128xf32>
    %70 = vector.broadcast %69 : vector<1x128xf32> to vector<32x128xf32>
    %71 = arith.addf %68, %70 : vector<32x128xf32>
    %72 = arith.addf %64, %71 : vector<32x128xf32>
    %cst_79 = arith.constant 0.000000e+00 : f32
    %73 = vector.broadcast %cst_79 : f32 to vector<32x128xf32>
    %74 = arith.maximumf %72, %73 : vector<32x128xf32>
    %75 = vector.shape_cast %74 : vector<32x128xf32> to vector<2x16x128xf32>
    %76 = arith.truncf %75 : vector<2x16x128xf32> to vector<2x16x128xbf16>
    %c0_80 = arith.constant 0 : index
    %c0_81 = arith.constant 0 : index
    %c0_82 = arith.constant 0 : index
    %77 = vector.load %arg8[%c0_80, %c0_81, %c0_82] : memref<2x16x128xbf16, #tpu.memory_space<vmem>>, vector<2x16x128xbf16>
    tpu.vector_store %arg8[%c0_80, %c0_81, %c0_82], %76 {strides = array<i32>} : memref<2x16x128xbf16, #tpu.memory_space<vmem>>, vector<2x16x128xbf16>,
    return
  }
  func.func @transform_0(%arg0: i32) -> (i32, i32, i32) {
    %c0_i32 = arith.constant 0 : i32
    %c0_i32_0 = arith.constant 0 : i32
    %c0_i32_1 = arith.constant 0 : i32
    %c0_i32_2 = arith.constant 0 : i32
    return %c0_i32, %c0_i32_0, %c0_i32_1 : i32, i32, i32
  }
  func.func @transform_1(%arg0: i32) -> (i32, i32) {
    %c0_i32 = arith.constant 0 : i32
    %c0_i32_0 = arith.constant 0 : i32
    %c0_i32_1 = arith.constant 0 : i32
    return %c0_i32, %c0_i32_0 : i32, i32
  }
  func.func @transform_2(%arg0: i32) -> (i32, i32) {
    %c0_i32 = arith.constant 0 : i32
    %c0_i32_0 = arith.constant 0 : i32
    %c0_i32_1 = arith.constant 0 : i32
    return %c0_i32, %c0_i32_0 : i32, i32
  }
  func.func @transform_3(%arg0: i32) -> (i32, i32) {
    %c0_i32 = arith.constant 0 : i32
    %c0_i32_0 = arith.constant 0 : i32
    %c0_i32_1 = arith.constant 0 : i32
    return %c0_i32, %c0_i32_0 : i32, i32
  }
  func.func @transform_4(%arg0: i32) -> (i32, i32) {
    %c0_i32 = arith.constant 0 : i32
    %c0_i32_0 = arith.constant 0 : i32
    %c0_i32_1 = arith.constant 0 : i32
    return %c0_i32, %c0_i32_0 : i32, i32
  }
  func.func @transform_5(%arg0: i32) -> (i32, i32) {
    %c0_i32 = arith.constant 0 : i32
    %c0_i32_0 = arith.constant 0 : i32
    %c0_i32_1 = arith.constant 0 : i32
    return %c0_i32, %c0_i32_0 : i32, i32
  }
  func.func @transform_6(%arg0: i32) -> (i32, i32) {
    %c0_i32 = arith.constant 0 : i32
    %c0_i32_0 = arith.constant 0 : i32
    %c0_i32_1 = arith.constant 0 : i32
    return %c0_i32, %c0_i32_0 : i32, i32
  }
  func.func @transform_7(%arg0: i32) -> (i32, i32, i32) {
    %c0_i32 = arith.constant 0 : i32
    %c0_i32_0 = arith.constant 0 : i32
    %c0_i32_1 = arith.constant 0 : i32
    %c0_i32_2 = arith.constant 0 : i32
    return %c0_i32, %c0_i32_0, %c0_i32_1 : i32, i32, i32
  }
}

</mosaic_0001>

<bundles_post_ra>
// kernel: _lambda_.7
= control target key start
LH: loop header
LB: loop body
LE: loop exit
PB: predicated region body
PF: predicated region fallthrough
CT: control target
= control target key end

     0   :  { %s558_s0 = inlined_call_operand.vmem [shape: bf16[2,16,128], index: 0, kind: input, shape index: {}]   ;;  %s559_s1 = inlined_call_operand.vmem [shape: bf16[128,128], index: 1, kind: input, shape index: {}]   ;;  %s560_s2 = inlined_call_operand.vmem [shape: f32[1,128], index: 2, kind: input, shape index: {}]   ;;  %s561_s3 = inlined_call_operand.vmem [shape: bf16[128,128], index: 3, kind: input, shape index: {}]   ;;  %s562_s4 = inlined_call_operand.vmem [shape: f32[1,128], index: 4, kind: input, shape index: {}]   ;;  %s563_s5 = inlined_call_operand.hbm [shape: bf16[2,16,128], index: 5, kind: output, shape index: {}]  }
   0x1   :  { %v422_v0 = vld [vmem:[%s559_s1 + $0x38] sm:$0xff]   ;;  %v423_v1 = vld [vmem:[%s559_s1 + $0x30] sm:$0xff]   ;;  %v424_v2 = vld [vmem:[%s559_s1 + $0x28] sm:$0xff]  }
   0x2   :  { %379 = vmatprep.subr.bf16.mxu0 %v422_v0  ;;  %v425_v3 = vld [vmem:[%s559_s1 + $0x20] sm:$0xff]   ;;  %v432_v5 = vld [vmem:[%s561_s3 + $0x38] sm:$0xff]   ;;  %v433_v6 = vld [vmem:[%s561_s3 + $0x30] sm:$0xff]  }
   0x3   :  { %380 = vmatpush3.bf16.msra.mxu0 %v422_v0  ;;  %v430_v4 = vld [vmem:[%s558_s0] sm:$0xff]   ;;  %v426_v7 = vld [vmem:[%s559_s1 + $0x18] sm:$0xff]   ;;  %399 = vmatprep.subr.bf16.mxu1 %v432_v5  ;;  %v427_v8 = vld [vmem:[%s559_s1 + $0x10] sm:$0xff]  }
   0x4   :  { %381 = vmatprep.subr.bf16.mxu0 %v423_v1  ;;  %395 = vmatprep.mubr.bf16.mxu0 %v430_v4  ;;  %v434_v9 = vld [vmem:[%s561_s3 + $0x28] sm:$0xff]  }
   0x5   :  { %400 = vmatpush3.bf16.msra.mxu1 %v432_v5 }
   0x6   :  { %401 = vmatprep.subr.bf16.mxu1 %v433_v6 }
   0x7   :  { %382 = vmatpush3.bf16.msra.mxu0 %v423_v1 }
   0x8   :  { %383 = vmatprep.subr.bf16.mxu0 %v424_v2 }
   0x9   :  { %402 = vmatpush3.bf16.msra.mxu1 %v433_v6 }
   0xb   :  { %384 = vmatpush3.bf16.msra.mxu0 %v424_v2 }
   0xc   :  { %385 = vmatprep.subr.bf16.mxu0 %v425_v3 }
   0xf   :  { %386 = vmatpush3.bf16.msra.mxu0 %v425_v3 }
  0x10   :  { %387 = vmatprep.subr.bf16.mxu0 %v426_v7 }
  0x11   :  { %10 = vsyncpa [#allocation3], 0  ;;  %403 = vmatprep.subr.bf16.mxu1 %v434_v9  ;;  %v435_v10 = vld [vmem:[%s561_s3 + $0x20] sm:$0xff]   ;;  %v428_v11 = vld [vmem:[%s559_s1 + $0x8] sm:$0xff]  }
  0x12   :  { %404 = vmatpush3.bf16.msra.mxu1 %v434_v9  ;;  %v436_v12 = vld [vmem:[%s561_s3 + $0x18] sm:$0xff]   ;;  %v429_v13 = vld [vmem:[%s559_s1] sm:$0xff]   ;;  %v431_v14 = vld [vmem:[%s558_s0 + $0x8] sm:$0xff]  }
  0x13   :  { %388 = vmatpush3.bf16.msra.mxu0 %v426_v7  ;;  %405 = vmatprep.subr.bf16.mxu1 %v435_v10  ;;  %v437_v15 = vld [vmem:[%s561_s3 + $0x10] sm:$0xff]   ;;  %v438_v16 = vld [vmem:[%s561_s3 + $0x8] sm:$0xff]   ;;  %v439_v17 = vld [vmem:[%s561_s3] sm:$0xff]  }
  0x14   :  { %389 = vmatprep.subr.bf16.mxu0 %v427_v8  ;;  %v320_v20 = vld [vmem:[%s560_s2] ss:$0 sm:$0xff]  ;;  %s462_s2 = smov [#allocation2]  }
  0x15   :  { %v331_v34 = vld [vmem:[%s562_s4] ss:$0 sm:$0xff]  ;;  %s309_s30 = sshll.u32 %s462_s2, 4  ;;  %s310_s30 = int_to_ptr.vmem [resolvable:$true] %s309_s30 }
  0x16   :  { %406 = vmatpush3.bf16.msra.mxu1 %v435_v10  ;;  %s440_s6 = scalar_lea.vmem %s310_s30, 256  ;;  %p445_p1 = scmp.lt.s32.totalorder %s310_s30, %s310_s30 }
  0x17   :  { %390 = vmatpush3.bf16.msra.mxu0 %v427_v8  ;;  %407 = vmatprep.subr.bf16.mxu1 %v436_v12  ;;  %p441_p0 = scmp.ne.s32.totalorder %s310_s30, %s440_s6  ;;  %p446_p2 = scmp.lt.s32.totalorder %s440_s6, %s440_s6 }
  0x18   :  { %391 = vmatprep.subr.bf16.mxu0 %v428_v11 }
  0x19   :  { %p447_p3 = por %p446_p2, %p445_p1 }
  0x1a   :  { %408 = vmatpush3.bf16.msra.mxu1 %v436_v12 }
  0x1b   :  { %392 = vmatpush3.bf16.msra.mxu0 %v428_v11  ;;  %409 = vmatprep.subr.bf16.mxu1 %v437_v15  ;;  %p448_p4 = pnand %p447_p3, %p441_p0 }
  0x1c   :  { %393 = vmatprep.subr.bf16.mxu0 %v429_v13 }
  0x1e   :  { %410 = vmatpush3.bf16.msra.mxu1 %v437_v15 }
  0x1f   :  { %394 = vmatpush3.bf16.msra.mxu0 %v429_v13  ;;  %411 = vmatprep.subr.bf16.mxu1 %v438_v16 }
  0x22   :  { %396 = vmatmul.mubr.bf16.vlgmr.msra.gmra.mxu0 %v431_v14  ;;  %412 = vmatpush3.bf16.msra.mxu1 %v438_v16 }
  0x23   :  { %413 = vmatprep.subr.bf16.mxu1 %v439_v17 }
  0x26   :  { %414 = vmatpush3.bf16.msra.mxu1 %v439_v17 }
  0xe2   :  { %v397_v18 = vpop.f32.mrf.mxu0 }
  0xe3   :  { %v152_v24 = vadd.f32 %v397_v18, %v320_v20 }
  0xe4   :  { %v143_v19 = vpop.f32.mrf.mxu0 }
  0xe5   :  { %v144_v22 = vadd.f32 %v320_v20, %v143_v19  ;;  %v160_v30 = vmax.f32 %v152_v24, 0.0 }
  0xe6   :  { %v398_v21 = vpop.f32.mrf.mxu0 }
  0xe7   :  { %v155_v23 = vadd.f32 %v398_v21, %v320_v20  ;;  %v158_v28 = vmax.f32 %v144_v22, 0.0 }
  0xe8   :  { %v146_v25 = vpop.f32.mrf.mxu0 }
  0xe9   :  { %v147_v26 = vadd.f32 %v320_v20, %v146_v25  ;;  %v161_v27 = vmax.f32 %v155_v23, 0.0 }
  0xeb   :  { %v159_v29 = vmax.f32 %v147_v26, 0.0  ;;  %v163_v32 = vpack.c.bf16 %v161_v27, %v160_v30 }
  0xed   :  { %v162_v31 = vpack.c.bf16 %v159_v29, %v158_v28 }
  0xef   :  { %415 = vmatprep.mubr.bf16.mxu1 %v162_v31 }
  0xf0   :  { %416 = vmatmul.mubr.bf16.vlgmr.msra.gmra.mxu1 %v163_v32 }
 0x1b0   :  { %v417_v33 = vpop.f32.mrf.mxu1 }
 0x1b1   :  { %v278_v37 = vadd.f32 %v417_v33, %v331_v34 }
 0x1b2   :  { %v269_v35 = vpop.f32.mrf.mxu1 }
 0x1b3   :  { %v270_v40 = vadd.f32 %v331_v34, %v269_v35 }
 0x1b4   :  { %v418_v36 = vpop.f32.mrf.mxu1 }
 0x1b5   :  { %v281_v38 = vadd.f32 %v418_v36, %v331_v34 }
 0x1b6   :  { %v272_v39 = vpop.f32.mrf.mxu1 }
 0x1b7   :  { %v356_v41 = vpack.c.bf16 %v281_v38, %v278_v37  ;;  %v273_v42 = vadd.f32 %v331_v34, %v272_v39 }
 0x1b9   :  { %358 = vst [vmem:[#allocation2 + $0x8] sm:$0xff] %v356_v41   ;;  %v351_v43 = vpack.c.bf16 %v273_v42, %v270_v40 }
 0x1bb   :  { %352 = vst [vmem:[#allocation2] sm:$0xff] %v351_v43  }
 0x1bc   :  { %451 = shalt.err (!%p448_p4)
}
 0x1bd   :  { %s463_s4 = smov 64   ;;  %s464_s7 = smov 4  }
 0x1be   :  { %315 = dma.vmem_to_hbm [thread:$0]  %s310_s30, 256, %s563_s5, [#allocation3], %s463_s4, %s463_s4, %s464_s7  }
 0x1bf   :  { %460 = dma.done.wait [#allocation3], 256  }
 0x1c0   :  { %461 = vsyncadd [#allocation3], 4294967040 }
 0x1c1   :  { %319 = vsyncpa [#allocation3], 1 }

// kernel: _lambda_.4
= control target key start
LH: loop header
LB: loop body
LE: loop exit
PB: predicated region body
PF: predicated region fallthrough
CT: control target
= control target key end

     0   :  { %8 = vsyncpa [#allocation5], 0  ;;  %s2091_s0 = inlined_call_operand.hbm [shape: bf16[2,32,128], index: 0, kind: input, shape index: {}]   ;;  %s2092_s1 = inlined_call_operand.hbm [shape: bf16[384,128], index: 1, kind: input, shape index: {}]   ;;  %s2093_s2 = inlined_call_operand.vmem [shape: f32[1,128], index: 2, kind: input, shape index: {}]   ;;  %s2094_s3 = inlined_call_operand.vmem [shape: bf16[2,16,128], index: 3, kind: output, shape index: {}]  }
   0x1   :  { %9 = vsyncpa [#allocation7], 0  ;;  %s1711_s12 = smov [#allocation4]  }
   0x2   :  { %s15_s13 = sshll.u32 %s1711_s12, 4  ;;  %s16_s13 = int_to_ptr.vmem [resolvable:$true] %s15_s13 }
   0x3   :  { %s1675_s14 = scalar_lea.vmem %s16_s13, 512  ;;  %p1680_p1 = scmp.lt.s32.totalorder %s16_s13, %s16_s13 }
   0x4   :  { %p1676_p0 = scmp.ne.s32.totalorder %s16_s13, %s1675_s14  ;;  %p1681_p2 = scmp.lt.s32.totalorder %s1675_s14, %s1675_s14 }
   0x6   :  { %p1682_p3 = por %p1681_p2, %p1680_p1 }
   0x8   :  { %p1683_p4 = pnand %p1682_p3, %p1676_p0 }
   0xa   :  { %1686 = shalt.err (!%p1683_p4)
}
   0xb   :  { %s1712_s15 = smov 64   ;;  %s1713_s16 = smov 4  }
   0xc   :  { %21 = dma.hbm_to_vmem [thread:$0]  %s2091_s0, 512, %s16_s13, [#allocation5], %s1712_s15, %s1712_s15, %s1713_s16  }
   0xd   :  { %s1714_s19 = smov [#allocation6]  }
   0xe   :  { %s27_s20 = sshll.u32 %s1714_s19, 4  ;;  %s28_s20 = int_to_ptr.vmem [resolvable:$true] %s27_s20 }
   0xf   :  { %s1695_s21 = scalar_lea.vmem %s28_s20, 3072  ;;  %p1700_p6 = scmp.lt.s32.totalorder %s28_s20, %s28_s20 }
  0x10   :  { %p1696_p5 = scmp.ne.s32.totalorder %s28_s20, %s1695_s21  ;;  %p1701_p7 = scmp.lt.s32.totalorder %s1695_s21, %s1695_s21 }
  0x12   :  { %p1702_p8 = por %p1701_p7, %p1700_p6 }
  0x14   :  { %p1703_p9 = pnand %p1702_p8, %p1696_p5 }
  0x16   :  { %1706 = shalt.err (!%p1703_p9)
}
  0x17   :  { %33 = dma.hbm_to_vmem [thread:$0]  %s2092_s1, 3072, %s28_s20, [#allocation7], %s1712_s15, %s1712_s15, %s1713_s16  }
  0x18   :  { %1707 = dma.done.wait [#allocation5], 512  }
  0x19   :  { %1708 = vsyncadd [#allocation5], 4294966784 }
  0x1a   :  { %1709 = dma.done.wait [#allocation7], 3072  }
  0x1b   :  { %1710 = vsyncadd [#allocation7], 4294964224  ;;  %v1639_v0 = vld [vmem:[#allocation6 + $0x78] sm:$0xff]   ;;  %v1641_v2 = vld [vmem:[#allocation6 + $0x70] sm:$0xff]   ;;  %vm44_vm0 = vsmask.f32 256  ;;  %v191_v16 = vlaneseq }
  0x1c   :  { %v1640_v1 = vld [vmem:[#allocation6 + $0x38] sm:$0xff]   ;;  %1585 = vmatprep.subr.bf16.mxu1 %v1639_v0  ;;  %v1642_v3 = vld [vmem:[#allocation6 + $0x30] sm:$0xff]   ;;  %v1643_v4 = vld [vmem:[#allocation6 + $0x68] sm:$0xff]   ;;  %vm43_vm1 = vcmask 1040384   ;;  %vm68_vm2 = vsmask.f32 4368 }
  0x1d   :  { %1586 = vmatpush3.bf16.msra.mxu1 %v1640_v1  ;;  %v1644_v5 = vld [vmem:[#allocation6 + $0xb8] sm:$0xff]   ;;  %v1645_v6 = vld [vmem:[#allocation6 + $0x28] sm:$0xff]   ;;  %v1646_v7 = vld [vmem:[#allocation6 + $0x60] sm:$0xff]   ;;  %vm52_vm3 = vsmask.f32 7938  ;;  %vm150_vm5 = vcmask 1043456  }
  0x1e   :  { %1587 = vmatprep.subr.bf16.mxu1 %v1641_v2  ;;  %1613 = vmatprep.subr.bf16.mxu0 %v1644_v5  ;;  %v1647_v8 = vld [vmem:[#allocation6 + $0xb0] sm:$0xff]   ;;  %v1648_v9 = vld [vmem:[#allocation6 + $0x20] sm:$0xff]   ;;  %v1650_v10 = vld [vmem:[#allocation6 + $0xa8] sm:$0xff]   ;;  %v1749_v22 = vshrl.u32 %v191_v16, 7  ;;  %v1715_v31 = vmov 1966171168  }
  0x1f   :  { %1614 = vmatpush3.bf16.msra.mxu0 %v1644_v5  ;;  %v1649_v11 = vld [vmem:[#allocation6 + $0x58] sm:$0xff]   ;;  %v1653_v12 = vld [vmem:[#allocation6 + $0xa0] sm:$0xff]   ;;  %v1652_v14 = vld [vmem:[#allocation6 + $0x50] sm:$0xff]   ;;  %v1753_v32 = vunpack.c.l.s4 %v1715_v31  ;;  %v1716_v33 = vmov 1935823168   ;;  %vm546_vm9 = vcmask 1041409  }
  0x20   :  { %1615 = vmatprep.subr.bf16.mxu0 %v1647_v8  ;;  %v1651_v13 = vld [vmem:[#allocation6 + $0x18] sm:$0xff]   ;;  %vm1745_vm4 = vmand %vm43_vm1, %vm44_vm0  ;;  %v1654_v18 = vld [vmem:[#allocation6 + $0x10] sm:$0xff]   ;;  %v1755_v34 = vunpack.c.l.s4 %v1716_v33  ;;  %vm549_vm10 = vcmask 1042434   ;;  %vm552_vm11 = vcmask 1043459   ;;  %vm555_vm12 = vcmask 1044484  }
  0x21   :  { %1588 = vmatpush3.bf16.msra.mxu1 %v1642_v3  ;;  %v1656_v15 = vld [vmem:[#allocation6 + $0x98] sm:$0xff]   ;;  %v1655_v19 = vld [vmem:[#allocation6 + $0x48] sm:$0xff]   ;;  %v1659_v21 = vld [vmem:[#allocation6 + $0x90] sm:$0xff]   ;;  %v190_v60 = vunpack.c.0.s8 %v1753_v32  ;;  %vm558_vm13 = vcmask 1045509   ;;  %vm561_vm14 = vcmask 1046534   ;;  %vm564_vm15 = vcmask 1047559  }
  0x22   :  { %1589 = vmatprep.subr.bf16.mxu1 %v1643_v4  ;;  %v1657_v20 = vld [vmem:[#allocation6 + $0x8] sm:$0xff]   ;;  %v1658_v23 = vld [vmem:[#allocation6 + $0x40] sm:$0xff]   ;;  %vm1759_vm6 = vmor %vm44_vm0, %vm68_vm2  ;;  %v292_v61 = vunpack.c.0.s8 %v1755_v34  ;;  %vm1155_vm0 = vsmask.f32 3328 }
  0x23   :  { %1616 = vmatpush3.bf16.msra.mxu0 %v1647_v8  ;;  %v46_v24 = vld [vmem:[#allocation2] sm:$0x1]  ;;  %v60_v25 = vld [vmem:[#allocation4] sm:$0xf]  ;;  %v61_v26 = vld [vmem:[#allocation4 + $0x4] sm:$0xf]  ;;  %v1797_v32 = vsub.s32 %v190_v60, %v1749_v22 }
  0x24   :  { %1617 = vmatprep.subr.bf16.mxu0 %v1650_v10  ;;  %v47_v27 = vsel %vm1745_vm4, 0, %v46_v24  ;;  %v62_v28 = vld [vmem:[#allocation4 + $0x8] sm:$0xf]  ;;  %v63_v29 = vld [vmem:[#allocation4 + $0xc] sm:$0xf]  ;;  %v71_v30 = vshrl.u32 %v60_v25, 16  ;;  %vm1767_vm7 = vmand %vm150_vm5, %vm52_vm3 }
  0x25   :  { %1590 = vmatpush3.bf16.msra.mxu1 %v1645_v6  ;;  %48 = vst [vmem:[#allocation2] sm:$0x1] %v47_v27  ;;  %v74_v35 = vshll.u32 %v60_v25, 16  ;;  %v79_v36 = vshrl.u32 %v61_v26, 16  ;;  %v82_v37 = vshll.u32 %v61_v26, 16  ;;  %v88_v38 = vshrl.u32 %v62_v28, 16  ;;  %vm1782_vm8 = vmand %vm43_vm1, %vm52_vm3 }
  0x26   :  { %1591 = vmatprep.subr.bf16.mxu1 %v1646_v7  ;;  %v73_v39 = vrot.slane %v71_v30, 7  ;;  %v91_v40 = vshll.u32 %v62_v28, 16  ;;  %v97_v41 = vshrl.u32 %v63_v29, 16  ;;  %v100_v42 = vshll.u32 %v63_v29, 16  ;;  %v1660_v43 = vld [vmem:[#allocation6] sm:$0xff]   ;;  %v1663_v46 = vld [vmem:[#allocation6 + $0x88] sm:$0xff]  }
  0x27   :  { %1618 = vmatpush3.bf16.msra.mxu0 %v1650_v10  ;;  %v81_v44 = vrot.slane %v79_v36, 7  ;;  %v90_v45 = vrot.slane %v88_v38, 7  ;;  %v49_v51 = vld [vmem:[#allocation2 + $0x14] sm:$0x1]  ;;  %v64_v57 = vld [vmem:[#allocation4 + $0x10] sm:$0xf] }
  0x28   :  { %1619 = vmatprep.subr.bf16.mxu0 %v1653_v12  ;;  %v76_v48 = vor.u32 %v74_v35, %v73_v39  ;;  %v77_v49 = vrot.slane %v73_v39, 4  ;;  %v1763_v50 = vrot.slane %v97_v41, 7  ;;  %v65_v58 = vld [vmem:[#allocation4 + $0x14] sm:$0xf]  ;;  %v1664_v62 = vld [vmem:[#allocation6 + $0x80] sm:$0xff]   ;;  %v50_v63 = vsel %vm1745_vm4, 0, %v49_v51 }
  0x29   :  { %1592 = vmatpush3.bf16.msra.mxu1 %v1648_v9  ;;  %v84_v52 = vor.u32 %v82_v37, %v81_v44  ;;  %v86_v53 = vrot.slane %v81_v44, 4  ;;  %v93_v54 = vor.u32 %v91_v40, %v90_v45  ;;  %v95_v55 = vrot.slane %v90_v45, 4  ;;  %v66_v0 = vld [vmem:[#allocation4 + $0x18] sm:$0xf]  ;;  %v67_v1 = vld [vmem:[#allocation4 + $0x1c] sm:$0xf] }
  0x2a   :  { %1593 = vmatprep.subr.bf16.mxu1 %v1649_v11  ;;  %v102_v59 = vor.u32 %v100_v42, %v1763_v50  ;;  %51 = vst [vmem:[#allocation2 + $0x14] sm:$0x1] %v50_v63  ;;  %v106_v4 = vshrl.u32 %v64_v57, 16  ;;  %v109_v5 = vshll.u32 %v64_v57, 16  ;;  %v54_v7 = vld [vmem:[#allocation2 + $0x10] sm:$0x1] }
  0x2b   :  { %1620 = vmatpush3.bf16.msra.mxu0 %v1653_v12  ;;  %v85_v2 = vsel %vm1759_vm6, %v77_v49, %v84_v52  ;;  %v94_v3 = vsel %vm1759_vm6, %v86_v53, %v93_v54  ;;  %v114_v10 = vshrl.u32 %v65_v58, 16  ;;  %v117_v11 = vshll.u32 %v65_v58, 16 }
  0x2c   :  { %1621 = vmatprep.subr.bf16.mxu0 %v1656_v15  ;;  %v103_v8 = vsel %vm1759_vm6, %v95_v55, %v102_v59  ;;  %v152_v9 = vld [vmem:[#allocation2] sm:$0xf]  ;;  %155 = vst [vmem:[#allocation2 + $0x4] sm:$0xf] %v85_v2  ;;  %156 = vst [vmem:[#allocation2 + $0x8] sm:$0xf] %v94_v3 }
  0x2d   :  { %1594 = vmatpush3.bf16.msra.mxu1 %v1651_v13  ;;  %v123_v12 = vshrl.u32 %v66_v0, 16  ;;  %v153_v13 = vsel %vm1767_vm7, %v76_v48, %v152_v9  ;;  %157 = vst [vmem:[#allocation2 + $0xc] sm:$0xf] %v103_v8  ;;  %v132_v16 = vshrl.u32 %v67_v1, 16  ;;  %vm1156_vm1 = vsmask.f32 7440 }
  0x2e   :  { %1595 = vmatprep.subr.bf16.mxu1 %v1652_v14  ;;  %v108_v14 = vrot.slane %v106_v4, 7  ;;  %154 = vst [vmem:[#allocation2] sm:$0xf] %v153_v13  ;;  %vm2066_vm2 = vmor %vm1155_vm0, %vm1156_vm1 }
  0x2f   :  { %1622 = vmatpush3.bf16.msra.mxu0 %v1656_v15  ;;  %v126_v15 = vshll.u32 %v66_v0, 16  ;;  %v1792_v26 = vrot.slane %v132_v16, 7 }
  0x30   :  { %1623 = vmatprep.subr.bf16.mxu0 %v1659_v21  ;;  %v111_v24 = vor.u32 %v109_v5, %v108_v14  ;;  %v112_v25 = vrot.slane %v108_v14, 4 }
  0x31   :  { %1596 = vmatpush3.bf16.msra.mxu1 %v1654_v18  ;;  %v116_v18 = vrot.slane %v114_v10, 7  ;;  %v161_v36 = vld [vmem:[#allocation2 + $0x14] sm:$0xf] }
  0x32   :  { %1597 = vmatprep.subr.bf16.mxu1 %v1655_v19  ;;  %v125_v19 = vrot.slane %v123_v12, 7  ;;  %v162_v39 = vsel %vm1767_vm7, %v111_v24, %v161_v36 }
  0x33   :  { %1624 = vmatpush3.bf16.msra.mxu0 %v1659_v21  ;;  %v55_v21 = vsel %vm1782_vm8, 0, %v54_v7  ;;  %v119_v28 = vor.u32 %v117_v11, %v116_v18  ;;  %v121_v29 = vrot.slane %v116_v18, 4  ;;  %v1514_v37 = vld.sshfl [vmem:[#allocation2 + $0x4] sm:$0x33 pattern:$0x75316420] }
  0x34   :  { %1625 = vmatprep.subr.bf16.mxu0 %v1663_v46  ;;  %56 = vst [vmem:[#allocation2 + $0x10] sm:$0x1] %v55_v21  ;;  %v128_v30 = vor.u32 %v126_v15, %v125_v19  ;;  %v130_v31 = vrot.slane %v125_v19, 4  ;;  %v211_v41 = vcombine.high %v1514_v37, %v1514_v37  ;;  %v218_v42 = vrot.slane %v1514_v37, %v1797_v32 }
  0x35   :  { %1598 = vmatpush3.bf16.msra.mxu1 %v1657_v20  ;;  %v135_v20 = vshll.u32 %v67_v1, 16  ;;  %v120_v34 = vsel %vm1759_vm6, %v112_v25, %v119_v28  ;;  %v1515_v40 = vld.sshfl [vmem:[#allocation2 + $0x8] sm:$0x33 pattern:$0x75316420] }
  0x36   :  { %1599 = vmatprep.subr.bf16.mxu1 %v1658_v23  ;;  %v57_v23 = vld [vmem:[#allocation2 + $0x24] sm:$0x1]  ;;  %v129_v35 = vsel %vm1759_vm6, %v121_v29, %v128_v30  ;;  %164 = vst [vmem:[#allocation2 + $0x18] sm:$0xf] %v120_v34  ;;  %163 = vst [vmem:[#allocation2 + $0x14] sm:$0xf] %v162_v39  ;;  %v235_v45 = vcombine.high %v1515_v40, %v1515_v40  ;;  %v225_v51 = vrot.slane %v211_v41, %v1797_v32 }
  0x37   :  { %1626 = vmatpush3.bf16.msra.mxu0 %v1663_v46  ;;  %v58_v27 = vsel %vm1782_vm8, 0, %v57_v23  ;;  %v137_v33 = vor.u32 %v135_v20, %v1792_v26  ;;  %165 = vst [vmem:[#allocation2 + $0x1c] sm:$0xf] %v129_v35  ;;  %v242_v46 = vrot.slane %v1515_v40, %v1797_v32  ;;  %v226_v52 = vcombine.high %v218_v42, %v218_v42 }
  0x38   :  { %1627 = vmatprep.subr.bf16.mxu0 %v1664_v62  ;;  %59 = vst [vmem:[#allocation2 + $0x24] sm:$0x1] %v58_v27  ;;  %v1513_v44 = vld.sshfl [vmem:[#allocation2] sm:$0x33 pattern:$0x75316420]  ;;  %v249_v53 = vrot.slane %v235_v45, %v1797_v32  ;;  %v227_v58 = vcombine.high %v225_v51, %v225_v51 }
  0x39   :  { %1600 = vmatpush3.bf16.msra.mxu1 %v1660_v43  ;;  %v138_v38 = vsel %vm1759_vm6, %v130_v31, %v137_v33  ;;  %v1810_v43 = vsub.s32 %v292_v61, %v1749_v22  ;;  %v1516_v47 = vld.sshfl [vmem:[#allocation2 + $0xc] sm:$0x33 pattern:$0x75316420]  ;;  %v187_v48 = vcombine.high %v1513_v44, %v1513_v44  ;;  %v194_v49 = vrot.slane %v1513_v44, %v1797_v32 }
  0x3a   :  { %166 = vst [vmem:[#allocation2 + $0x20] sm:$0xf] %v138_v38  ;;  %v250_v54 = vcombine.high %v242_v46, %v242_v46  ;;  %v259_v55 = vcombine.high %v1516_v47, %v1516_v47  ;;  %v266_v22 = vrot.slane %v1516_v47, %v1797_v32  ;;  %v251_v60 = vcombine.high %v249_v53, %v249_v53 }
  0x3b   :  { %1628 = vmatpush3.bf16.msra.mxu0 %v1664_v62  ;;  %v201_v56 = vrot.slane %v187_v48, %v1797_v32  ;;  %v202_v57 = vcombine.high %v194_v49, %v194_v49  ;;  %v296_v59 = vrot.slane %v194_v49, %v1810_v43  ;;  %v352_v63 = vrot.slane %v218_v42, %v1810_v43 }
  0x3c   :  { %v273_v61 = vrot.slane %v259_v55, %v1797_v32  ;;  %v274_v62 = vcombine.high %v266_v22, %v266_v22  ;;  %v366_v6 = vrot.slane %v225_v51, %v1810_v43  ;;  %v380_v7 = vrot.slane %v226_v52, %v1810_v43 }
  0x3d   :  { %v203_v0 = vcombine.high %v201_v56, %v201_v56  ;;  %v1822_v1 = vrot.slane %v296_v59, %v1810_v43  ;;  %v310_v2 = vrot.slane %v201_v56, %v1810_v43  ;;  %v324_v3 = vrot.slane %v202_v57, %v1810_v43 }
  0x3e   :  { %v275_v4 = vcombine.high %v273_v61, %v273_v61  ;;  %v1827_v5 = vrot.slane %v352_v63, %v1810_v43  ;;  %v394_v11 = vrot.slane %v227_v58, %v1810_v43  ;;  %v373_v12 = vrot.slane %v366_v6, %v1810_v43 }
  0x3f   :  { %v1832_v8 = vrot.slane %v310_v2, %v1810_v43  ;;  %v331_v9 = vrot.slane %v324_v3, %v1810_v43  ;;  %v338_v10 = vrot.slane %v203_v0, %v1810_v43  ;;  %v387_v13 = vrot.slane %v380_v7, %v1810_v43 }
  0x40   :  { %v408_v14 = vrot.slane %v242_v46, %v1810_v43  ;;  %v422_v15 = vrot.slane %v249_v53, %v1810_v43  ;;  %v401_v18 = vrot.slane %v394_v11, %v1810_v43  ;;  %v436_v19 = vrot.slane %v250_v54, %v1810_v43 }
  0x41   :  { %v345_v16 = vrot.slane %v338_v10, %v1810_v43  ;;  %v450_v20 = vrot.slane %v251_v60, %v1810_v43  ;;  %v464_v24 = vrot.slane %v266_v22, %v1810_v43  ;;  %v478_v25 = vrot.slane %v273_v61, %v1810_v43 }
  0x42   :  { %v1846_v21 = vrot.slane %v408_v14, %v1810_v43  ;;  %v1849_v23 = vrot.slane %v422_v15, %v1810_v43  ;;  %v443_v27 = vrot.slane %v436_v19, %v1810_v43  ;;  %v492_v29 = vrot.slane %v274_v62, %v1810_v43 }
  0x43   :  { %v457_v28 = vrot.slane %v450_v20, %v1810_v43  ;;  %v506_v30 = vrot.slane %v275_v4, %v1810_v43  ;;  %v471_v31 = vrot.slane %v464_v24, %v1810_v43  ;;  %v485_v33 = vrot.slane %v478_v25, %v1810_v43 }
  0x44   :  { %v528_v34 = vunpack.c.l.b16 %v1822_v1  ;;  %v529_v35 = vunpack.c.l.b16 %v1832_v8  ;;  %v499_v36 = vrot.slane %v492_v29, %v1810_v43  ;;  %v530_v38 = vunpack.c.l.b16 %v331_v9 }
  0x45   :  { %v513_v37 = vrot.slane %v506_v30, %v1810_v43  ;;  %v531_v39 = vunpack.c.l.b16 %v345_v16  ;;  %v532_v40 = vunpack.c.l.b16 %v1827_v5  ;;  %v533_v41 = vunpack.c.l.b16 %v373_v12 }
  0x46   :  { %v1864_v42 = vunpack.c.l.b16 %v387_v13  ;;  %v1866_v44 = vunpack.c.l.b16 %v401_v18  ;;  %v536_v45 = vunpack.c.l.b16 %v1846_v21  ;;  %v537_v46 = vunpack.c.l.b16 %v1849_v23 }
  0x47   :  { %v538_v47 = vunpack.c.l.b16 %v443_v27  ;;  %v539_v48 = vunpack.c.l.b16 %v457_v28  ;;  %v540_v49 = vunpack.c.l.b16 %v471_v31  ;;  %v541_v51 = vunpack.c.l.b16 %v485_v33 }
  0x48   :  { %v542_v52 = vunpack.c.l.b16 %v499_v36  ;;  %v1870_v53 = vunpack.c.l.b16 %v513_v37  ;;  %v545_v54 = vrot.slane %v529_v35, 7  ;;  %v548_v55 = vrot.slane %v530_v38, 6 }
  0x49   :  { %v551_v22 = vrot.slane %v531_v39, 5  ;;  %v554_v56 = vrot.slane %v532_v40, 4  ;;  %v557_v57 = vrot.slane %v533_v41, 3  ;;  %v560_v58 = vrot.slane %v1864_v42, 2 }
  0x4a   :  { %v563_v59 = vrot.slane %v1866_v44, 1  ;;  %v566_v60 = vrot.slane %v537_v46, 7  ;;  %v568_v61 = vrot.slane %v538_v47, 6  ;;  %v570_v62 = vrot.slane %v539_v48, 5 }
  0x4b   :  { %v572_v63 = vrot.slane %v540_v49, 4  ;;  %v574_v0 = vrot.slane %v541_v51, 3  ;;  %v576_v1 = vrot.slane %v542_v52, 2  ;;  %v578_v2 = vrot.slane %v1870_v53, 1 }
  0x4c   :  { %v591_v3 = vrot.slane %v528_v34, 1  ;;  %v593_v4 = vrot.slane %v530_v38, 7  ;;  %v595_v5 = vrot.slane %v531_v39, 6  ;;  %v597_v6 = vrot.slane %v532_v40, 5 }
  0x4d   :  { %v599_v7 = vrot.slane %v533_v41, 4  ;;  %v601_v8 = vrot.slane %v1864_v42, 3  ;;  %v603_v10 = vrot.slane %v1866_v44, 2  ;;  %v605_v11 = vrot.slane %v536_v45, 1 }
  0x4e   :  { %v592_v9 = vsel %vm546_vm9, %v529_v35, %v591_v3  ;;  %v607_v12 = vrot.slane %v538_v47, 7  ;;  %v609_v14 = vrot.slane %v539_v48, 6  ;;  %v611_v15 = vrot.slane %v540_v49, 5 }
  0x4f   :  { %v594_v13 = vsel %vm549_vm10, %v593_v4, %v592_v9  ;;  %v613_v16 = vrot.slane %v541_v51, 4  ;;  %v606_v19 = vsel %vm546_vm9, %v537_v46, %v605_v11  ;;  %v615_v20 = vrot.slane %v542_v52, 3  ;;  %v1519_v38 = vld.sshfl [vmem:[#allocation2 + $0x14] sm:$0x33 pattern:$0x75316420] }
  0x50   :  { %v596_v18 = vsel %vm552_vm11, %v595_v5, %v594_v13  ;;  %v617_v21 = vrot.slane %v1870_v53, 2  ;;  %v608_v24 = vsel %vm549_vm10, %v607_v12, %v606_v19  ;;  %v547_v25 = vsel %vm546_vm9, %v545_v54, %v528_v34  ;;  %v1520_v47 = vld.sshfl [vmem:[#allocation2 + $0x18] sm:$0x33 pattern:$0x75316420] }
  0x51   :  { %v598_v23 = vsel %vm555_vm12, %v597_v6, %v596_v18  ;;  %v567_v27 = vsel %vm546_vm9, %v566_v60, %v536_v45  ;;  %v610_v29 = vsel %vm552_vm11, %v609_v14, %v608_v24  ;;  %v550_v30 = vsel %vm549_vm10, %v548_v55, %v547_v25  ;;  %v1521_v52 = vld.sshfl [vmem:[#allocation2 + $0x1c] sm:$0x33 pattern:$0x75316420] }
  0x52   :  { %v600_v28 = vsel %vm558_vm13, %v599_v7, %v598_v23  ;;  %v569_v31 = vsel %vm549_vm10, %v568_v61, %v567_v27  ;;  %v612_v35 = vsel %vm555_vm12, %v611_v15, %v610_v29  ;;  %v553_v36 = vsel %vm552_vm11, %v551_v22, %v550_v30 }
  0x53   :  { %v602_v33 = vsel %vm561_vm14, %v601_v8, %v600_v28  ;;  %v571_v37 = vsel %vm552_vm11, %v570_v62, %v569_v31  ;;  %v614_v39 = vsel %vm558_vm13, %v613_v16, %v612_v35  ;;  %v556_v40 = vsel %vm555_vm12, %v554_v56, %v553_v36  ;;  %v1522_v56 = vld.sshfl [vmem:[#allocation2 + $0x20] sm:$0x33 pattern:$0x75316420] }
  0x54   :  { %v604_v34 = vsel %vm564_vm15, %v603_v10, %v602_v33  ;;  %v573_v41 = vsel %vm555_vm12, %v572_v63, %v571_v37  ;;  %v616_v42 = vsel %vm561_vm14, %v615_v20, %v614_v39  ;;  %v559_v45 = vsel %vm558_vm13, %v557_v57, %v556_v40 }
  0x55   :  { %v620_v44 = vpack.c.b16 %v604_v34, %v604_v34  ;;  %v575_v46 = vsel %vm558_vm13, %v574_v0, %v573_v41  ;;  %v618_v48 = vsel %vm564_vm15, %v617_v21, %v616_v42  ;;  %v562_v49 = vsel %vm561_vm14, %v560_v58, %v559_v45 }
  0x56   :  { %v577_v51 = vsel %vm561_vm14, %v576_v1, %v575_v46  ;;  %v650_v53 = vcombine.high %v1519_v38, %v1519_v38  ;;  %v621_v54 = vpack.c.b16 %v618_v48, %v618_v48  ;;  %v565_v55 = vsel %vm564_vm15, %v563_v59, %v562_v49 }
  0x57   :  { %627 = vst [vmem:[#allocation3 + $0x18] sm:$0xf] %v620_v44  ;;  %v579_v22 = vsel %vm564_vm15, %v578_v2, %v577_v51  ;;  %v657_v57 = vrot.slane %v1519_v38, %v1797_v32  ;;  %v580_v60 = vpack.c.b16 %v565_v55, %v565_v55  ;;  %v674_v63 = vcombine.high %v1520_v47, %v1520_v47 }
  0x58   :  { %v581_v61 = vpack.c.b16 %v579_v22, %v579_v22  ;;  %v664_v62 = vrot.slane %v650_v53, %v1797_v32  ;;  %628 = vst [vmem:[#allocation3 + $0x1c] sm:$0xf] %v621_v54  ;;  %v681_v0 = vrot.slane %v1520_v47, %v1797_v32  ;;  %v698_v1 = vcombine.high %v1521_v52, %v1521_v52 }
  0x59   :  { %v665_v58 = vcombine.high %v657_v57, %v657_v57  ;;  %v705_v3 = vrot.slane %v1521_v52, %v1797_v32  ;;  %586 = vst [vmem:[#allocation3] sm:$0xf] %v580_v60  ;;  %v688_v2 = vrot.slane %v674_v63, %v1797_v32  ;;  %v722_v4 = vcombine.high %v1522_v56, %v1522_v56 }
  0x5a   :  { %587 = vst [vmem:[#allocation3 + $0x4] sm:$0xf] %v581_v61  ;;  %v666_v59 = vcombine.high %v664_v62, %v664_v62  ;;  %v729_v5 = vrot.slane %v1522_v56, %v1797_v32  ;;  %v689_v6 = vcombine.high %v681_v0, %v681_v0  ;;  %v712_v7 = vrot.slane %v698_v1, %v1797_v32 }
  0x5b   :  { %v759_v8 = vrot.slane %v657_v57, %v1810_v43  ;;  %v104_v9 = vrot.slane %v1763_v50, 4  ;;  %v690_v10 = vcombine.high %v688_v2, %v688_v2  ;;  %v736_v11 = vrot.slane %v722_v4, %v1797_v32 }
  0x5c   :  { %v773_v12 = vrot.slane %v664_v62, %v1810_v43  ;;  %v713_v13 = vcombine.high %v705_v3, %v705_v3  ;;  %v714_v14 = vcombine.high %v712_v7, %v712_v7  ;;  %v787_v15 = vrot.slane %v665_v58, %v1810_v43 }
  0x5d   :  { %v801_v16 = vrot.slane %v666_v59, %v1810_v43  ;;  %v737_v18 = vcombine.high %v729_v5, %v729_v5  ;;  %v1920_v19 = vrot.slane %v759_v8, %v1810_v43  ;;  %v815_v20 = vrot.slane %v681_v0, %v1810_v43 }
  0x5e   :  { %v829_v21 = vrot.slane %v688_v2, %v1810_v43  ;;  %v738_v23 = vcombine.high %v736_v11, %v736_v11  ;;  %v1925_v24 = vrot.slane %v773_v12, %v1810_v43  ;;  %v843_v25 = vrot.slane %v689_v6, %v1810_v43 }
  0x5f   :  { %v857_v27 = vrot.slane %v690_v10, %v1810_v43  ;;  %v1661_v28 = vld [vmem:[#allocation3 + $0x18] sm:$0xff]   ;;  %v794_v29 = vrot.slane %v787_v15, %v1810_v43  ;;  %v808_v30 = vrot.slane %v801_v16, %v1810_v43  ;;  %v871_v31 = vrot.slane %v705_v3, %v1810_v43 }
  0x60   :  { %v885_v33 = vrot.slane %v712_v7, %v1810_v43  ;;  %v1933_v35 = vld [vmem:[#allocation3] sm:$0xf]  ;;  %v1938_v37 = vrot.slane %v815_v20, %v1810_v43  ;;  %v1941_v38 = vrot.slane %v829_v21, %v1810_v43  ;;  %v899_v34 = vrot.slane %v713_v13, %v1810_v43  ;;  %1455 = vmatprep.mubr.bf16.mxu1 %v1661_v28 }
  0x61   :  { %v1935_v36 = vld [vmem:[#allocation3 + $0x4] sm:$0xf]  ;;  %v913_v39 = vrot.slane %v714_v14, %v1810_v43  ;;  %v850_v41 = vrot.slane %v843_v25, %v1810_v43  ;;  %v864_v42 = vrot.slane %v857_v27, %v1810_v43  ;;  %v927_v44 = vrot.slane %v729_v5, %v1810_v43  ;;  %v158_v14 = vld [vmem:[#allocation2 + $0x10] sm:$0x1] }
  0x62   :  { %v1525_v40 = vcombine.low %v1933_v35, %v1935_v36  ;;  %v1951_v45 = vrot.slane %v871_v31, %v1810_v43  ;;  %v1954_v46 = vrot.slane %v885_v33, %v1810_v43  ;;  %v941_v47 = vrot.slane %v736_v11, %v1810_v43 }
  0x63   :  { %v955_v48 = vrot.slane %v737_v18, %v1810_v43  ;;  %v906_v49 = vrot.slane %v899_v34, %v1810_v43  ;;  %v920_v51 = vrot.slane %v913_v39, %v1810_v43  ;;  %v1961_v52 = vrot.slane %v927_v44, %v1810_v43 }
  0x64   :  { %1456 = vmatmul.mubr.bf16.vlgmr.msra.gmra.mxu1 %v1525_v40  ;;  %v969_v53 = vrot.slane %v738_v23, %v1810_v43  ;;  %v1965_v54 = vrot.slane %v941_v47, %v1810_v43  ;;  %v991_v22 = vunpack.c.l.b16 %v1920_v19  ;;  %v992_v56 = vunpack.c.l.b16 %v1925_v24  ;;  %v167_v47 = vld [vmem:[#allocation2 + $0x24] sm:$0x1] }
  0x65   :  { %v962_v55 = vrot.slane %v955_v48, %v1810_v43  ;;  %v993_v60 = vunpack.c.l.b16 %v794_v29  ;;  %v1971_v61 = vunpack.c.l.b16 %v808_v30  ;;  %v995_v62 = vunpack.c.l.b16 %v1938_v37 }
  0x66   :  { %v976_v57 = vrot.slane %v969_v53, %v1810_v43  ;;  %v996_v63 = vunpack.c.l.b16 %v1941_v38  ;;  %v1975_v58 = vunpack.c.l.b16 %v850_v41  ;;  %v1977_v0 = vunpack.c.l.b16 %v864_v42 }
  0x67   :  { %v999_v1 = vunpack.c.l.b16 %v1951_v45  ;;  %v1000_v3 = vunpack.c.l.b16 %v1954_v46  ;;  %v1981_v59 = vunpack.c.l.b16 %v906_v49  ;;  %v1983_v2 = vunpack.c.l.b16 %v920_v51 }
  0x68   :  { %v1003_v4 = vunpack.c.l.b16 %v1961_v52  ;;  %v1004_v5 = vunpack.c.l.b16 %v1965_v54  ;;  %v1048_v6 = vrot.slane %v991_v22, 1  ;;  %v1050_v7 = vrot.slane %v993_v60, 7 }
  0x69   :  { %v1052_v8 = vrot.slane %v1971_v61, 6  ;;  %v1988_v10 = vunpack.c.l.b16 %v962_v55  ;;  %v1990_v11 = vunpack.c.l.b16 %v976_v57  ;;  %v1054_v12 = vrot.slane %v995_v62, 5 }
  0x6a   :  { %v1056_v13 = vrot.slane %v996_v63, 4  ;;  %v1049_v15 = vsel %vm546_vm9, %v992_v56, %v1048_v6  ;;  %v1062_v16 = vrot.slane %v999_v1, 1  ;;  %v1064_v18 = vrot.slane %v1981_v59, 7 }
  0x6b   :  { %v1066_v19 = vrot.slane %v1983_v2, 6  ;;  %v1051_v20 = vsel %vm549_vm10, %v1050_v7, %v1049_v15  ;;  %v1058_v21 = vrot.slane %v1975_v58, 3  ;;  %v1060_v23 = vrot.slane %v1977_v0, 2 }
  0x6c   :  { %v1068_v24 = vrot.slane %v1003_v4, 5  ;;  %v1053_v25 = vsel %vm552_vm11, %v1052_v8, %v1051_v20  ;;  %v1063_v27 = vsel %vm546_vm9, %v1000_v3, %v1062_v16  ;;  %v1070_v28 = vrot.slane %v1004_v5, 4 }
  0x6d   :  { %v159_v29 = vsel %vm1745_vm4, %v104_v9, %v158_v14  ;;  %v1055_v30 = vsel %vm555_vm12, %v1054_v12, %v1053_v25  ;;  %v1065_v31 = vsel %vm549_vm10, %v1064_v18, %v1063_v27  ;;  %v1072_v33 = vrot.slane %v1988_v10, 3 }
  0x6e   :  { %160 = vst [vmem:[#allocation2 + $0x10] sm:$0x1] %v159_v29  ;;  %v1057_v37 = vsel %vm558_vm13, %v1056_v13, %v1055_v30  ;;  %v1067_v38 = vsel %vm552_vm11, %v1066_v19, %v1065_v31  ;;  %v1074_v34 = vrot.slane %v1990_v11, 2  ;;  %v139_v40 = vrot.slane %v1792_v26, 4 }
  0x6f   :  { %v1059_v39 = vsel %vm561_vm14, %v1058_v21, %v1057_v37  ;;  %v1069_v50 = vsel %vm555_vm12, %v1068_v24, %v1067_v38  ;;  %v1008_v46 = vrot.slane %v992_v56, 7  ;;  %v1010_v49 = vrot.slane %v993_v60, 6 }
  0x70   :  { %v1061_v9 = vsel %vm564_vm15, %v1060_v23, %v1059_v39  ;;  %v1071_v41 = vsel %vm558_vm13, %v1070_v28, %v1069_v50  ;;  %v1012_v51 = vrot.slane %v1971_v61, 5  ;;  %v1159_v55 = vshrl.u32 %v1933_v35, 16 }
  0x71   :  { %v1073_v42 = vsel %vm561_vm14, %v1072_v33, %v1071_v41  ;;  %v1077_v44 = vpack.c.b16 %v1061_v9, %v1061_v9  ;;  %v1009_v26 = vsel %vm546_vm9, %v1008_v46, %v991_v22  ;;  %v1014_v57 = vrot.slane %v995_v62, 4 }
  0x72   :  { %v1075_v48 = vsel %vm564_vm15, %v1074_v34, %v1073_v42  ;;  %v1162_v7 = vshll.u32 %v1933_v35, 16  ;;  %v1011_v8 = vsel %vm549_vm10, %v1010_v49, %v1009_v26  ;;  %v1016_v12 = vrot.slane %v996_v63, 3 }
  0x73   :  { %v1078_v53 = vpack.c.b16 %v1075_v48, %v1075_v48  ;;  %1084 = vst [vmem:[#allocation3 + $0x24] sm:$0xf] %v1077_v44  ;;  %v168_v56 = vsel %vm1745_vm4, %v139_v40, %v167_v47  ;;  %v1168_v61 = vshll.u32 %v1935_v36, 16  ;;  %v1013_v13 = vsel %vm552_vm11, %v1012_v51, %v1011_v8  ;;  %v1045_v48 = vld [vmem:[#allocation3 + $0x14] sm:$0x1] }
  0x74   :  { %v1018_v14 = vrot.slane %v1975_v58, 2  ;;  %169 = vst [vmem:[#allocation2 + $0x24] sm:$0x1] %v168_v56  ;;  %v1015_v22 = vsel %vm555_vm12, %v1014_v57, %v1013_v13  ;;  %v1020_v35 = vrot.slane %v1977_v0, 1  ;;  %v1022_v62 = vrot.slane %v1000_v3, 7 }
  0x75   :  { %v1517_v6 = vld.sshfl [vmem:[#allocation2 + $0x10] sm:$0x1 pattern:$0x75316420]  ;;  %1085 = vst [vmem:[#allocation3 + $0x28] sm:$0xf] %v1078_v53  ;;  %v1017_v16 = vsel %vm558_vm13, %v1016_v12, %v1015_v22 }
  0x76   :  { %v289_v60 = vrot.slane %v1517_v6, %v1797_v32  ;;  %v1024_v63 = vrot.slane %v1981_v59, 6  ;;  %v1026_v18 = vrot.slane %v1983_v2, 5  ;;  %v1028_v19 = vrot.slane %v1003_v4, 4  ;;  %v588_v4 = vld [vmem:[#allocation3 + $0x8] sm:$0x1] }
  0x77   :  { %v1172_v20 = vshrl.u32 %v1935_v36, 16  ;;  %v1019_v58 = vsel %vm561_vm14, %v1018_v14, %v1017_v16  ;;  %v1023_v0 = vsel %vm546_vm9, %v1022_v62, %v999_v1  ;;  %v1030_v3 = vrot.slane %v1004_v5, 3  ;;  %v1086_v13 = vld [vmem:[#allocation3 + $0x2c] sm:$0x1] }
  0x78   :  { %v520_v15 = vrot.slane %v289_v60, %v1810_v43  ;;  %v1021_v21 = vsel %vm564_vm15, %v1020_v35, %v1019_v58  ;;  %v1025_v2 = vsel %vm549_vm10, %v1024_v63, %v1023_v0  ;;  %v1032_v52 = vrot.slane %v1988_v10, 2 }
  0x79   :  { %v1161_v23 = vrot.slane %v1159_v55, 4  ;;  %v1027_v36 = vsel %vm552_vm11, %v1026_v18, %v1025_v2  ;;  %v1034_v24 = vrot.slane %v1990_v11, 1  ;;  %v1036_v45 = vpack.c.b16 %v1021_v21, %v1021_v21  ;;  %v629_v11 = vld [vmem:[#allocation3 + $0x20] sm:$0x1] }
  0x7a   :  { %v527_v59 = vrot.slane %v520_v15, %v1810_v43  ;;  %v1164_v27 = vrot.slane %v1162_v7, 5  ;;  %v1029_v54 = vsel %vm555_vm12, %v1028_v19, %v1027_v36  ;;  %v1170_v28 = vrot.slane %v1168_v61, 5 }
  0x7b   :  { %v1031_v29 = vsel %vm558_vm13, %v1030_v3, %v1029_v54  ;;  %1043 = vst [vmem:[#allocation3 + $0xc] sm:$0xf] %v1036_v45  ;;  %v1174_v31 = vrot.slane %v1172_v20, 4 }
  0x7c   :  { %v544_v25 = vunpack.c.l.b16 %v527_v59  ;;  %v1518_v1 = vcombine.low %v527_v59, %v527_v59  ;;  %v1665_v5 = vld [vmem:[#allocation3 + $0x24] sm:$0xff]   ;;  %v1033_v33 = vsel %vm561_vm14, %v1032_v52, %v1031_v29  ;;  %v1523_v37 = vld.sshfl [vmem:[#allocation2 + $0x24] sm:$0x1 pattern:$0x75316420]  ;;  %v1165_v50 = vor.u32 %v1164_v27, %v1161_v23 }
  0x7d   :  { %1463 = vmatprep.mubr.bf16.mxu1 %v1665_v5  ;;  %v1035_v38 = vsel %vm564_vm15, %v1034_v24, %v1033_v33  ;;  %v752_v34 = vrot.slane %v1523_v37, %v1797_v32  ;;  %v1175_v42 = vor.u32 %v1174_v31, %v1170_v28  ;;  %v1555_v31 = vld [vmem:[%s2093_s2] ss:$0 sm:$0xff] }
  0x7e   :  { %v589_v10 = vsel %vm1745_vm4, %v1518_v1, %v588_v4  ;;  %v619_v30 = vrot.slane %v544_v25, 1  ;;  %v1037_v40 = vpack.c.b16 %v1035_v38, %v1035_v38  ;;  %v1166_v46 = vrot.slane %v1165_v50, 4 }
  0x7f   :  { %590 = vst [vmem:[#allocation3 + $0x8] sm:$0x1] %v589_v10  ;;  %v983_v9 = vrot.slane %v752_v34, %v1810_v43  ;;  %v1176_v57 = vrot.slane %v1175_v42, 4 }
  0x80   :  { %v622_v39 = vpack.c.b16 %v619_v30, %v619_v30  ;;  %1044 = vst [vmem:[#allocation3 + $0x10] sm:$0xf] %v1037_v40  ;;  %v1171_v56 = vsel %vm2066_vm2, %v1166_v46, %v1170_v28 }
  0x81   :  { %v990_v44 = vrot.slane %v983_v9, %v1810_v43 }
  0x82   :  { %v630_v41 = vsel %vm1745_vm4, %v622_v39, %v629_v11  ;;  %v1091_v47 = vld [vmem:[#allocation3 + $0xc] sm:$0xf] }
  0x83   :  { %631 = vst [vmem:[#allocation3 + $0x20] sm:$0x1] %v630_v41  ;;  %v1183_v49 = vshrl.u32 %v1091_v47, 16  ;;  %v1186_v32 = vshll.u32 %v1091_v47, 16  ;;  %v1007_v51 = vunpack.c.l.b16 %v990_v44  ;;  %v1524_v53 = vcombine.low %v990_v44, %v990_v44 }
  0x85   :  { %v1185_v7 = vrot.slane %v1183_v49, 4  ;;  %v1188_v8 = vrot.slane %v1186_v32, 5  ;;  %v1046_v12 = vsel %vm1745_vm4, %v1524_v53, %v1045_v48  ;;  %v1076_v43 = vrot.slane %v1007_v51, 1 }
  0x86   :  { %v1153_v55 = vld [vmem:[#allocation3 + $0x8] sm:$0x1]  ;;  %1047 = vst [vmem:[#allocation3 + $0x14] sm:$0x1] %v1046_v12 }
  0x87   :  { %v1178_v6 = vshll.u32 %v1153_v55, 16  ;;  %v1092_v61 = vld [vmem:[#allocation3 + $0x10] sm:$0xf]  ;;  %v1189_v14 = vor.u32 %v1188_v8, %v1185_v7  ;;  %v1079_v63 = vpack.c.b16 %v1076_v43, %v1076_v43 }
  0x88   :  { %v1526_v22 = vcombine.low %v1091_v47, %v1092_v61  ;;  %v1192_v35 = vshll.u32 %v1092_v61, 16  ;;  %v1196_v62 = vshrl.u32 %v1092_v61, 16 }
  0x89   :  { %v1180_v60 = vrot.slane %v1178_v6, 5  ;;  %v1087_v20 = vsel %vm1745_vm4, %v1079_v63, %v1086_v13  ;;  %v1190_v58 = vrot.slane %v1189_v14, 4 }
  0x8a   :  { %v1194_v18 = vrot.slane %v1192_v35, 5  ;;  %v1198_v19 = vrot.slane %v1196_v62, 4  ;;  %1464 = vmatmul.mubr.bf16.gmra.mxu1 %v1526_v22  ;;  %1088 = vst [vmem:[#allocation3 + $0x2c] sm:$0x1] %v1087_v20 }
  0x8b   :  { %v1181_v15 = vsel %vm2066_vm2, %v1176_v57, %v1180_v60 }
  0x8c   :  { %v1529_v16 = vcombine.low %v1171_v56, %v1181_v15  ;;  %v1199_v0 = vor.u32 %v1198_v19, %v1194_v18  ;;  %v1195_v2 = vsel %vm2066_vm2, %v1190_v58, %v1194_v18 }
  0x8d   :  { %v1154_v3 = vld [vmem:[#allocation3 + $0x14] sm:$0x1] }
  0x8e   :  { %1629 = vmatprep.mubr.bf16.mxu0 %v1529_v16  ;;  %v1200_v59 = vrot.slane %v1199_v0, 4  ;;  %v1202_v21 = vshll.u32 %v1154_v3, 16 }
  0x90   :  { %v1204_v52 = vrot.slane %v1202_v21, 5 }
  0x92   :  { %v1205_v4 = vsel %vm2066_vm2, %v1200_v59, %v1204_v52 }
  0x93   :  { %v1530_v23 = vcombine.low %v1195_v2, %v1205_v4 }
  0x95   :  { %1630 = vmatmul.mubr.bf16.vlgmr.msra.gmra.mxu0 %v1530_v23 }
 0x124   :  { %v1601_v36 = vpop.f32.mrf.mxu1 }
 0x126   :  { %v1602_v24 = vpop.f32.mrf.mxu1 }
 0x127   :  { %v1603_v29 = vadd.f32 %v1602_v24, %v1601_v36 }
 0x128   :  { %v1604_v17 = vpop.f32.mrf.mxu1 }
 0x12a   :  { %v1605_v45 = vpop.f32.mrf.mxu1 }
 0x12b   :  { %v1606_v38 = vadd.f32 %v1605_v45, %v1604_v17 }
 0x14a   :  { %v1607_v25 = vpop.f32.mrf.mxu1 }
 0x14c   :  { %v1608_v1 = vpop.f32.mrf.mxu1 }
 0x14d   :  { %v1609_v54 = vadd.f32 %v1608_v1, %v1607_v25 }
 0x14e   :  { %v1610_v27 = vpop.f32.mrf.mxu1 }
 0x150   :  { %v1611_v5 = vpop.f32.mrf.mxu1 }
 0x151   :  { %v1612_v30 = vadd.f32 %v1611_v5, %v1610_v27 }
 0x155   :  { %v1631_v28 = vpop.f32.mrf.mxu0 }
 0x156   :  { %v1466_v10 = vadd.f32 %v1631_v28, %v1609_v54 }
 0x157   :  { %v1312_v33 = vpop.f32.mrf.mxu0 }
 0x158   :  { %v1458_v37 = vadd.f32 %v1603_v29, %v1312_v33  ;;  %v1481_v34 = vadd.f32 %v1555_v31, %v1466_v10 }
 0x159   :  { %v1632_v11 = vpop.f32.mrf.mxu0 }
 0x15a   :  { %v1469_v39 = vadd.f32 %v1632_v11, %v1612_v30  ;;  %v1479_v40 = vadd.f32 %v1555_v31, %v1458_v37  ;;  %v1485_v42 = vmax.f32 %v1481_v34, 0.0 }
 0x15b   :  { %v1315_v50 = vpop.f32.mrf.mxu0 }
 0x15c   :  { %v1482_v9 = vadd.f32 %v1555_v31, %v1469_v39  ;;  %v1461_v41 = vadd.f32 %v1606_v38, %v1315_v50  ;;  %v1483_v47 = vmax.f32 %v1479_v40, 0.0 }
 0x15e   :  { %v1486_v44 = vmax.f32 %v1482_v9, 0.0  ;;  %v1480_v46 = vadd.f32 %v1555_v31, %v1461_v41 }
 0x160   :  { %v1572_v48 = vpack.c.bf16 %v1486_v44, %v1485_v42  ;;  %v1484_v49 = vmax.f32 %v1480_v46, 0.0 }
 0x162   :  { %1574 = vst [vmem:[%s2094_s3 + $0x8] sm:$0xff] %v1572_v48   ;;  %v1567_v32 = vpack.c.bf16 %v1484_v49, %v1483_v47 }
 0x164   :  { %1568 = vst [vmem:[%s2094_s3] sm:$0xff] %v1567_v32  }
 0x165   :  { %1511 = vsyncpa [#allocation5], 1 }
 0x166   :  { %1512 = vsyncpa [#allocation7], 1 }

// kernel: _lambda_.6
= control target key start
LH: loop header
LB: loop body
LE: loop exit
PB: predicated region body
PF: predicated region fallthrough
CT: control target
= control target key end

     0   :  { %v1200_v2 = vmov 0   ;;  %vm29_vm0 = vcmask 1042432   ;;  %vm30_vm1 = vcmask 1046532   ;;  %vm165_vm3 = vcmask 1040384   ;;  %s1486_s1 = inlined_call_operand.vmem [shape: bf16[896,128], index: 1, kind: input, shape index: {}]   ;;  %s1487_s0 = inlined_call_operand.vmem [shape: bf16[2,16,128], index: 0, kind: input, shape index: {}]   ;;  %s1488_s2 = inlined_call_operand.vmem [shape: f32[1,128], index: 2, kind: input, shape index: {}]   ;;  %s1489_s3 = inlined_call_operand.vmem [shape: bf16[2,16,128], index: 3, kind: output, shape index: {}]  }
   0x1   :  { %v1142_v0 = vld [vmem:[%s1486_s1 + $0xf8] sm:$0xff]   ;;  %15 = vst [vmem:[#allocation2] sm:$0x7] %v1200_v2  ;;  %16 = vst [vmem:[#allocation2 + $0x10] sm:$0x7] %v1200_v2  ;;  %v1146_v5 = vld [vmem:[%s1486_s1 + $0xf0] sm:$0xff]  }
   0x2   :  { %v1143_v1 = vld [vmem:[%s1486_s1 + $0x78] sm:$0xff]   ;;  %17 = vst [vmem:[#allocation2 + $0x8] sm:$0x8] %v1200_v2  ;;  %18 = vst [vmem:[#allocation2 + $0xc] sm:$0x3] %v1200_v2  ;;  %1027 = vmatprep.subr.bf16.mxu0 %v1142_v0  ;;  %v1147_v6 = vld [vmem:[%s1486_s1 + $0x70] sm:$0xff]  }
   0x3   :  { %19 = vst [vmem:[#allocation2 + $0x18] sm:$0x8] %v1200_v2  ;;  %20 = vst [vmem:[#allocation2 + $0x1c] sm:$0x3] %v1200_v2  ;;  %v1144_v3 = vld [vmem:[%s1486_s1 + $0xb8] sm:$0xff]   ;;  %1055 = vmatprep.subr.bf16.mxu1 %v1143_v1  ;;  %v1148_v7 = vld [vmem:[%s1486_s1 + $0xb0] sm:$0xff]  }
   0x4   :  { %v1145_v4 = vld [vmem:[%s1486_s1 + $0x38] sm:$0xff]   ;;  %1028 = vmatpush3.bf16.msra.mxu0 %v1144_v3  ;;  %v1149_v8 = vld [vmem:[%s1486_s1 + $0x30] sm:$0xff]   ;;  %v1150_v9 = vld [vmem:[%s1486_s1 + $0xe8] sm:$0xff]   ;;  %vm166_vm4 = vcmask 1044484   ;;  %vm140_vm5 = vcmask 1041408   ;;  %vm141_vm6 = vcmask 1045508  }
   0x5   :  { %1056 = vmatpush3.bf16.msra.mxu1 %v1145_v4  ;;  %1029 = vmatprep.subr.bf16.mxu0 %v1146_v5  ;;  %v1151_v10 = vld [vmem:[%s1486_s1 + $0x68] sm:$0xff]   ;;  %v1154_v13 = vld [vmem:[%s1486_s1 + $0xe0] sm:$0xff]   ;;  %v1158_v17 = vld [vmem:[%s1486_s1 + $0xd8] sm:$0xff]  }
   0x6   :  { %1057 = vmatprep.subr.bf16.mxu1 %v1147_v6  ;;  %v1152_v11 = vld [vmem:[%s1486_s1 + $0xa8] sm:$0xff]   ;;  %v1155_v14 = vld [vmem:[%s1486_s1 + $0x60] sm:$0xff]   ;;  %v1159_v18 = vld [vmem:[%s1486_s1 + $0x58] sm:$0xff]  }
   0x7   :  { %v1153_v12 = vld [vmem:[%s1486_s1 + $0x28] sm:$0xff]   ;;  %v1156_v15 = vld [vmem:[%s1486_s1 + $0xa0] sm:$0xff]   ;;  %v1160_v19 = vld [vmem:[%s1486_s1 + $0x98] sm:$0xff]  }
   0x8   :  { %1030 = vmatpush3.bf16.msra.mxu0 %v1148_v7  ;;  %v1157_v16 = vld [vmem:[%s1486_s1 + $0x20] sm:$0xff]   ;;  %v1161_v20 = vld [vmem:[%s1486_s1 + $0x18] sm:$0xff]   ;;  %v1162_v21 = vld [vmem:[%s1486_s1 + $0xd0] sm:$0xff]  }
   0x9   :  { %1058 = vmatpush3.bf16.msra.mxu1 %v1149_v8  ;;  %1031 = vmatprep.subr.bf16.mxu0 %v1150_v9  ;;  %v1163_v22 = vld [vmem:[%s1486_s1 + $0x50] sm:$0xff]   ;;  %v1166_v25 = vld [vmem:[%s1486_s1 + $0xc8] sm:$0xff]   ;;  %v1170_v29 = vld [vmem:[%s1486_s1 + $0xc0] sm:$0xff]  }
   0xa   :  { %1059 = vmatprep.subr.bf16.mxu1 %v1151_v10  ;;  %v1164_v23 = vld [vmem:[%s1486_s1 + $0x90] sm:$0xff]   ;;  %v1167_v26 = vld [vmem:[%s1486_s1 + $0x48] sm:$0xff]   ;;  %v1171_v30 = vld [vmem:[%s1486_s1 + $0x40] sm:$0xff]  }
   0xb   :  { %v1165_v24 = vld [vmem:[%s1486_s1 + $0x10] sm:$0xff]   ;;  %v1168_v27 = vld [vmem:[%s1486_s1 + $0x88] sm:$0xff]   ;;  %v1172_v31 = vld [vmem:[%s1486_s1 + $0x80] sm:$0xff]  }
   0xc   :  { %1032 = vmatpush3.bf16.msra.mxu0 %v1152_v11  ;;  %v1169_v28 = vld [vmem:[%s1486_s1 + $0x8] sm:$0xff]   ;;  %v1173_v32 = vld [vmem:[%s1486_s1] sm:$0xff]   ;;  %vm1323_vm2 = vmor %vm29_vm0, %vm30_vm1 }
   0xd   :  { %1060 = vmatpush3.bf16.msra.mxu1 %v1153_v12  ;;  %1033 = vmatprep.subr.bf16.mxu0 %v1154_v13  ;;  %v21_v33 = vld [vmem:[%s1487_s0] sm:$0xf]  ;;  %v22_v34 = vld [vmem:[%s1487_s0 + $0x4] sm:$0xf]  ;;  %v1174_v38 = vld [vmem:[%s1486_s1 + $0x178] sm:$0xff]  }
   0xe   :  { %1061 = vmatprep.subr.bf16.mxu1 %v1155_v14  ;;  %v32_v35 = vrot.slane %v21_v33, 5  ;;  %v34_v36 = vrot.slane %v22_v34, 5  ;;  %v1177_v42 = vld [vmem:[%s1486_s1 + $0x1b8] sm:$0xff]   ;;  %vm1337_vm7 = vmor %vm165_vm3, %vm166_vm4  ;;  %v23_v8 = vld [vmem:[%s1487_s0 + $0x8] sm:$0xf] }
   0xf   :  { %vm1344_vm8 = vmor %vm140_vm5, %vm141_vm6  ;;  %v1175_v7 = vld [vmem:[%s1486_s1 + $0x138] sm:$0xff]   ;;  %v1176_v12 = vld [vmem:[%s1486_s1 + $0x170] sm:$0xff]   ;;  %v37_v14 = vrot.slane %v23_v8, 5 }
  0x10   :  { %1034 = vmatpush3.bf16.msra.mxu0 %v1156_v15  ;;  %v33_v39 = vrot.slane %v32_v35, 4  ;;  %v36_v40 = vrot.slane %v34_v36, 4  ;;  %48 = vst [vmem:[#allocation2] sm:$0x8] %v32_v35  ;;  %v24_v13 = vld [vmem:[%s1487_s0 + $0xc] sm:$0xf] }
  0x11   :  { %1062 = vmatpush3.bf16.msra.mxu1 %v1157_v16  ;;  %1035 = vmatprep.subr.bf16.mxu0 %v1158_v17  ;;  %v1180_v16 = vld [vmem:[%s1486_s1 + $0x1b0] sm:$0xff]   ;;  %v39_v17 = vrot.slane %v24_v13, 5  ;;  %51 = vst [vmem:[#allocation2 + $0x10] sm:$0x8] %v37_v14  ;;  %v1190_v35 = vld [vmem:[%s1486_s1 + $0x198] sm:$0xff]  }
  0x12   :  { %1063 = vmatprep.subr.bf16.mxu1 %v1159_v18  ;;  %v35_v41 = vsel %vm1323_vm2, %v33_v39, %v34_v36  ;;  %50 = vst [vmem:[#allocation2 + $0x8] sm:$0x7] %v36_v40  ;;  %v1178_v18 = vld [vmem:[%s1486_s1 + $0x130] sm:$0xff]  }
  0x13   :  { %49 = vst [vmem:[#allocation2 + $0x4] sm:$0xf] %v35_v41  ;;  %v1189_v53 = vld [vmem:[%s1486_s1 + $0x150] sm:$0xff]  }
  0x14   :  { %1036 = vmatpush3.bf16.msra.mxu0 %v1160_v19  ;;  %v38_v19 = vrot.slane %v37_v14, 4  ;;  %v1193_v13 = vld [vmem:[%s1486_s1 + $0x190] sm:$0xff]  }
  0x15   :  { %1064 = vmatpush3.bf16.msra.mxu1 %v1161_v20  ;;  %1037 = vmatprep.subr.bf16.mxu0 %v1162_v21  ;;  %v1179_v20 = vld [vmem:[%s1486_s1 + $0x168] sm:$0xff]   ;;  %v41_v21 = vrot.slane %v39_v17, 4 }
  0x16   :  { %1065 = vmatprep.subr.bf16.mxu1 %v1163_v22  ;;  %v40_v22 = vsel %vm1323_vm2, %v38_v19, %v39_v17 }
  0x17   :  { %v157_v43 = vld [vmem:[#allocation2] sm:$0x8]  ;;  %52 = vst [vmem:[#allocation2 + $0x14] sm:$0xf] %v40_v22  ;;  %53 = vst [vmem:[#allocation2 + $0x18] sm:$0x7] %v41_v21 }
  0x18   :  { %1038 = vmatpush3.bf16.msra.mxu0 %v1164_v23  ;;  %v58_v44 = vld [vmem:[#allocation2] sm:$0xe]  ;;  %v935_v46 = vrot.slane %v157_v43, 11  ;;  %v1183_v23 = vld [vmem:[%s1486_s1 + $0x1a8] sm:$0xff]   ;;  %v56_v40 = vld [vmem:[#allocation2 + $0x10] sm:$0xf] }
  0x19   :  { %1066 = vmatpush3.bf16.msra.mxu1 %v1165_v24  ;;  %1039 = vmatprep.subr.bf16.mxu0 %v1166_v25  ;;  %v132_v45 = vld [vmem:[#allocation2] sm:$0xc]  ;;  %v927_v47 = vrot.slane %v58_v44, 9  ;;  %v158_v49 = vld [vmem:[#allocation2 + $0x8] sm:$0x7] }
  0x1a   :  { %1067 = vmatprep.subr.bf16.mxu1 %v1167_v26  ;;  %v933_v48 = vrot.slane %v132_v45, 10  ;;  %v59_v50 = vld [vmem:[#allocation2 + $0x8] sm:$0x1]  ;;  %v1335_v52 = vld [vmem:[#allocation2 + $0x4] sm:$0xf]  ;;  %v173_v54 = vrot.slane %v158_v49, 7 }
  0x1b   :  { %v133_v51 = vld [vmem:[#allocation2 + $0x8] sm:$0x3]  ;;  %v73_v55 = vrot.slane %v59_v50, 5  ;;  %v54_v56 = vld [vmem:[#allocation2] sm:$0xf]  ;;  %v170_v57 = vrot.slane %v1335_v52, 7 }
  0x1c   :  { %1040 = vmatpush3.bf16.msra.mxu0 %v1168_v27  ;;  %v70_v58 = vrot.slane %v1335_v52, 5  ;;  %v145_v60 = vrot.slane %v1335_v52, 6  ;;  %v148_v61 = vrot.slane %v133_v51, 6  ;;  %v929_v6 = vcombine.low %v54_v56, %v1335_v52  ;;  %v1181_v24 = vld [vmem:[%s1486_s1 + $0x128] sm:$0xff]   ;;  %v1182_v25 = vld [vmem:[%s1486_s1 + $0x160] sm:$0xff]  }
  0x1d   :  { %1068 = vmatpush3.bf16.msra.mxu1 %v1169_v28  ;;  %1041 = vmatprep.subr.bf16.mxu0 %v1170_v29  ;;  %v171_v62 = vsel %vm1337_vm7, %v935_v46, %v170_v57  ;;  %v172_v63 = vrot.slane %v170_v57, 4  ;;  %v1186_v26 = vld [vmem:[%s1486_s1 + $0x1a0] sm:$0xff]   ;;  %v159_v27 = vld [vmem:[#allocation2 + $0x10] sm:$0x8]  ;;  %v523_v56 = vld [vmem:[#allocation2 + $0xc] sm:$0x1] }
  0x1e   :  { %1069 = vmatprep.subr.bf16.mxu1 %v1171_v30  ;;  %v71_v0 = vsel %vm1323_vm2, %v927_v47, %v70_v58  ;;  %v72_v1 = vrot.slane %v70_v58, 4  ;;  %v146_v2 = vsel %vm1344_vm8, %v933_v48, %v145_v60  ;;  %v147_v3 = vrot.slane %v145_v60, 4  ;;  %v60_v28 = vld [vmem:[#allocation2 + $0x10] sm:$0xe]  ;;  %v1184_v30 = vld [vmem:[%s1486_s1 + $0x120] sm:$0xff]  }
  0x1f   :  { %v174_v4 = vsel %vm1337_vm7, %v172_v63, %v173_v54  ;;  %v134_v29 = vld [vmem:[#allocation2 + $0x10] sm:$0xc]  ;;  %v928_v33 = vrot.slane %v60_v28, 9  ;;  %v1406_v36 = vld [vmem:[#allocation2 + $0x14] sm:$0xf] }
  0x20   :  { %1042 = vmatpush3.bf16.msra.mxu0 %v1172_v31  ;;  %v74_v5 = vsel %vm1323_vm2, %v72_v1, %v73_v55  ;;  %v939_v9 = vcombine.low %v171_v62, %v174_v4  ;;  %v149_v11 = vsel %vm1344_vm8, %v147_v3, %v148_v61  ;;  %v936_v31 = vrot.slane %v159_v27, 11  ;;  %v61_v39 = vld [vmem:[#allocation2 + $0x18] sm:$0x1]  ;;  %v1411_v48 = vld [vmem:[#allocation2 + $0x8] sm:$0xf] }
  0x21   :  { %1070 = vmatpush3.bf16.msra.mxu1 %v1173_v32  ;;  %1083 = vmatprep.subr.bf16.mxu0 %v1174_v38  ;;  %v931_v10 = vcombine.low %v71_v0, %v74_v5  ;;  %v937_v15 = vcombine.low %v146_v2, %v149_v11  ;;  %v1185_v32 = vld [vmem:[%s1486_s1 + $0x158] sm:$0xff]   ;;  %v934_v34 = vrot.slane %v134_v29, 10  ;;  %v177_v41 = vrot.slane %v1406_v36, 7  ;;  %v522_v49 = vld [vmem:[#allocation2 + $0x4] sm:$0xe]  ;;  %v1196_v27 = vld [vmem:[%s1486_s1 + $0x188] sm:$0xff]  }
  0x22   :  { %1121 = vmatprep.subr.bf16.mxu1 %v1177_v42  ;;  %358 = vmatprep.mubr.bf16.mxu0 %v939_v9  ;;  %v160_v38 = vld [vmem:[#allocation2 + $0x18] sm:$0x7]  ;;  %v77_v43 = vrot.slane %v1406_v36, 5  ;;  %v80_v44 = vrot.slane %v61_v39, 5  ;;  %v152_v46 = vrot.slane %v1406_v36, 6  ;;  %v973_v60 = vrot.slane %v522_v49, 9 }
  0x23   :  { %503 = vmatprep.mubr.bf16.mxu1 %v931_v10  ;;  %359 = vmatmul.mubr.bf16.vlgmr.msra.gmra.mxu0 %v937_v15  ;;  %v135_v45 = vld [vmem:[#allocation2 + $0x18] sm:$0x3]  ;;  %v178_v50 = vsel %vm1337_vm7, %v936_v31, %v177_v41  ;;  %v179_v51 = vrot.slane %v177_v41, 4  ;;  %v534_v61 = vrot.slane %v1411_v48, 5  ;;  %v930_v1 = vcombine.low %v56_v40, %v1406_v36  ;;  %v741_v3 = vld [vmem:[#allocation2 + $0x4] sm:$0xc] }
  0x24   :  { %504 = vmatmul.mubr.bf16.vlgmr.msra.gmra.mxu1 %v929_v6  ;;  %1084 = vmatpush3.bf16.msra.mxu0 %v1175_v7  ;;  %v155_v47 = vrot.slane %v135_v45, 6  ;;  %v78_v54 = vsel %vm1323_vm2, %v928_v33, %v77_v43  ;;  %v79_v55 = vrot.slane %v77_v43, 4  ;;  %v153_v57 = vsel %vm1344_vm8, %v934_v34, %v152_v46  ;;  %v1187_v0 = vld [vmem:[%s1486_s1 + $0x118] sm:$0xff]   ;;  %v742_v4 = vld [vmem:[#allocation2 + $0xc] sm:$0x3]  ;;  %v1198_v41 = vld [vmem:[%s1486_s1 + $0x180] sm:$0xff]  }
  0x25   :  { %1122 = vmatpush3.bf16.msra.mxu1 %v1177_v42  ;;  %1085 = vmatprep.subr.bf16.mxu0 %v1176_v12  ;;  %v180_v42 = vrot.slane %v160_v38, 7  ;;  %v154_v58 = vrot.slane %v152_v46, 4  ;;  %v537_v2 = vrot.slane %v523_v56, 5  ;;  %v535_v8 = vsel %vm1323_vm2, %v973_v60, %v534_v61  ;;  %v521_v15 = vld [vmem:[#allocation2 + $0x18] sm:$0xf]  ;;  %v1194_v31 = vld [vmem:[%s1486_s1 + $0x108] sm:$0xff]  }
  0x26   :  { %1123 = vmatprep.subr.bf16.mxu1 %v1180_v16  ;;  %v81_v63 = vsel %vm1323_vm2, %v79_v55, %v80_v44  ;;  %v536_v10 = vrot.slane %v534_v61, 4  ;;  %v995_v11 = vrot.slane %v741_v3, 10  ;;  %v751_v12 = vrot.slane %v1411_v48, 6  ;;  %v743_v29 = vld [vmem:[#allocation2 + $0x14] sm:$0xc] }
  0x27   :  { %v181_v62 = vsel %vm1337_vm7, %v179_v51, %v180_v42  ;;  %v932_v6 = vcombine.low %v78_v54, %v81_v63  ;;  %v156_v7 = vsel %vm1344_vm8, %v154_v58, %v155_v47  ;;  %v754_v14 = vrot.slane %v742_v4, 6  ;;  %v1197_v42 = vld [vmem:[%s1486_s1 + $0x100] sm:$0xff]  }
  0x28   :  { %1086 = vmatpush3.bf16.msra.mxu0 %v1178_v18  ;;  %v940_v5 = vcombine.low %v178_v50, %v181_v62  ;;  %v938_v9 = vcombine.low %v153_v57, %v156_v7  ;;  %v538_v17 = vsel %vm1323_vm2, %v536_v10, %v537_v2  ;;  %v752_v18 = vsel %vm1344_vm8, %v995_v11, %v751_v12 }
  0x29   :  { %1124 = vmatpush3.bf16.msra.mxu1 %v1180_v16  ;;  %1087 = vmatprep.subr.bf16.mxu0 %v1179_v20  ;;  %v1191_v16 = vld [vmem:[%s1486_s1 + $0x110] sm:$0xff]   ;;  %v753_v19 = vrot.slane %v751_v12, 4  ;;  %v1192_v20 = vld [vmem:[%s1486_s1 + $0x148] sm:$0xff]   ;;  %v977_v21 = vcombine.low %v535_v8, %v538_v17  ;;  %v541_v22 = vrot.slane %v521_v15, 5  ;;  %v996_v38 = vrot.slane %v743_v29, 10 }
  0x2a   :  { %1125 = vmatprep.subr.bf16.mxu1 %v1183_v23  ;;  %366 = vmatprep.mubr.bf16.mxu0 %v940_v5  ;;  %v975_v47 = vcombine.low %v1335_v52, %v1411_v48  ;;  %v976_v37 = vcombine.low %v1406_v36, %v521_v15 }
  0x2b   :  { %511 = vmatprep.mubr.bf16.mxu1 %v932_v6  ;;  %367 = vmatmul.mubr.bf16.gmra.mxu0 %v938_v9  ;;  %v543_v34 = vrot.slane %v541_v22, 4 }
  0x2c   :  { %1088 = vmatpush3.bf16.msra.mxu0 %v1181_v24  ;;  %512 = vmatmul.mubr.bf16.gmra.mxu1 %v930_v1  ;;  %v758_v24 = vrot.slane %v521_v15, 6 }
  0x2d   :  { %1126 = vmatpush3.bf16.msra.mxu1 %v1183_v23  ;;  %1089 = vmatprep.subr.bf16.mxu0 %v1182_v25  ;;  %v755_v23 = vsel %vm1344_vm8, %v753_v19, %v754_v14  ;;  %v524_v25 = vld [vmem:[#allocation2 + $0x14] sm:$0xe] }
  0x2e   :  { %1127 = vmatprep.subr.bf16.mxu1 %v1186_v26  ;;  %720 = vmatprep.mubr.bf16.mxu0 %v977_v21  ;;  %v997_v28 = vcombine.low %v752_v18, %v755_v23  ;;  %v974_v33 = vrot.slane %v524_v25, 9  ;;  %v760_v39 = vrot.slane %v758_v24, 4  ;;  %v759_v45 = vsel %vm1344_vm8, %v996_v38, %v758_v24 }
  0x30   :  { %1090 = vmatpush3.bf16.msra.mxu0 %v1184_v30  ;;  %v744_v30 = vld [vmem:[#allocation2 + $0x1c] sm:$0x3]  ;;  %1137 = vmatprep.mubr.bf16.mxu1 %v997_v28  ;;  %v542_v43 = vsel %vm1323_vm2, %v974_v33, %v541_v22 }
  0x31   :  { %1128 = vmatpush3.bf16.msra.mxu1 %v1186_v26  ;;  %1091 = vmatprep.subr.bf16.mxu0 %v1185_v32  ;;  %v525_v26 = vld [vmem:[#allocation2 + $0x1c] sm:$0x1]  ;;  %v1195_v32 = vld [vmem:[%s1486_s1 + $0x140] sm:$0xff]   ;;  %v761_v40 = vrot.slane %v744_v30, 6 }
  0x32   :  { %1129 = vmatprep.subr.bf16.mxu1 %v1190_v35 }
  0x33   :  { %v762_v46 = vsel %vm1344_vm8, %v760_v39, %v761_v40 }
  0x34   :  { %1092 = vmatpush3.bf16.msra.mxu0 %v1187_v0  ;;  %v998_v50 = vcombine.low %v759_v45, %v762_v46 }
  0x35   :  { %1093 = vmatprep.subr.bf16.mxu0 %v1189_v53  ;;  %1130 = vmatpush3.bf16.msra.mxu1 %v1190_v35  ;;  %v544_v35 = vrot.slane %v525_v26, 5 }
  0x36   :  { %1131 = vmatprep.subr.bf16.mxu1 %v1193_v13 }
  0x37   :  { %v545_v44 = vsel %vm1323_vm2, %v543_v34, %v544_v35 }
  0x38   :  { %1094 = vmatpush3.bf16.msra.mxu0 %v1191_v16  ;;  %v978_v49 = vcombine.low %v542_v43, %v545_v44 }
  0x39   :  { %1095 = vmatprep.subr.bf16.mxu0 %v1192_v20  ;;  %1132 = vmatpush3.bf16.msra.mxu1 %v1193_v13  ;;  %v1007_v20 = vld [vmem:[%s1488_s2] ss:$0 sm:$0xff] }
  0x3a   :  { %1133 = vmatprep.subr.bf16.mxu1 %v1196_v27 }
  0x3c   :  { %1096 = vmatpush3.bf16.msra.mxu0 %v1194_v31 }
  0x3d   :  { %1097 = vmatprep.subr.bf16.mxu0 %v1195_v32  ;;  %1134 = vmatpush3.bf16.msra.mxu1 %v1196_v27 }
  0x3e   :  { %1135 = vmatprep.subr.bf16.mxu1 %v1198_v41 }
  0x40   :  { %1098 = vmatpush3.bf16.msra.mxu0 %v1197_v42 }
  0x41   :  { %1136 = vmatpush3.bf16.msra.mxu1 %v1198_v41 }
  0x43   :  { %721 = vmatmul.mubr.bf16.vlgmr.msra.gmra.mxu0 %v975_v47 }
  0x44   :  { %728 = vmatprep.mubr.bf16.mxu0 %v978_v49  ;;  %1138 = vmatmul.mubr.bf16.vlgmr.msra.gmra.mxu1 %v998_v50 }
  0x4b   :  { %729 = vmatmul.mubr.bf16.gmra.mxu0 %v976_v37 }
  0xe3   :  { %v1043_v51 = vpop.f32.mrf.mxu0 }
  0xe4   :  { %v1071_v54 = vpop.f32.mrf.mxu1 }
  0xe5   :  { %v1044_v55 = vpop.f32.mrf.mxu0 }
  0xe6   :  { %v1072_v56 = vpop.f32.mrf.mxu1  ;;  %v1045_v2 = vadd.f32 %v1044_v55, %v1043_v51 }
  0xe7   :  { %v1046_v59 = vpop.f32.mrf.mxu0  ;;  %v1073_v3 = vadd.f32 %v1072_v56, %v1071_v54 }
  0xe8   :  { %v1074_v57 = vpop.f32.mrf.mxu1 }
  0xe9   :  { %v1047_v58 = vpop.f32.mrf.mxu0  ;;  %v506_v8 = vadd.f32 %v1073_v3, %v1045_v2 }
  0xea   :  { %v1075_v60 = vpop.f32.mrf.mxu1  ;;  %v1048_v5 = vadd.f32 %v1047_v58, %v1046_v59 }
  0xeb   :  { %v1049_v52 = vpop.f32.mrf.mxu0  ;;  %v1076_v6 = vadd.f32 %v1075_v60, %v1074_v57 }
  0xec   :  { %v1077_v48 = vpop.f32.mrf.mxu1 }
  0xed   :  { %v1050_v61 = vpop.f32.mrf.mxu0  ;;  %v509_v13 = vadd.f32 %v1076_v6, %v1048_v5 }
  0xee   :  { %v1078_v62 = vpop.f32.mrf.mxu1  ;;  %v1051_v16 = vadd.f32 %v1050_v61, %v1049_v52 }
  0xef   :  { %v1052_v63 = vpop.f32.mrf.mxu0  ;;  %v1079_v17 = vadd.f32 %v1078_v62, %v1077_v48 }
  0xf0   :  { %v1080_v0 = vpop.f32.mrf.mxu1 }
  0xf1   :  { %v1053_v1 = vpop.f32.mrf.mxu0  ;;  %v514_v27 = vadd.f32 %v1079_v17, %v1051_v16 }
  0xf2   :  { %v1081_v4 = vpop.f32.mrf.mxu1  ;;  %v1054_v24 = vadd.f32 %v1053_v1, %v1052_v63 }
  0xf3   :  { %v1082_v25 = vadd.f32 %v1081_v4, %v1080_v0 }
  0xf5   :  { %v517_v34 = vadd.f32 %v1082_v25, %v1054_v24 }
 0x103   :  { %v1099_v36 = vpop.f32.mrf.mxu0 }
 0x104   :  { %v1139_v53 = vpop.f32.mrf.mxu1 }
 0x105   :  { %v1100_v7 = vpop.f32.mrf.mxu0 }
 0x106   :  { %v1101_v9 = vadd.f32 %v1100_v7, %v1099_v36  ;;  %v869_v11 = vpop.f32.mrf.mxu1 }
 0x107   :  { %v1102_v10 = vpop.f32.mrf.mxu0 }
 0x108   :  { %v737_v12 = vadd.f32 %v1101_v9, %v506_v8  ;;  %v1140_v15 = vpop.f32.mrf.mxu1 }
 0x109   :  { %v1103_v14 = vpop.f32.mrf.mxu0 }
 0x10a   :  { %v1104_v18 = vadd.f32 %v1103_v14, %v1102_v10  ;;  %v884_v19 = vadd.f32 %v869_v11, %v737_v12  ;;  %v872_v22 = vpop.f32.mrf.mxu1 }
 0x10b   :  { %v1105_v21 = vpop.f32.mrf.mxu0 }
 0x10c   :  { %v738_v23 = vadd.f32 %v1104_v18, %v509_v13  ;;  %v895_v28 = vadd.f32 %v1007_v20, %v884_v19 }
 0x10d   :  { %v1106_v26 = vpop.f32.mrf.mxu0 }
 0x10e   :  { %v1107_v29 = vadd.f32 %v1106_v26, %v1105_v21  ;;  %v885_v30 = vadd.f32 %v872_v22, %v738_v23  ;;  %v899_v38 = vmax.f32 %v895_v28, 0.0 }
 0x10f   :  { %v1108_v31 = vpop.f32.mrf.mxu0 }
 0x110   :  { %v739_v32 = vadd.f32 %v1107_v29, %v514_v27  ;;  %v896_v33 = vadd.f32 %v1007_v20, %v885_v30 }
 0x111   :  { %v1109_v35 = vpop.f32.mrf.mxu0 }
 0x112   :  { %v886_v39 = vadd.f32 %v1139_v53, %v739_v32  ;;  %v900_v40 = vmax.f32 %v896_v33, 0.0  ;;  %v1110_v41 = vadd.f32 %v1109_v35, %v1108_v31 }
 0x114   :  { %v1019_v42 = vpack.c.bf16 %v900_v40, %v899_v38  ;;  %v740_v43 = vadd.f32 %v1110_v41, %v517_v34  ;;  %v897_v44 = vadd.f32 %v1007_v20, %v886_v39 }
 0x116   :  { %1020 = vst [vmem:[%s1489_s3] sm:$0xff] %v1019_v42   ;;  %v887_v45 = vadd.f32 %v1140_v15, %v740_v43  ;;  %v901_v47 = vmax.f32 %v897_v44, 0.0 }
 0x118   :  { %v898_v46 = vadd.f32 %v1007_v20, %v887_v45 }
 0x11a   :  { %v902_v49 = vmax.f32 %v898_v46, 0.0 }
 0x11c   :  { %v1024_v50 = vpack.c.bf16 %v902_v49, %v901_v47 }
 0x11e   :  { %1026 = vst [vmem:[%s1489_s3 + $0x8] sm:$0xff] %v1024_v50  }

// kernel: _lambda_.5
= control target key start
LH: loop header
LB: loop body
LE: loop exit
PB: predicated region body
PF: predicated region fallthrough
CT: control target
= control target key end

     0   :  { %12 = vsyncpa [#allocation5], 0  ;;  %s2459_s0 = inlined_call_operand.vmem [shape: bf16[2,16,128], index: 0, kind: input, shape index: {}]   ;;  %s2460_s1 = inlined_call_operand.hbm [shape: bf16[640,128], index: 1, kind: input, shape index: {}]   ;;  %s2461_s2 = inlined_call_operand.vmem [shape: f32[1,128], index: 2, kind: input, shape index: {}]   ;;  %s2462_s3 = inlined_call_operand.hbm [shape: bf16[640,128], index: 3, kind: input, shape index: {}]   ;;  %s2463_s4 = inlined_call_operand.vmem [shape: f32[1,128], index: 4, kind: input, shape index: {}]   ;;  %s2464_s5 = inlined_call_operand.vmem [shape: bf16[128,128], index: 5, kind: input, shape index: {}]   ;;  %s2465_s6 = inlined_call_operand.vmem [shape: f32[1,128], index: 6, kind: input, shape index: {}]   ;;  %s2466_s7 = inlined_call_operand.vmem [shape: bf16[2,16,128], index: 7, kind: output, shape index: {}]  }
   0x1   :  { %13 = vsyncpa [#allocation7], 0  ;;  %s2144_s24 = smov [#allocation4]  }
   0x2   :  { %s21_s25 = sshll.u32 %s2144_s24, 4  ;;  %s22_s25 = int_to_ptr.vmem [resolvable:$true] %s21_s25 }
   0x3   :  { %s2108_s26 = scalar_lea.vmem %s22_s25, 5120  ;;  %p2113_p1 = scmp.lt.s32.totalorder %s22_s25, %s22_s25 }
   0x4   :  { %p2109_p0 = scmp.ne.s32.totalorder %s22_s25, %s2108_s26  ;;  %p2114_p2 = scmp.lt.s32.totalorder %s2108_s26, %s2108_s26 }
   0x6   :  { %p2115_p3 = por %p2114_p2, %p2113_p1 }
   0x8   :  { %p2116_p4 = pnand %p2115_p3, %p2109_p0 }
   0xa   :  { %2119 = shalt.err (!%p2116_p4)
}
   0xb   :  { %s2145_s27 = smov 64   ;;  %s2146_s28 = smov 4  }
   0xc   :  { %27 = dma.hbm_to_vmem [thread:$0]  %s2460_s1, 5120, %s22_s25, [#allocation5], %s2145_s27, %s2145_s27, %s2146_s28  }
   0xd   :  { %s2147_s8 = smov [#allocation6]  }
   0xe   :  { %s35_s9 = sshll.u32 %s2147_s8, 4  ;;  %s36_s9 = int_to_ptr.vmem [resolvable:$true] %s35_s9 }
   0xf   :  { %s2128_s10 = scalar_lea.vmem %s36_s9, 5120  ;;  %p2133_p6 = scmp.lt.s32.totalorder %s36_s9, %s36_s9 }
  0x10   :  { %p2129_p5 = scmp.ne.s32.totalorder %s36_s9, %s2128_s10  ;;  %p2134_p7 = scmp.lt.s32.totalorder %s2128_s10, %s2128_s10 }
  0x12   :  { %p2135_p8 = por %p2134_p7, %p2133_p6 }
  0x14   :  { %p2136_p9 = pnand %p2135_p8, %p2129_p5 }
  0x16   :  { %2139 = shalt.err (!%p2136_p9)
}
  0x17   :  { %41 = dma.hbm_to_vmem [thread:$0]  %s2462_s3, 5120, %s36_s9, [#allocation7], %s2145_s27, %s2145_s27, %s2146_s28  }
  0x18   :  { %2140 = dma.done.wait [#allocation5], 5120  }
  0x19   :  { %2141 = vsyncadd [#allocation5], 4294962176 }
  0x1a   :  { %2142 = dma.done.wait [#allocation7], 5120  }
  0x1b   :  { %2143 = vsyncadd [#allocation7], 4294962176  ;;  %v2148_v0 = vmov 0   ;;  %v2007_v1 = vld [vmem:[#allocation4 + $0xf8] sm:$0xff]   ;;  %v2011_v5 = vld [vmem:[#allocation4 + $0xf0] sm:$0xff]   ;;  %vm71_vm0 = vcmask 1040384  }
  0x1c   :  { %57 = vst [vmem:[#allocation2 + $0x8] sm:$0x2] %v2148_v0  ;;  %55 = vst [vmem:[#allocation2] sm:$0x1] %v2148_v0  ;;  %v2008_v2 = vld [vmem:[#allocation4 + $0x78] sm:$0xff]   ;;  %1800 = vmatprep.subr.bf16.mxu0 %v2007_v1  ;;  %v2012_v6 = vld [vmem:[#allocation4 + $0x70] sm:$0xff]  }
  0x1d   :  { %56 = vst [vmem:[#allocation2 + $0xc] sm:$0x1] %v2148_v0  ;;  %58 = vst [vmem:[#allocation2 + $0x14] sm:$0x2] %v2148_v0  ;;  %v2009_v3 = vld [vmem:[#allocation4 + $0xb8] sm:$0xff]   ;;  %1828 = vmatprep.subr.bf16.mxu1 %v2008_v2  ;;  %v2013_v7 = vld [vmem:[#allocation4 + $0xb0] sm:$0xff]  }
  0x1e   :  { %59 = vst [vmem:[#allocation3] sm:$0x1] %v2148_v0  ;;  %60 = vst [vmem:[#allocation3 + $0xc] sm:$0x1] %v2148_v0  ;;  %v2010_v4 = vld [vmem:[#allocation4 + $0x38] sm:$0xff]   ;;  %1801 = vmatpush3.bf16.msra.mxu0 %v2009_v3  ;;  %v2014_v8 = vld [vmem:[#allocation4 + $0x30] sm:$0xff]  }
  0x1f   :  { %61 = vst [vmem:[#allocation3 + $0x8] sm:$0x2] %v2148_v0  ;;  %62 = vst [vmem:[#allocation3 + $0x14] sm:$0x2] %v2148_v0  ;;  %1829 = vmatpush3.bf16.msra.mxu1 %v2010_v4  ;;  %1802 = vmatprep.subr.bf16.mxu0 %v2011_v5  ;;  %v2015_v9 = vld [vmem:[#allocation4 + $0xe8] sm:$0xff]   ;;  %v2019_v13 = vld [vmem:[#allocation4 + $0xe0] sm:$0xff]  }
  0x20   :  { %1830 = vmatprep.subr.bf16.mxu1 %v2012_v6  ;;  %v2016_v10 = vld [vmem:[#allocation4 + $0x68] sm:$0xff]   ;;  %v2020_v14 = vld [vmem:[#allocation4 + $0x60] sm:$0xff]   ;;  %v2023_v17 = vld [vmem:[#allocation4 + $0xd8] sm:$0xff]   ;;  %vm72_vm1 = vcmask 1044484   ;;  %vm230_vm3 = vsmask.f32 2304 }
  0x21   :  { %v2017_v11 = vld [vmem:[#allocation4 + $0xa8] sm:$0xff]   ;;  %v2021_v15 = vld [vmem:[#allocation4 + $0xa0] sm:$0xff]   ;;  %v2024_v18 = vld [vmem:[#allocation4 + $0x58] sm:$0xff]   ;;  %vm231_vm4 = vsmask.f32 6416  ;;  %vm211_vm6 = vcmask 1042432  }
  0x22   :  { %1803 = vmatpush3.bf16.msra.mxu0 %v2013_v7  ;;  %v2018_v12 = vld [vmem:[#allocation4 + $0x28] sm:$0xff]   ;;  %v2022_v16 = vld [vmem:[#allocation4 + $0x20] sm:$0xff]   ;;  %v2025_v19 = vld [vmem:[#allocation4 + $0x98] sm:$0xff]   ;;  %vm102_vm5 = vsmask.f32 3328  ;;  %vm212_vm8 = vcmask 1046532  }
  0x23   :  { %1831 = vmatpush3.bf16.msra.mxu1 %v2014_v8  ;;  %1804 = vmatprep.subr.bf16.mxu0 %v2015_v9  ;;  %v2026_v20 = vld [vmem:[#allocation4 + $0x18] sm:$0xff]   ;;  %v2027_v21 = vld [vmem:[#allocation4 + $0xd0] sm:$0xff]   ;;  %v2031_v25 = vld [vmem:[#allocation4 + $0xc8] sm:$0xff]   ;;  %vm103_vm7 = vsmask.f32 7440  ;;  %vm623_vm12 = vcmask 1041408  }
  0x24   :  { %1832 = vmatprep.subr.bf16.mxu1 %v2016_v10  ;;  %v2028_v22 = vld [vmem:[#allocation4 + $0x50] sm:$0xff]   ;;  %v2032_v26 = vld [vmem:[#allocation4 + $0x48] sm:$0xff]   ;;  %v2035_v29 = vld [vmem:[#allocation4 + $0xc0] sm:$0xff]   ;;  %vm624_vm13 = vcmask 1045508  }
  0x25   :  { %v2029_v23 = vld [vmem:[#allocation4 + $0x90] sm:$0xff]   ;;  %v2033_v27 = vld [vmem:[#allocation4 + $0x88] sm:$0xff]   ;;  %v2036_v30 = vld [vmem:[#allocation4 + $0x40] sm:$0xff]  }
  0x26   :  { %1805 = vmatpush3.bf16.msra.mxu0 %v2017_v11  ;;  %v2030_v24 = vld [vmem:[#allocation4 + $0x10] sm:$0xff]   ;;  %v2034_v28 = vld [vmem:[#allocation4 + $0x8] sm:$0xff]   ;;  %v2037_v31 = vld [vmem:[#allocation4 + $0x80] sm:$0xff]  }
  0x27   :  { %1833 = vmatpush3.bf16.msra.mxu1 %v2018_v12  ;;  %1806 = vmatprep.subr.bf16.mxu0 %v2019_v13  ;;  %v2038_v32 = vld [vmem:[#allocation4] sm:$0xff]   ;;  %v63_v33 = vld [vmem:[%s2459_s0] sm:$0xf]  ;;  %v64_v34 = vld [vmem:[%s2459_s0 + $0x4] sm:$0xf] }
  0x28   :  { %1834 = vmatprep.subr.bf16.mxu1 %v2020_v14  ;;  %vm2201_vm2 = vmor %vm71_vm0, %vm72_vm1  ;;  %v74_v36 = vrot.slane %v63_v33, 7  ;;  %v76_v37 = vrot.slane %v64_v34, 7  ;;  %v2205_v38 = vld [vmem:[#allocation4 + $0x138] sm:$0xff]  }
  0x29   :  { %v65_v42 = vld [vmem:[%s2459_s0 + $0x8] sm:$0xf]  ;;  %v66_v43 = vld [vmem:[%s2459_s0 + $0xc] sm:$0xf]  ;;  %vm2232_vm9 = vmor %vm230_vm3, %vm231_vm4 }
  0x2a   :  { %1807 = vmatpush3.bf16.msra.mxu0 %v2021_v15  ;;  %v75_v39 = vrot.slane %v74_v36, 4  ;;  %v78_v40 = vrot.slane %v76_v37, 4  ;;  %90 = vst [vmem:[#allocation2] sm:$0xe] %v74_v36  ;;  %v79_v44 = vrot.slane %v65_v42, 7  ;;  %v81_v45 = vrot.slane %v66_v43, 7  ;;  %vm2238_vm10 = vmor %vm102_vm5, %vm103_vm7 }
  0x2b   :  { %1835 = vmatpush3.bf16.msra.mxu1 %v2022_v16  ;;  %1808 = vmatprep.subr.bf16.mxu0 %v2023_v17  ;;  %vm2244_vm11 = vmor %vm211_vm6, %vm212_vm8  ;;  %v2089_v17 = vld [vmem:[%s2464_s5 + $0x20] sm:$0xff]  }
  0x2c   :  { %1836 = vmatprep.subr.bf16.mxu1 %v2024_v18  ;;  %v77_v41 = vsel %vm2201_vm2, %v75_v39, %v76_v37  ;;  %92 = vst [vmem:[#allocation2 + $0x8] sm:$0x1] %v78_v40  ;;  %v80_v46 = vrot.slane %v79_v44, 4  ;;  %93 = vst [vmem:[#allocation2 + $0xc] sm:$0xe] %v79_v44  ;;  %v83_v47 = vrot.slane %v81_v45, 4 }
  0x2d   :  { %91 = vst [vmem:[#allocation2 + $0x4] sm:$0xf] %v77_v41  ;;  %vm2287_vm14 = vmor %vm623_vm12, %vm624_vm13 }
  0x2e   :  { %1809 = vmatpush3.bf16.msra.mxu0 %v2025_v19  ;;  %v82_v50 = vsel %vm2201_vm2, %v80_v46, %v81_v45  ;;  %95 = vst [vmem:[#allocation2 + $0x14] sm:$0x1] %v83_v47 }
  0x2f   :  { %1837 = vmatpush3.bf16.msra.mxu1 %v2026_v20  ;;  %1810 = vmatprep.subr.bf16.mxu0 %v2027_v21  ;;  %94 = vst [vmem:[#allocation2 + $0x10] sm:$0xf] %v82_v50 }
  0x30   :  { %1838 = vmatprep.subr.bf16.mxu1 %v2028_v22 }
  0x31   :  { %v205_v48 = vld [vmem:[#allocation2] sm:$0xe] }
  0x32   :  { %1811 = vmatpush3.bf16.msra.mxu0 %v2029_v23  ;;  %v2216_v49 = vld [vmem:[#allocation2] sm:$0xf]  ;;  %v234_v51 = vshrl.u32 %v205_v48, 16  ;;  %v237_v52 = vshll.u32 %v205_v48, 16  ;;  %v1656_v57 = vrot.slane %v205_v48, 9 }
  0x33   :  { %1839 = vmatpush3.bf16.msra.mxu1 %v2030_v24  ;;  %1812 = vmatprep.subr.bf16.mxu0 %v2031_v25  ;;  %v106_v53 = vshrl.u32 %v2216_v49, 16  ;;  %v109_v54 = vshll.u32 %v2216_v49, 16  ;;  %v2222_v55 = vld [vmem:[#allocation2 + $0x8] sm:$0x3]  ;;  %v2248_v18 = vld [vmem:[#allocation2 + $0xc] sm:$0xe] }
  0x34   :  { %1840 = vmatprep.subr.bf16.mxu1 %v2032_v26  ;;  %v100_v56 = vld [vmem:[#allocation2 + $0x8] sm:$0x1]  ;;  %v2224_v58 = vld [vmem:[#allocation2 + $0x4] sm:$0xf]  ;;  %v236_v59 = vrot.slane %v234_v51, 5  ;;  %v239_v60 = vrot.slane %v237_v52, 6 }
  0x35   :  { %v248_v61 = vshrl.u32 %v2222_v55, 16  ;;  %v251_v62 = vshll.u32 %v2222_v55, 16  ;;  %v115_v63 = vshll.u32 %v2224_v58, 16  ;;  %v119_v0 = vshrl.u32 %v2224_v58, 16  ;;  %v2265_v33 = vld [vmem:[#allocation2 + $0xc] sm:$0xf] }
  0x36   :  { %1813 = vmatpush3.bf16.msra.mxu0 %v2033_v27  ;;  %v108_v1 = vrot.slane %v106_v53, 4  ;;  %v111_v2 = vrot.slane %v109_v54, 5  ;;  %v240_v4 = vor.u32 %v239_v60, %v236_v59  ;;  %v125_v7 = vshll.u32 %v100_v56, 16  ;;  %v2251_v23 = vld [vmem:[#allocation2 + $0x10] sm:$0xf]  ;;  %v2040_v52 = vld [vmem:[#allocation4 + $0x130] sm:$0xff]  }
  0x37   :  { %1841 = vmatpush3.bf16.msra.mxu1 %v2034_v28  ;;  %1814 = vmatprep.subr.bf16.mxu0 %v2035_v29  ;;  %v250_v5 = vrot.slane %v248_v61, 5  ;;  %v253_v6 = vrot.slane %v251_v62, 6  ;;  %v242_v8 = vrot.slane %v119_v0, 5  ;;  %v243_v9 = vrot.slane %v115_v63, 6  ;;  %v2257_v28 = vld [vmem:[#allocation2 + $0x14] sm:$0x3] }
  0x38   :  { %1842 = vmatprep.subr.bf16.mxu1 %v2036_v30  ;;  %v112_v11 = vor.u32 %v111_v2, %v108_v1  ;;  %v117_v12 = vrot.slane %v115_v63, 5  ;;  %v241_v13 = vrot.slane %v240_v4, 4  ;;  %v121_v15 = vrot.slane %v119_v0, 4  ;;  %v2267_v34 = vld [vmem:[#allocation2] sm:$0xc]  ;;  %v2041_v61 = vld [vmem:[#allocation4 + $0x128] sm:$0xff]  }
  0x39   :  { %v254_v14 = vor.u32 %v253_v6, %v250_v5  ;;  %v127_v16 = vrot.slane %v125_v7, 5  ;;  %v244_v19 = vor.u32 %v243_v9, %v242_v8  ;;  %v219_v21 = vrot.slane %v100_v56, 5  ;;  %v101_v45 = vld [vmem:[#allocation2 + $0x14] sm:$0x1] }
  0x3a   :  { %1815 = vmatpush3.bf16.msra.mxu0 %v2037_v31  ;;  %v113_v20 = vrot.slane %v112_v11, 4  ;;  %v216_v22 = vrot.slane %v2224_v58, 5  ;;  %v122_v24 = vor.u32 %v121_v15, %v117_v12  ;;  %v1652_v25 = vcombine.low %v2216_v49, %v2224_v58 }
  0x3b   :  { %1843 = vmatpush3.bf16.msra.mxu1 %v2038_v32  ;;  %1942 = vmatprep.subr.bf16.mxu0 %v2205_v38  ;;  %v139_v26 = vshll.u32 %v2251_v23, 16  ;;  %v143_v27 = vshrl.u32 %v2251_v23, 16  ;;  %v245_v29 = vsel %vm2232_vm9, %v241_v13, %v244_v19  ;;  %v246_v30 = vrot.slane %v244_v19, 4 }
  0x3c   :  { %v118_v31 = vsel %vm2238_vm10, %v113_v20, %v117_v12  ;;  %v217_v32 = vsel %vm2244_vm11, %v1656_v57, %v216_v22  ;;  %v123_v36 = vrot.slane %v122_v24, 4  ;;  %v218_v37 = vrot.slane %v216_v22, 4 }
  0x3d   :  { %v257_v39 = vshrl.u32 %v2248_v18, 16  ;;  %v260_v40 = vshll.u32 %v2248_v18, 16  ;;  %v255_v41 = vsel %vm2232_vm9, %v246_v30, %v254_v14  ;;  %v265_v42 = vrot.slane %v143_v27, 5 }
  0x3e   :  { %v266_v43 = vrot.slane %v139_v26, 6  ;;  %v271_v44 = vshrl.u32 %v2257_v28, 16  ;;  %v1660_v46 = vcombine.low %v245_v29, %v255_v41  ;;  %v128_v47 = vsel %vm2238_vm10, %v123_v36, %v127_v16 }
  0x3f   :  { %v220_v48 = vsel %vm2244_vm11, %v218_v37, %v219_v21  ;;  %v259_v49 = vrot.slane %v257_v39, 5  ;;  %v1654_v50 = vcombine.low %v118_v31, %v128_v47  ;;  %v262_v53 = vrot.slane %v260_v40, 6  ;;  %v2043_v39 = vld [vmem:[#allocation4 + $0x118] sm:$0xff]   ;;  %v2046_v47 = vld [vmem:[#allocation4 + $0x108] sm:$0xff]  }
  0x40   :  { %v1658_v51 = vcombine.low %v217_v32, %v220_v48  ;;  %v267_v54 = vor.u32 %v266_v43, %v265_v42  ;;  %455 = vmatprep.mubr.bf16.mxu0 %v1660_v46  ;;  %v273_v56 = vrot.slane %v271_v44, 5  ;;  %v274_v57 = vshll.u32 %v2257_v28, 16 }
  0x41   :  { %v130_v59 = vshrl.u32 %v2265_v33, 16  ;;  %v1694_v60 = vrot.slane %v2267_v34, 10  ;;  %600 = vmatprep.mubr.bf16.mxu1 %v1654_v50  ;;  %v263_v62 = vor.u32 %v262_v53, %v259_v49  ;;  %v133_v0 = vshll.u32 %v2265_v33, 16  ;;  %v2048_v50 = vld [vmem:[#allocation6 + $0xf8] sm:$0xff]  }
  0x42   :  { %456 = vmatmul.mubr.bf16.vlgmr.msra.gmra.mxu0 %v1658_v51  ;;  %v269_v63 = vrot.slane %v267_v54, 4  ;;  %v141_v1 = vrot.slane %v139_v26, 5  ;;  %601 = vmatmul.mubr.bf16.vlgmr.msra.gmra.mxu1 %v1652_v25  ;;  %v276_v2 = vrot.slane %v274_v57, 6  ;;  %v145_v5 = vrot.slane %v143_v27, 4  ;;  %v618_v26 = vld [vmem:[#allocation2 + $0xc] sm:$0xc] }
  0x43   :  { %1943 = vmatpush3.bf16.msra.mxu0 %v2205_v38  ;;  %v132_v4 = vrot.slane %v130_v59, 4  ;;  %v149_v6 = vshll.u32 %v101_v45, 16  ;;  %v264_v7 = vrot.slane %v263_v62, 4  ;;  %v135_v8 = vrot.slane %v133_v0, 5  ;;  %v2042_v38 = vld [vmem:[#allocation4 + $0x120] sm:$0xff]   ;;  %v2049_v51 = vld [vmem:[#allocation6 + $0x78] sm:$0xff]   ;;  %1866 = vmatprep.subr.bf16.mxu1 %v2048_v50 }
  0x44   :  { %1944 = vmatprep.subr.bf16.mxu0 %v2040_v52  ;;  %v1657_v9 = vrot.slane %v2248_v18, 9  ;;  %v223_v11 = vrot.slane %v2251_v23, 5  ;;  %v277_v12 = vor.u32 %v276_v2, %v273_v56  ;;  %v146_v13 = vor.u32 %v145_v5, %v141_v1  ;;  %v2051_v53 = vld [vmem:[#allocation6 + $0x38] sm:$0xff]   ;;  %v2053_v56 = vld [vmem:[#allocation6 + $0x70] sm:$0xff]   ;;  %v2058_v62 = vld [vmem:[#allocation6 + $0xa8] sm:$0xff]  }
  0x45   :  { %v151_v14 = vrot.slane %v149_v6, 5  ;;  %v226_v15 = vrot.slane %v101_v45, 5  ;;  %v268_v19 = vsel %vm2232_vm9, %v264_v7, %v267_v54  ;;  %v136_v20 = vor.u32 %v135_v8, %v132_v4  ;;  %v2052_v54 = vld [vmem:[#allocation6 + $0xf0] sm:$0xff]   ;;  %v2060_v0 = vld [vmem:[#allocation6 + $0xe0] sm:$0xff]   ;;  %v2064_v5 = vld [vmem:[#allocation6 + $0xd8] sm:$0xff]  }
  0x46   :  { %v224_v18 = vsel %vm2244_vm11, %v1657_v9, %v223_v11  ;;  %v225_v21 = vrot.slane %v223_v11, 4  ;;  %v278_v22 = vsel %vm2232_vm9, %v269_v63, %v277_v12  ;;  %v147_v24 = vrot.slane %v146_v13, 4  ;;  %v2054_v57 = vld [vmem:[#allocation6 + $0xb0] sm:$0xff]   ;;  %v2059_v63 = vld [vmem:[#allocation6 + $0x28] sm:$0xff]   ;;  %v2062_v2 = vld [vmem:[#allocation6 + $0xa0] sm:$0xff]  }
  0x47   :  { %1945 = vmatpush3.bf16.msra.mxu0 %v2040_v52  ;;  %v628_v25 = vrot.slane %v2224_v58, 6  ;;  %v1661_v27 = vcombine.low %v268_v19, %v278_v22  ;;  %v137_v29 = vrot.slane %v136_v20, 4  ;;  %v631_v31 = vrot.slane %v2222_v55, 6  ;;  %v2050_v52 = vld [vmem:[#allocation6 + $0xb8] sm:$0xff]   ;;  %v2055_v59 = vld [vmem:[#allocation6 + $0x30] sm:$0xff]   ;;  %v2063_v4 = vld [vmem:[#allocation6 + $0x20] sm:$0xff]  }
  0x48   :  { %1946 = vmatprep.subr.bf16.mxu0 %v2041_v61  ;;  %v227_v30 = vsel %vm2244_vm11, %v225_v21, %v226_v15  ;;  %v152_v32 = vsel %vm2238_vm10, %v147_v24, %v151_v14  ;;  %v638_v58 = vrot.slane %v2257_v28, 6  ;;  %v1653_v41 = vcombine.low %v2265_v33, %v2251_v23  ;;  %v2045_v28 = vld [vmem:[#allocation4 + $0x110] sm:$0xff]   ;;  %1867 = vmatpush3.bf16.msra.mxu1 %v2050_v52  ;;  %v2065_v6 = vld [vmem:[#allocation6 + $0x58] sm:$0xff]   ;;  %v2072_v14 = vld [vmem:[#allocation6 + $0xc8] sm:$0xff]  }
  0x49   :  { %v1659_v34 = vcombine.low %v224_v18, %v227_v30  ;;  %v629_v36 = vsel %vm2287_vm14, %v1694_v60, %v628_v25  ;;  %v630_v37 = vrot.slane %v628_v25, 4  ;;  %463 = vmatprep.mubr.bf16.mxu0 %v1661_v27  ;;  %v142_v40 = vsel %vm2238_vm10, %v137_v29, %v141_v1  ;;  %1868 = vmatprep.subr.bf16.mxu1 %v2052_v54  ;;  %v2056_v60 = vld [vmem:[#allocation6 + $0xe8] sm:$0xff]   ;;  %v2061_v1 = vld [vmem:[#allocation6 + $0x60] sm:$0xff]   ;;  %v2066_v7 = vld [vmem:[#allocation6 + $0x98] sm:$0xff]  }
  0x4a   :  { %v635_v55 = vrot.slane %v2251_v23, 6  ;;  %v1655_v42 = vcombine.low %v142_v40, %v152_v32  ;;  %v1695_v45 = vrot.slane %v618_v26, 10  ;;  %v2047_v23 = vld [vmem:[#allocation4 + $0x100] sm:$0xff]   ;;  %v2067_v8 = vld [vmem:[#allocation6 + $0x18] sm:$0xff]   ;;  %v2068_v9 = vld [vmem:[#allocation6 + $0xd0] sm:$0xff]  }
  0x4b   :  { %1947 = vmatpush3.bf16.msra.mxu0 %v2041_v61  ;;  %v632_v43 = vsel %vm2287_vm14, %v630_v37, %v631_v31  ;;  %v2057_v61 = vld [vmem:[#allocation6 + $0x68] sm:$0xff]   ;;  %v2069_v11 = vld [vmem:[#allocation6 + $0x50] sm:$0xff]   ;;  %v2076_v20 = vld [vmem:[#allocation6 + $0xc0] sm:$0xff]  }
  0x4c   :  { %1948 = vmatprep.subr.bf16.mxu0 %v2042_v38  ;;  %464 = vmatmul.mubr.bf16.gmra.mxu0 %v1659_v34  ;;  %v1696_v44 = vcombine.low %v629_v36, %v632_v43  ;;  %v637_v46 = vrot.slane %v635_v55, 4  ;;  %v636_v33 = vsel %vm2287_vm14, %v1695_v45, %v635_v55  ;;  %v2070_v12 = vld [vmem:[#allocation6 + $0x90] sm:$0xff]   ;;  %v2073_v15 = vld [vmem:[#allocation6 + $0x48] sm:$0xff]   ;;  %v2077_v18 = vld [vmem:[#allocation6 + $0x40] sm:$0xff]  }
  0x4d   :  { %608 = vmatprep.mubr.bf16.mxu1 %v1655_v42  ;;  %1869 = vmatpush3.bf16.msra.mxu1 %v2054_v57  ;;  %v2071_v13 = vld [vmem:[#allocation6 + $0x10] sm:$0xff]   ;;  %v2075_v19 = vld [vmem:[#allocation6 + $0x8] sm:$0xff]   ;;  %v2078_v21 = vld [vmem:[#allocation6 + $0x80] sm:$0xff]  }
  0x4e   :  { %609 = vmatmul.mubr.bf16.gmra.mxu1 %v1653_v41  ;;  %1958 = vmatprep.mubr.bf16.mxu0 %v1696_v44  ;;  %v639_v48 = vsel %vm2287_vm14, %v637_v46, %v638_v58  ;;  %v2079_v22 = vld [vmem:[#allocation6] sm:$0xff]   ;;  %v2317_v24 = vld [vmem:[#allocation6 + $0x138] sm:$0xff]   ;;  %v2322_v25 = vld [vmem:[%s2464_s5 + $0x38] sm:$0xff]  }
  0x4f   :  { %1949 = vmatpush3.bf16.msra.mxu0 %v2042_v38  ;;  %v1697_v49 = vcombine.low %v636_v33, %v639_v48  ;;  %1870 = vmatprep.subr.bf16.mxu1 %v2056_v60  ;;  %v2074_v38 = vld [vmem:[#allocation6 + $0x88] sm:$0xff]  }
  0x50   :  { %1950 = vmatprep.subr.bf16.mxu0 %v2043_v39 }
  0x51   :  { %1871 = vmatpush3.bf16.msra.mxu1 %v2058_v62 }
  0x52   :  { %1872 = vmatprep.subr.bf16.mxu1 %v2060_v0 }
  0x53   :  { %1951 = vmatpush3.bf16.msra.mxu0 %v2043_v39 }
  0x54   :  { %1952 = vmatprep.subr.bf16.mxu0 %v2045_v28 }
  0x55   :  { %1873 = vmatpush3.bf16.msra.mxu1 %v2062_v2 }
  0x56   :  { %1874 = vmatprep.subr.bf16.mxu1 %v2064_v5 }
  0x57   :  { %1953 = vmatpush3.bf16.msra.mxu0 %v2045_v28 }
  0x58   :  { %1954 = vmatprep.subr.bf16.mxu0 %v2046_v47 }
  0x59   :  { %1875 = vmatpush3.bf16.msra.mxu1 %v2066_v7 }
  0x5a   :  { %1876 = vmatprep.subr.bf16.mxu1 %v2068_v9 }
  0x5b   :  { %1955 = vmatpush3.bf16.msra.mxu0 %v2046_v47 }
  0x5c   :  { %1956 = vmatprep.subr.bf16.mxu0 %v2047_v23 }
  0x5d   :  { %1877 = vmatpush3.bf16.msra.mxu1 %v2070_v12 }
  0x5e   :  { %1878 = vmatprep.subr.bf16.mxu1 %v2072_v14 }
  0x5f   :  { %1957 = vmatpush3.bf16.msra.mxu0 %v2047_v23 }
  0x60   :  { %1894 = vmatprep.subr.bf16.mxu0 %v2049_v51 }
  0x61   :  { %1879 = vmatpush3.bf16.msra.mxu1 %v2074_v38 }
  0x62   :  { %1959 = vmatmul.mubr.bf16.vlgmr.msra.gmra.mxu0 %v1697_v49  ;;  %1880 = vmatprep.subr.bf16.mxu1 %v2076_v20  ;;  %v1706_v49 = vld [vmem:[%s2461_s2] ss:$0 sm:$0xff] }
  0x63   :  { %1895 = vmatpush3.bf16.msra.mxu0 %v2051_v53 }
  0x64   :  { %1896 = vmatprep.subr.bf16.mxu0 %v2053_v56 }
  0x65   :  { %1881 = vmatpush3.bf16.msra.mxu1 %v2078_v21 }
  0x66   :  { %1962 = vmatprep.subr.bf16.mxu1 %v2317_v24 }
  0x67   :  { %1897 = vmatpush3.bf16.msra.mxu0 %v2055_v59 }
  0x68   :  { %1898 = vmatprep.subr.bf16.mxu0 %v2057_v61 }
  0x6b   :  { %1899 = vmatpush3.bf16.msra.mxu0 %v2059_v63 }
  0x6c   :  { %1900 = vmatprep.subr.bf16.mxu0 %v2061_v1 }
  0x6f   :  { %1901 = vmatpush3.bf16.msra.mxu0 %v2063_v4 }
  0x70   :  { %1902 = vmatprep.subr.bf16.mxu0 %v2065_v6 }
  0x73   :  { %1903 = vmatpush3.bf16.msra.mxu0 %v2067_v8 }
  0x74   :  { %1904 = vmatprep.subr.bf16.mxu0 %v2069_v11 }
  0x77   :  { %1905 = vmatpush3.bf16.msra.mxu0 %v2071_v13 }
  0x78   :  { %1906 = vmatprep.subr.bf16.mxu0 %v2073_v15 }
  0x7b   :  { %1907 = vmatpush3.bf16.msra.mxu0 %v2075_v19 }
  0x7c   :  { %1908 = vmatprep.subr.bf16.mxu0 %v2077_v18 }
  0x7f   :  { %1909 = vmatpush3.bf16.msra.mxu0 %v2079_v22 }
  0x80   :  { %1982 = vmatprep.subr.bf16.mxu0 %v2322_v25 }
 0x102   :  { %v1816_v26 = vpop.f32.mrf.mxu0  ;;  %v1844_v27 = vpop.f32.mrf.mxu1 }
 0x104   :  { %v1817_v29 = vpop.f32.mrf.mxu0  ;;  %v1845_v30 = vpop.f32.mrf.mxu1 }
 0x105   :  { %v1818_v46 = vadd.f32 %v1817_v29, %v1816_v26  ;;  %v1846_v28 = vadd.f32 %v1845_v30, %v1844_v27 }
 0x106   :  { %v1819_v31 = vpop.f32.mrf.mxu0  ;;  %v1847_v32 = vpop.f32.mrf.mxu1 }
 0x107   :  { %v603_v53 = vadd.f32 %v1846_v28, %v1818_v46 }
 0x108   :  { %v1820_v34 = vpop.f32.mrf.mxu0  ;;  %v1848_v36 = vpop.f32.mrf.mxu1 }
 0x109   :  { %v1821_v50 = vadd.f32 %v1820_v34, %v1819_v31  ;;  %v1849_v51 = vadd.f32 %v1848_v36, %v1847_v32 }
 0x10b   :  { %v606_v0 = vadd.f32 %v1849_v51, %v1821_v50 }
 0x10c   :  { %v1822_v37 = vpop.f32.mrf.mxu0 }
 0x10e   :  { %v1850_v39 = vpop.f32.mrf.mxu1  ;;  %v1823_v58 = vpop.f32.mrf.mxu0 }
 0x10f   :  { %v1824_v42 = vadd.f32 %v1823_v58, %v1822_v37 }
 0x110   :  { %v1851_v40 = vpop.f32.mrf.mxu1  ;;  %v1825_v41 = vpop.f32.mrf.mxu0 }
 0x111   :  { %v1852_v43 = vadd.f32 %v1851_v40, %v1850_v39 }
 0x112   :  { %v1853_v55 = vpop.f32.mrf.mxu1  ;;  %v1826_v44 = vpop.f32.mrf.mxu0 }
 0x113   :  { %v1827_v47 = vadd.f32 %v1826_v44, %v1825_v41  ;;  %v611_v33 = vadd.f32 %v1852_v43, %v1824_v42 }
 0x114   :  { %v1854_v45 = vpop.f32.mrf.mxu1 }
 0x115   :  { %v1855_v23 = vadd.f32 %v1854_v45, %v1853_v55 }
 0x117   :  { %v614_v59 = vadd.f32 %v1855_v23, %v1827_v47 }
 0x122   :  { %v1960_v48 = vpop.f32.mrf.mxu0 }
 0x123   :  { %v763_v52 = vadd.f32 %v1960_v48, %v611_v33 }
 0x124   :  { %v746_v54 = vpop.f32.mrf.mxu0 }
 0x125   :  { %v774_v56 = vadd.f32 %v1706_v49, %v763_v52  ;;  %v761_v57 = vadd.f32 %v746_v54, %v603_v53 }
 0x126   :  { %v1961_v60 = vpop.f32.mrf.mxu0 }
 0x127   :  { %v778_v61 = vmax.f32 %v774_v56, 0.0  ;;  %v772_v62 = vadd.f32 %v1706_v49, %v761_v57  ;;  %v764_v63 = vadd.f32 %v1961_v60, %v614_v59 }
 0x128   :  { %v749_v1 = vpop.f32.mrf.mxu0 }
 0x129   :  { %v1783_v2 = vpack.c.bf16 %v778_v61, %v778_v61  ;;  %v776_v4 = vmax.f32 %v772_v62, 0.0  ;;  %v775_v5 = vadd.f32 %v1706_v49, %v764_v63  ;;  %v762_v6 = vadd.f32 %v749_v1, %v606_v0 }
 0x12b   :  { %v797_v7 = vrot.slane %v1783_v2, 7  ;;  %v1781_v8 = vpack.c.bf16 %v776_v4, %v776_v4  ;;  %v779_v9 = vmax.f32 %v775_v5, 0.0  ;;  %v773_v11 = vadd.f32 %v1706_v49, %v762_v6 }
 0x12d   :  { %811 = vst [vmem:[#allocation3 + $0xc] sm:$0xe] %v797_v7  ;;  %v792_v12 = vrot.slane %v1781_v8, 7  ;;  %v1784_v13 = vpack.c.bf16 %v779_v9, %v779_v9  ;;  %v777_v14 = vmax.f32 %v773_v11, 0.0  ;;  %v798_v15 = vrot.slane %v797_v7, 4 }
 0x12f   :  { %808 = vst [vmem:[#allocation3] sm:$0xe] %v792_v12  ;;  %v799_v38 = vrot.slane %v1784_v13, 7  ;;  %v1782_v19 = vpack.c.bf16 %v777_v14, %v777_v14  ;;  %v793_v20 = vrot.slane %v792_v12, 4 }
 0x131   :  { %v800_v18 = vsel %vm2201_vm2, %v798_v15, %v799_v38  ;;  %v801_v21 = vrot.slane %v799_v38, 4  ;;  %v794_v22 = vrot.slane %v1782_v19, 7 }
 0x132   :  { %812 = vst [vmem:[#allocation3 + $0x10] sm:$0xf] %v800_v18 }
 0x133   :  { %813 = vst [vmem:[#allocation3 + $0x14] sm:$0x1] %v801_v21  ;;  %v795_v26 = vsel %vm2201_vm2, %v793_v20, %v794_v22  ;;  %v796_v27 = vrot.slane %v794_v22, 4 }
 0x134   :  { %809 = vst [vmem:[#allocation3 + $0x4] sm:$0xf] %v795_v26  ;;  %v2333_v29 = vld [vmem:[#allocation3 + $0xc] sm:$0xe] }
 0x135   :  { %v2335_v30 = vld [vmem:[#allocation3 + $0xc] sm:$0xf]  ;;  %810 = vst [vmem:[#allocation3 + $0x8] sm:$0x1] %v796_v27  ;;  %v966_v31 = vshrl.u32 %v2333_v29, 16  ;;  %v969_v32 = vshll.u32 %v2333_v29, 16 }
 0x136   :  { %v2339_v34 = vld [vmem:[#allocation3] sm:$0xe]  ;;  %v845_v37 = vshrl.u32 %v2335_v30, 16  ;;  %v848_v35 = vshll.u32 %v2335_v30, 16 }
 0x137   :  { %v2341_v36 = vld [vmem:[#allocation3] sm:$0xf]  ;;  %v943_v39 = vshrl.u32 %v2339_v34, 16  ;;  %v946_v58 = vshll.u32 %v2339_v34, 16  ;;  %v2349_v55 = vrot.slane %v966_v31, 5  ;;  %v2351_v42 = vrot.slane %v969_v32, 6 }
 0x138   :  { %v821_v40 = vshrl.u32 %v2341_v36, 16  ;;  %v824_v41 = vshll.u32 %v2341_v36, 16  ;;  %v1715_v28 = vrot.slane %v2339_v34, 9  ;;  %v2358_v33 = vrot.slane %v845_v37, 4 }
 0x139   :  { %v945_v43 = vrot.slane %v943_v39, 5  ;;  %v948_v44 = vrot.slane %v946_v58, 6  ;;  %v2353_v46 = vld [vmem:[#allocation3 + $0x10] sm:$0xf]  ;;  %v850_v48 = vrot.slane %v848_v35, 5  ;;  %v972_v52 = vor.u32 %v2351_v42, %v2349_v55 }
 0x13a   :  { %v823_v45 = vrot.slane %v821_v40, 4  ;;  %v826_v47 = vrot.slane %v824_v41, 5  ;;  %v2356_v23 = vld [vmem:[#allocation3 + $0x14] sm:$0x3]  ;;  %v854_v50 = vshll.u32 %v2353_v46, 16  ;;  %v858_v51 = vshrl.u32 %v2353_v46, 16 }
 0x13b   :  { %v2360_v49 = vld [vmem:[#allocation3 + $0x4] sm:$0xf]  ;;  %v980_v53 = vshrl.u32 %v2356_v23, 16  ;;  %v949_v59 = vor.u32 %v948_v44, %v945_v43  ;;  %v983_v1 = vshll.u32 %v2356_v23, 16  ;;  %v819_v39 = vld [vmem:[#allocation3 + $0x14] sm:$0x1]  ;;  %v851_v58 = vor.u32 %v850_v48, %v2358_v33 }
 0x13c   :  { %v830_v54 = vshll.u32 %v2360_v49, 16  ;;  %v834_v56 = vshrl.u32 %v2360_v49, 16  ;;  %v2369_v57 = vld [vmem:[#allocation3 + $0x8] sm:$0x3]  ;;  %v827_v61 = vor.u32 %v826_v47, %v823_v45  ;;  %v1711_v11 = vcombine.low %v2341_v36, %v2360_v49  ;;  %v2084_v33 = vld [vmem:[%s2464_s5 + $0x30] sm:$0xff]  }
 0x13d   :  { %v818_v60 = vld [vmem:[#allocation3 + $0x8] sm:$0x1]  ;;  %v957_v62 = vshrl.u32 %v2369_v57, 16  ;;  %v960_v63 = vshll.u32 %v2369_v57, 16  ;;  %v950_v12 = vrot.slane %v949_v59, 4  ;;  %v928_v15 = vrot.slane %v2360_v49, 5 }
 0x13e   :  { %v840_v0 = vshll.u32 %v818_v60, 16  ;;  %v951_v2 = vrot.slane %v834_v56, 5  ;;  %v952_v4 = vrot.slane %v830_v54, 6  ;;  %v828_v5 = vrot.slane %v827_v61, 4 }
 0x13f   :  { %v832_v6 = vrot.slane %v830_v54, 5  ;;  %v959_v7 = vrot.slane %v957_v62, 5  ;;  %v962_v8 = vrot.slane %v960_v63, 6  ;;  %v836_v9 = vrot.slane %v834_v56, 4  ;;  %v2083_v54 = vld [vmem:[#allocation6 + $0x130] sm:$0xff]  }
 0x140   :  { %v953_v13 = vor.u32 %v952_v4, %v951_v2  ;;  %v931_v14 = vrot.slane %v818_v60, 5  ;;  %v842_v20 = vrot.slane %v840_v0, 5  ;;  %v974_v18 = vrot.slane %v858_v51, 5  ;;  %v2085_v2 = vld [vmem:[#allocation6 + $0x128] sm:$0xff]  }
 0x141   :  { %v963_v38 = vor.u32 %v962_v8, %v959_v7  ;;  %v837_v19 = vor.u32 %v836_v9, %v832_v6  ;;  %v833_v26 = vsel %vm2238_vm10, %v828_v5, %v832_v6  ;;  %v930_v27 = vrot.slane %v928_v15, 4  ;;  %v1326_v4 = vld [vmem:[#allocation3] sm:$0xc] }
 0x142   :  { %v954_v21 = vsel %vm2232_vm9, %v950_v12, %v953_v13  ;;  %v955_v22 = vrot.slane %v953_v13, 4  ;;  %v975_v32 = vrot.slane %v854_v50, 6  ;;  %v982_v34 = vrot.slane %v980_v53, 5 }
 0x143   :  { %v838_v31 = vrot.slane %v837_v19, 4  ;;  %v985_v36 = vrot.slane %v983_v1, 6  ;;  %v932_v35 = vsel %vm2244_vm11, %v930_v27, %v931_v14  ;;  %v856_v40 = vrot.slane %v854_v50, 5  ;;  %v2088_v14 = vld [vmem:[#allocation6 + $0x120] sm:$0xff]   ;;  %v2090_v19 = vld [vmem:[#allocation6 + $0x118] sm:$0xff]  }
 0x144   :  { %v964_v37 = vsel %vm2232_vm9, %v955_v22, %v963_v38  ;;  %v929_v42 = vsel %vm2244_vm11, %v1715_v28, %v928_v15  ;;  %v976_v43 = vor.u32 %v975_v32, %v974_v18  ;;  %v860_v53 = vrot.slane %v858_v51, 4  ;;  %v2098_v38 = vld [vmem:[%s2459_s0] sm:$0xff]   ;;  %v2093_v18 = vld [vmem:[%s2464_s5 + $0x10] sm:$0xff]   ;;  %v2095_v22 = vld [vmem:[%s2464_s5 + $0x8] sm:$0xff]  }
 0x145   :  { %v1719_v41 = vcombine.low %v954_v21, %v964_v37  ;;  %v843_v55 = vsel %vm2238_vm10, %v838_v31, %v842_v20  ;;  %v1717_v45 = vcombine.low %v929_v42, %v932_v35  ;;  %v986_v47 = vor.u32 %v985_v36, %v982_v34  ;;  %v2092_v20 = vld [vmem:[#allocation6 + $0x110] sm:$0xff]   ;;  %v2094_v21 = vld [vmem:[#allocation6 + $0x108] sm:$0xff]   ;;  %v2096_v27 = vld [vmem:[#allocation6 + $0x100] sm:$0xff]  }
 0x146   :  { %v1713_v44 = vcombine.low %v833_v26, %v843_v55  ;;  %v973_v56 = vrot.slane %v972_v52, 4  ;;  %v978_v59 = vrot.slane %v976_v43, 4  ;;  %v864_v60 = vshll.u32 %v819_v39, 16  ;;  %v2097_v32 = vld [vmem:[%s2464_s5] sm:$0xff]  }
 0x147   :  { %1164 = vmatprep.mubr.bf16.mxu1 %v1719_v41  ;;  %v935_v48 = vrot.slane %v2353_v46, 5  ;;  %v852_v50 = vrot.slane %v851_v58, 4  ;;  %v861_v28 = vor.u32 %v860_v53, %v856_v40  ;;  %v938_v61 = vrot.slane %v819_v39, 5  ;;  %v1327_v36 = vld [vmem:[#allocation3 + $0xc] sm:$0xc] }
 0x148   :  { %1309 = vmatprep.mubr.bf16.mxu0 %v1713_v44  ;;  %1165 = vmatmul.mubr.bf16.vlgmr.msra.gmra.mxu1 %v1717_v45  ;;  %v977_v51 = vsel %vm2232_vm9, %v973_v56, %v976_v43  ;;  %v987_v52 = vsel %vm2232_vm9, %v978_v59, %v986_v47  ;;  %v866_v1 = vrot.slane %v864_v60, 5  ;;  %v1334_v5 = vrot.slane %v2360_v49, 6 }
 0x149   :  { %1310 = vmatmul.mubr.bf16.vlgmr.msra.gmra.mxu0 %v1711_v11  ;;  %1963 = vmatpush3.bf16.msra.mxu1 %v2317_v24  ;;  %v937_v62 = vrot.slane %v935_v48, 4  ;;  %v1720_v63 = vcombine.low %v977_v51, %v987_v52  ;;  %v862_v0 = vrot.slane %v861_v28, 4  ;;  %v2086_v24 = vld [vmem:[%s2464_s5 + $0x28] sm:$0xff]   ;;  %v1716_v6 = vrot.slane %v2333_v29, 9 }
 0x14a   :  { %1983 = vmatpush3.bf16.msra.mxu0 %v2322_v25  ;;  %1964 = vmatprep.subr.bf16.mxu1 %v2083_v54  ;;  %v1337_v25 = vrot.slane %v2369_v57, 6  ;;  %v857_v7 = vsel %vm2238_vm10, %v852_v50, %v856_v40  ;;  %v1336_v49 = vrot.slane %v1334_v5, 4  ;;  %v1753_v12 = vrot.slane %v1326_v4, 10 }
 0x14b   :  { %1984 = vmatprep.subr.bf16.mxu0 %v2084_v33  ;;  %v939_v3 = vsel %vm2244_vm11, %v937_v62, %v938_v61  ;;  %1172 = vmatprep.mubr.bf16.mxu1 %v1720_v63  ;;  %v867_v8 = vsel %vm2238_vm10, %v862_v0, %v866_v1  ;;  %v936_v11 = vsel %vm2244_vm11, %v1716_v6, %v935_v48  ;;  %v1341_v26 = vrot.slane %v2353_v46, 6  ;;  %v1765_v0 = vld [vmem:[%s2463_s4] ss:$0 sm:$0xff] }
 0x14c   :  { %v1714_v9 = vcombine.low %v857_v7, %v867_v8  ;;  %v1718_v29 = vcombine.low %v936_v11, %v939_v3  ;;  %v1338_v57 = vsel %vm2287_vm14, %v1336_v49, %v1337_v25  ;;  %v1712_v13 = vcombine.low %v2335_v30, %v2353_v46  ;;  %v2091_v30 = vld [vmem:[%s2464_s5 + $0x18] sm:$0xff]   ;;  %v1766_v1 = vld [vmem:[%s2465_s6] ss:$0 sm:$0xff] }
 0x14d   :  { %1965 = vmatpush3.bf16.msra.mxu1 %v2083_v54  ;;  %v1335_v10 = vsel %vm2287_vm14, %v1753_v12, %v1334_v5  ;;  %v1344_v31 = vrot.slane %v2356_v23, 6  ;;  %v1343_v34 = vrot.slane %v1341_v26, 4  ;;  %v1754_v37 = vrot.slane %v1327_v36, 10  ;;  %v2099_v23 = vld [vmem:[%s2459_s0 + $0x8] sm:$0xff]  }
 0x14e   :  { %1985 = vmatpush3.bf16.msra.mxu0 %v2084_v33  ;;  %1966 = vmatprep.subr.bf16.mxu1 %v2085_v2  ;;  %v1755_v15 = vcombine.low %v1335_v10, %v1338_v57 }
 0x14f   :  { %1317 = vmatprep.mubr.bf16.mxu0 %v1714_v9  ;;  %1986 = vmatprep.subr.bf16.mxu0 %v2086_v24  ;;  %v1345_v46 = vsel %vm2287_vm14, %v1343_v34, %v1344_v31  ;;  %v1342_v35 = vsel %vm2287_vm14, %v1754_v37, %v1341_v26 }
 0x150   :  { %1173 = vmatmul.mubr.bf16.gmra.mxu1 %v1718_v29  ;;  %v1756_v39 = vcombine.low %v1342_v35, %v1345_v46 }
 0x151   :  { %1318 = vmatmul.mubr.bf16.gmra.mxu0 %v1712_v13  ;;  %1967 = vmatpush3.bf16.msra.mxu1 %v2085_v2 }
 0x152   :  { %1987 = vmatpush3.bf16.msra.mxu0 %v2086_v24  ;;  %1978 = vmatprep.mubr.bf16.mxu1 %v1755_v15 }
 0x153   :  { %1968 = vmatprep.subr.bf16.mxu1 %v2088_v14  ;;  %1988 = vmatprep.subr.bf16.mxu0 %v2089_v17 }
 0x154   :  { %1998 = vmatprep.mubr.bf16.mxu0 %v2098_v38 }
 0x155   :  { %1969 = vmatpush3.bf16.msra.mxu1 %v2088_v14 }
 0x156   :  { %1989 = vmatpush3.bf16.msra.mxu0 %v2089_v17  ;;  %1970 = vmatprep.subr.bf16.mxu1 %v2090_v19 }
 0x157   :  { %1990 = vmatprep.subr.bf16.mxu0 %v2091_v30 }
 0x159   :  { %1971 = vmatpush3.bf16.msra.mxu1 %v2090_v19 }
 0x15a   :  { %1991 = vmatpush3.bf16.msra.mxu0 %v2091_v30  ;;  %1972 = vmatprep.subr.bf16.mxu1 %v2092_v20 }
 0x15b   :  { %1992 = vmatprep.subr.bf16.mxu0 %v2093_v18 }
 0x15d   :  { %1973 = vmatpush3.bf16.msra.mxu1 %v2092_v20 }
 0x15e   :  { %1993 = vmatpush3.bf16.msra.mxu0 %v2093_v18  ;;  %1974 = vmatprep.subr.bf16.mxu1 %v2094_v21 }
 0x15f   :  { %1994 = vmatprep.subr.bf16.mxu0 %v2095_v22 }
 0x161   :  { %1975 = vmatpush3.bf16.msra.mxu1 %v2094_v21 }
 0x162   :  { %1995 = vmatpush3.bf16.msra.mxu0 %v2095_v22  ;;  %1976 = vmatprep.subr.bf16.mxu1 %v2096_v27 }
 0x163   :  { %1996 = vmatprep.subr.bf16.mxu0 %v2097_v32 }
 0x165   :  { %1977 = vmatpush3.bf16.msra.mxu1 %v2096_v27 }
 0x166   :  { %1997 = vmatpush3.bf16.msra.mxu0 %v2097_v32 }
 0x168   :  { %1979 = vmatmul.mubr.bf16.vlgmr.msra.gmra.mxu1 %v1756_v39 }
 0x169   :  { %1999 = vmatmul.mubr.bf16.vlgmr.msra.gmra.mxu0 %v2099_v23 }
 0x208   :  { %v1882_v58 = vpop.f32.mrf.mxu1 }
 0x209   :  { %v1910_v40 = vpop.f32.mrf.mxu0 }
 0x20a   :  { %v1883_v41 = vpop.f32.mrf.mxu1 }
 0x20b   :  { %v1911_v55 = vpop.f32.mrf.mxu0  ;;  %v1884_v28 = vadd.f32 %v1883_v41, %v1882_v58 }
 0x20c   :  { %v1885_v42 = vpop.f32.mrf.mxu1  ;;  %v1912_v61 = vadd.f32 %v1911_v55, %v1910_v40 }
 0x20d   :  { %v1913_v43 = vpop.f32.mrf.mxu0 }
 0x20e   :  { %v1886_v44 = vpop.f32.mrf.mxu1  ;;  %v1312_v6 = vadd.f32 %v1912_v61, %v1884_v28 }
 0x20f   :  { %v1914_v45 = vpop.f32.mrf.mxu0  ;;  %v1887_v2 = vadd.f32 %v1886_v44, %v1885_v42 }
 0x210   :  { %v1888_v47 = vpop.f32.mrf.mxu1  ;;  %v1915_v4 = vadd.f32 %v1914_v45, %v1913_v43 }
 0x211   :  { %v1916_v53 = vpop.f32.mrf.mxu0 }
 0x212   :  { %v1889_v16 = vpop.f32.mrf.mxu1  ;;  %v1315_v13 = vadd.f32 %v1915_v4, %v1887_v2 }
 0x213   :  { %v1917_v54 = vpop.f32.mrf.mxu0  ;;  %v1890_v60 = vadd.f32 %v1889_v16, %v1888_v47 }
 0x214   :  { %v1891_v56 = vpop.f32.mrf.mxu1  ;;  %v1918_v33 = vadd.f32 %v1917_v54, %v1916_v53 }
 0x215   :  { %v1919_v59 = vpop.f32.mrf.mxu0 }
 0x216   :  { %v1892_v48 = vpop.f32.mrf.mxu1  ;;  %v1320_v62 = vadd.f32 %v1918_v33, %v1890_v60 }
 0x217   :  { %v1920_v50 = vpop.f32.mrf.mxu0  ;;  %v1893_v51 = vadd.f32 %v1892_v48, %v1891_v56 }
 0x218   :  { %v1921_v52 = vadd.f32 %v1920_v50, %v1919_v59 }
 0x21a   :  { %v1323_v9 = vadd.f32 %v1921_v52, %v1893_v51 }
 0x228   :  { %v1980_v63 = vpop.f32.mrf.mxu1 }
 0x229   :  { %v1469_v5 = vadd.f32 %v1980_v63, %v1320_v62  ;;  %v2000_v24 = vpop.f32.mrf.mxu0 }
 0x22a   :  { %v1452_v3 = vpop.f32.mrf.mxu1  ;;  %v1612_v7 = vadd.f32 %v2000_v24, %v1766_v1 }
 0x22b   :  { %v1480_v25 = vadd.f32 %v1765_v0, %v1469_v5  ;;  %v1467_v8 = vadd.f32 %v1452_v3, %v1312_v6  ;;  %v1603_v49 = vpop.f32.mrf.mxu0 }
 0x22c   :  { %v1981_v11 = vpop.f32.mrf.mxu1  ;;  %v1604_v10 = vadd.f32 %v1766_v1, %v1603_v49 }
 0x22d   :  { %v1478_v12 = vadd.f32 %v1765_v0, %v1467_v8  ;;  %v1470_v29 = vadd.f32 %v1981_v11, %v1323_v9  ;;  %v2001_v57 = vpop.f32.mrf.mxu0  ;;  %v1620_v17 = vadd.f32 %v1612_v7, %v1480_v25 }
 0x22e   :  { %v1455_v14 = vpop.f32.mrf.mxu1  ;;  %v1615_v38 = vadd.f32 %v2001_v57, %v1766_v1 }
 0x22f   :  { %v1481_v15 = vadd.f32 %v1765_v0, %v1470_v29  ;;  %v1468_v19 = vadd.f32 %v1455_v14, %v1315_v13  ;;  %v1606_v30 = vpop.f32.mrf.mxu0  ;;  %v1618_v20 = vadd.f32 %v1604_v10, %v1478_v12  ;;  %v1624_v26 = vmax.f32 %v1620_v17, 0.0 }
 0x230   :  { %v1607_v22 = vadd.f32 %v1766_v1, %v1606_v30 }
 0x231   :  { %v1621_v18 = vadd.f32 %v1615_v38, %v1481_v15  ;;  %v1479_v21 = vadd.f32 %v1765_v0, %v1468_v19  ;;  %v1622_v32 = vmax.f32 %v1618_v20, 0.0 }
 0x233   :  { %v1625_v27 = vmax.f32 %v1621_v18, 0.0  ;;  %v1619_v31 = vadd.f32 %v1607_v22, %v1479_v21 }
 0x235   :  { %v1797_v34 = vpack.c.bf16 %v1625_v27, %v1624_v26  ;;  %v1623_v36 = vmax.f32 %v1619_v31, 0.0 }
 0x237   :  { %1799 = vst [vmem:[%s2466_s7 + $0x8] sm:$0xff] %v1797_v34   ;;  %v1792_v37 = vpack.c.bf16 %v1623_v36, %v1622_v32 }
 0x239   :  { %1793 = vst [vmem:[%s2466_s7] sm:$0xff] %v1792_v37  }
 0x23a   :  { %1650 = vsyncpa [#allocation5], 1 }
 0x23b   :  { %1651 = vsyncpa [#allocation7], 1 }

</bundles_post_ra>
